<compile_context>
chip_gen: v7x
topology: tpu7x:2x2x1
jax: 0.10.0
libtpu: 0.0.40
codegen_flags: <defaults>
</compile_context>

<pallas_src>
import jax
import jax.numpy as jnp
from jax import lax
from jax.experimental import pallas as pl
from jax.experimental.pallas import tpu as pltpu


def _round_up(x, m):
    return ((x + m - 1) // m) * m


def _choose_time_chunk(T, Bp, Ep, Hp,
                       vmem_budget_bytes=20 * 1024 * 1024,
                       target_rows=256):
    """Pick Tc = a divisor of T.

    Prefer the smallest divisor whose chunk already reaches `target_rows`
    (= Tc*Bp) MXU rows; otherwise the largest divisor whose per-chunk VMEM
    (double-buffered bf16 embeds + double-slot f32 pre-activations) fits the
    budget.  Keeps scratch independent of T and well under the 32 MiB scoped
    VMEM limit on every generation (v5e/v6e/v7x).
    """
    per_row_bytes = 2 * (Ep * 2) + 2 * (4 * Hp * 4)
    divisors = [d for d in range(1, T + 1) if T % d == 0]
    fitting = [d for d in divisors if d * Bp * per_row_bytes <= vmem_budget_bytes]
    if not fitting:
        return 1
    reaching = [d for d in fitting if d * Bp >= target_rows]
    return reaching[0] if reaching else fitting[-1]


def bilstm_fc_kernel(embeds_ref,                     # (Tc*Bp, Ep)  bf16, time-major rows
                     wih_f_ref, whh_f_ref, b_f_ref,  # (Ep,4Hp) bf16, (Hp,4Hp) bf16, (1,4Hp) f32
                     wih_b_ref, b_b_ref,             # (Ep,4Hp) bf16, (1,4Hp) f32
                     fcw_ref, fcb_ref,               # (2Hp,Op) bf16, (1,Op) f32
                     out_ref,                        # (Bp, Op) f32
                     h_ref, c_ref, pre_ref):         # VMEM scratch
    t_idx = pl.program_id(0)
    n_chunks = pl.num_programs(0) - 1                # grid = n_chunks + 1 (tail step)

    Hp = whh_f_ref.shape[0]
    Bp = h_ref.shape[0]
    rows = embeds_ref.shape[0]
    Tc = rows // Bp

    # ---- init carried state on the first grid step ----
    @pl.when(t_idx == 0)
    def _init():
        h_ref[...] = jnp.zeros_like(h_ref)
        c_ref[...] = jnp.zeros_like(c_ref)

    # ---- stage A: hoisted input projection for chunk t_idx (one MXU pass) ----
    # Written into pre-slot t&1; the recurrence below reads the *other* slot,
    # so the scheduler is free to hide this matmul under the serial recurrence.
    @pl.when(t_idx < n_chunks)
    def _project():
        slot = t_idx & 1
        base_w = pl.multiple_of(slot * rows, 8)
        pre_ref[pl.ds(base_w, rows), :] = (
            jnp.dot(embeds_ref[...], wih_f_ref[...],
                    preferred_element_type=jnp.float32) + b_f_ref[...])

    # ---- stage B: forward recurrence over chunk t_idx-1 (projected last step) ----
    @pl.when(t_idx > 0)
    def _recur():
        prev_slot = (t_idx - 1) & 1
        base_r = prev_slot * rows

        def step(t, carry):
            h, c = carry
            off = pl.multiple_of(base_r + t * Bp, 8)
            # NOTE: h is re-rounded to bf16 each step before hitting the MXU;
            # drift vs. an all-f32 reference grows with T (fine at small T).
            pre = pre_ref[pl.ds(off, Bp), :] + jnp.dot(
                h.astype(jnp.bfloat16), whh_f_ref[...],
                preferred_element_type=jnp.float32)
            i = jax.nn.sigmoid(pre[:, 0 * Hp:1 * Hp])   # lane-aligned gate slices
            f = jax.nn.sigmoid(pre[:, 1 * Hp:2 * Hp])
            g = jnp.tanh(pre[:, 2 * Hp:3 * Hp])
            o = jax.nn.sigmoid(pre[:, 3 * Hp:4 * Hp])
            c_new = f * c + i * g
            h_new = o * jnp.tanh(c_new)
            return h_new, c_new

        h_new, c_new = lax.fori_loop(0, Tc, step, (h_ref[...], c_ref[...]),
                                     unroll=min(Tc, 8))
        h_ref[...] = h_new
        c_ref[...] = c_new

    # ---- tail grid step: reverse-direction first step + fc ----
    # The embeds index_map clamps to the last chunk here, so the block holds
    # the final time steps and x[T-1] is available for the reverse direction.
    @pl.when(t_idx == n_chunks)
    def _finalize():
        # Reverse direction starts from zero state at position T-1, so the
        # h0 @ whh_b term and the f*c term are identically zero -> dropped.
        x_last = embeds_ref[pl.ds((Tc - 1) * Bp, Bp), :]
        pre_b = (jnp.dot(x_last, wih_b_ref[...],
                         preferred_element_type=jnp.float32) + b_b_ref[...])
        i_b = jax.nn.sigmoid(pre_b[:, 0 * Hp:1 * Hp])
        g_b = jnp.tanh(pre_b[:, 2 * Hp:3 * Hp])
        o_b = jax.nn.sigmoid(pre_b[:, 3 * Hp:4 * Hp])
        h_bwd = o_b * jnp.tanh(i_b * g_b)

        feat = jnp.concatenate([h_ref[...], h_bwd], axis=-1).astype(jnp.bfloat16)
        out_ref[...] = (jnp.dot(feat, fcw_ref[...],
                                preferred_element_type=jnp.float32)
                        + fcb_ref[...])


def prepare_kernel_params(params):
    """One-time padding / transposition / bf16 cast of module parameters."""
    emb = params["embedding"]                      # (V, E)
    E = emb.shape[1]
    H = params["whh_f"].shape[0]
    O = params["fc_w"].shape[1]
    Hp = _round_up(H, 128)
    Ep = _round_up(E, 128)
    Op = _round_up(O, 128)

    def pad_gate_cols(w):
        # (..., 4H) -> (..., 4Hp): zero-pad each gate block so gate slices
        # land on 128-lane boundaries inside the kernel (exact: pads stay 0).
        lead = w.shape[:-1]
        w4 = w.reshape(lead + (4, H))
        w4 = jnp.pad(w4, [(0, 0)] * len(lead) + [(0, 0), (0, Hp - H)])
        return w4.reshape(lead + (4 * Hp,))

    wih_f = jnp.pad(pad_gate_cols(params["wih_f"]), ((0, Ep - E), (0, 0)))
    whh_f = jnp.pad(pad_gate_cols(params["whh_f"]), ((0, Hp - H), (0, 0)))
    b_f = pad_gate_cols(params["b_f"])
    wih_b = jnp.pad(pad_gate_cols(params["wih_b"]), ((0, Ep - E), (0, 0)))
    b_b = pad_gate_cols(params["b_b"])
    # NOTE: whh_b intentionally not prepared — its contribution is zero.

    fc_w = params["fc_w"]                          # (2H, O)
    fcw_p = jnp.zeros((2 * Hp, Op), jnp.float32)
    fcw_p = fcw_p.at[:H, :O].set(fc_w[:H])         # forward-direction rows
    fcw_p = fcw_p.at[Hp:Hp + H, :O].set(fc_w[H:])  # backward-direction rows
    fcb_p = jnp.zeros((1, Op), jnp.float32).at[:, :O].set(params["fc_b"])

    emb_p = jnp.pad(emb, ((0, 0), (0, Ep - E)))

    return {
        "embedding": emb_p.astype(jnp.bfloat16),
        "wih_f": wih_f.astype(jnp.bfloat16),
        "whh_f": whh_f.astype(jnp.bfloat16),
        "b_f": b_f.astype(jnp.float32),
        "wih_b": wih_b.astype(jnp.bfloat16),
        "b_b": b_b.astype(jnp.float32),
        "fc_w": fcw_p.astype(jnp.bfloat16),
        "fc_b": fcb_p,
        "hidden_dim": H, "embed_dim": E, "output_size": O,
        "Hp": Hp, "Ep": Ep, "Op": Op,
    }


def sentiment_bilstm_forward(tokens, kparams, time_chunk=None):
    """tokens: (B, T) int32 indices. Returns (B, output_size) f32 logits."""
    B, T = tokens.shape
    O = kparams["output_size"]
    Hp, Ep, Op = kparams["Hp"], kparams["Ep"], kparams["Op"]
    Bp = _round_up(B, 8)

    if time_chunk is None or T % time_chunk != 0:
        time_chunk = _choose_time_chunk(T, Bp, Ep, Hp)
    n_chunks = T // time_chunk
    rows = time_chunk * Bp                 # rows per chunk (time-major, b minor)

    # Embedding gather straight into the flattened time-major layout the kernel
    # consumes.  Padded batch columns reuse token id 0 (a real vocabulary row);
    # their hidden states are garbage but are sliced away at out[:B].
    # TODO(synk): fuse this gather into the kernel (scalar-prefetched ids +
    # manual DMA gather) for GloVe-scale vocab / long sequences.
    tok_tm = jnp.pad(jnp.transpose(tokens).astype(jnp.int32),
                     ((0, 0), (0, Bp - B)))          # (T, Bp)
    flat_ids = tok_tm.reshape(-1)                    # (T*Bp,)
    embeds = jnp.take(kparams["embedding"], flat_ids, axis=0)  # (T*Bp, Ep) bf16

    last_chunk = n_chunks - 1

    out = pl.pallas_call(
        bilstm_fc_kernel,
        out_shape=jax.ShapeDtypeStruct((Bp, Op), jnp.float32),
        grid_spec=pltpu.PrefetchScalarGridSpec(
            num_scalar_prefetch=0,
            grid=(n_chunks + 1,),                    # +1 tail step drains the pipe
            in_specs=[
                # Clamp so the tail step re-presents the last chunk (needed for
                # the reverse-direction step; no extra DMA since index repeats).
                pl.BlockSpec((rows, Ep),
                             lambda t: (jnp.minimum(t, last_chunk), 0)),
                pl.BlockSpec((Ep, 4 * Hp), lambda t: (0, 0)),      # wih_f
                pl.BlockSpec((Hp, 4 * Hp), lambda t: (0, 0)),      # whh_f
                pl.BlockSpec((1, 4 * Hp), lambda t: (0, 0)),       # b_f
                pl.BlockSpec((Ep, 4 * Hp), lambda t: (0, 0)),      # wih_b
                pl.BlockSpec((1, 4 * Hp), lambda t: (0, 0)),       # b_b
                pl.BlockSpec((2 * Hp, Op), lambda t: (0, 0)),      # fc_w
                pl.BlockSpec((1, Op), lambda t: (0, 0)),           # fc_b
            ],
            out_specs=pl.BlockSpec((Bp, Op), lambda t: (0, 0)),
            scratch_shapes=[
                pltpu.VMEM((Bp, Hp), jnp.float32),           # h carried across chunks
                pltpu.VMEM((Bp, Hp), jnp.float32),           # c carried across chunks
                pltpu.VMEM((2 * rows, 4 * Hp), jnp.float32),  # double-slot x-projection
            ]),
        compiler_params=pltpu.CompilerParams(
            dimension_semantics=("arbitrary",),              # sequential recurrence
            vmem_limit_bytes=32 * 1024 * 1024),
    )(embeds,
      kparams["wih_f"], kparams["whh_f"], kparams["b_f"],
      kparams["wih_b"], kparams["b_b"],
      kparams["fc_w"], kparams["fc_b"])

    return out[:B, :O]


def reference_forward(tokens, params):
    """Pure-JAX f32 reference mirroring torch.nn.LSTM(bidirectional=True)."""
    emb = params["embedding"]
    embeds = jnp.take(emb, tokens, axis=0).astype(jnp.float32)  # (B, T, E)
    B, T, _ = embeds.shape
    H = params["whh_f"].shape[0]

    def cell(x_t, h, c, wih, whh, b):
        pre = x_t @ wih + h @ whh + b
        i = jax.nn.sigmoid(pre[:, :H])
        f = jax.nn.sigmoid(pre[:, H:2 * H])
        g = jnp.tanh(pre[:, 2 * H:3 * H])
        o = jax.nn.sigmoid(pre[:, 3 * H:])
        c = f * c + i * g
        h = o * jnp.tanh(c)
        return h, c

    h = jnp.zeros((B, H)); c = jnp.zeros((B, H))
    for t in range(T):
        h, c = cell(embeds[:, t], h, c,
                    params["wih_f"], params["whh_f"], params["b_f"])
    h_fwd_last = h

    hb = jnp.zeros((B, H)); cb = jnp.zeros((B, H))
    h_bwd_at_last = None
    for t in range(T - 1, -1, -1):
        hb, cb = cell(embeds[:, t], hb, cb,
                      params["wih_b"], params["whh_b"], params["b_b"])
        if t == T - 1:
            h_bwd_at_last = hb

    feat = jnp.concatenate([h_fwd_last, h_bwd_at_last], axis=-1)
    return feat @ params["fc_w"] + params["fc_b"]


def init_params(key, vocab_size, embed_dim, hidden_dim, output_size):
    """Deterministic synthetic parameters with the same shapes as the module."""
    ks = jax.random.split(key, 12)
    H, E, O = hidden_dim, embed_dim, output_size
    s = 1.0 / jnp.sqrt(jnp.float32(H))
    u = lambda k, shp, sc: jax.random.uniform(k, shp, jnp.float32, -sc, sc)
    return {
        # frozen embedding matrix (stand-in for GloVe rows)
        "embedding": jax.random.normal(ks[0], (vocab_size, E), jnp.float32) * 0.1,
        # forward direction (torch weight_ih_l0 is (4H,E); we store transposed)
        "wih_f": u(ks[1], (E, 4 * H), s),
        "whh_f": u(ks[2], (H, 4 * H), s),
        "b_f": u(ks[3], (1, 4 * H), s) + u(ks[4], (1, 4 * H), s),  # b_ih + b_hh
        # reverse direction (whh_b only used by the reference; its contribution
        # at the last time step is identically zero)
        "wih_b": u(ks[5], (E, 4 * H), s),
        "whh_b": u(ks[6], (H, 4 * H), s),
        "b_b": u(ks[7], (1, 4 * H), s) + u(ks[8], (1, 4 * H), s),
        # fc: torch (O, 2H) stored transposed
        "fc_w": u(ks[9], (2 * H, O), 1.0 / jnp.sqrt(jnp.float32(2 * H))),
        "fc_b": u(ks[10], (1, O), 1.0 / jnp.sqrt(jnp.float32(2 * H))),
    }


if __name__ == "__main__":
    B, T = 2, 8
    VOCAB, EMBED_DIM, HIDDEN_DIM, OUTPUT_SIZE = 50, 300, 64, 3

    key = jax.random.PRNGKey(0)
    k_tok, k_par = jax.random.split(key)
    params = init_params(k_par, VOCAB, EMBED_DIM, HIDDEN_DIM, OUTPUT_SIZE)
    tokens = jax.random.randint(k_tok, (B, T), 0, VOCAB, dtype=jnp.int32)

    kparams = prepare_kernel_params(params)
    out = jax.block_until_ready(sentiment_bilstm_forward(tokens, kparams))

    ref = jax.block_until_ready(reference_forward(tokens, params))
    assert out.shape == (B, OUTPUT_SIZE)
    # bf16 weights/embeddings with f32 accumulation -> small deviation vs f32 ref
    assert jnp.allclose(out, ref, atol=2e-2, rtol=2e-2), (out, ref)

    print("KERNEL_OK")
</pallas_src>

<mosaic_0001>
module attributes {stable_mosaic.version = 11 : i64} {
  func.func @bilstm_fc_kernel(%arg0: i32, %arg1: memref<64x384xbf16, #tpu.memory_space<vmem>>, %arg2: memref<384x512xbf16, #tpu.memory_space<vmem>>, %arg3: memref<128x512xbf16, #tpu.memory_space<vmem>>, %arg4: memref<1x512xf32, #tpu.memory_space<vmem>>, %arg5: memref<384x512xbf16, #tpu.memory_space<vmem>>, %arg6: memref<1x512xf32, #tpu.memory_space<vmem>>, %arg7: memref<256x128xbf16, #tpu.memory_space<vmem>>, %arg8: memref<1x128xf32, #tpu.memory_space<vmem>>, %arg9: memref<8x128xf32, #tpu.memory_space<vmem>>, %arg10: memref<8x128xf32, #tpu.memory_space<vmem>>, %arg11: memref<8x128xf32, #tpu.memory_space<vmem>>, %arg12: memref<128x512xf32, #tpu.memory_space<vmem>>) attributes {dimension_semantics = [#tpu.dimension_semantics<arbitrary>], iteration_bounds = array<i64: 2>, scalar_prefetch = 0 : i64, scratch_operands = 3 : i64, tpu.core_type = #tpu.core_type<tc>, window_params = [{transform_indices = @transform_0, window_bounds = array<i64: 64, 384>}, {pipeline_mode = #tpu.pipeline_mode<synchronous>, transform_indices = @transform_1, window_bounds = array<i64: 384, 512>}, {pipeline_mode = #tpu.pipeline_mode<synchronous>, transform_indices = @transform_2, window_bounds = array<i64: 128, 512>}, {pipeline_mode = #tpu.pipeline_mode<synchronous>, transform_indices = @transform_3, window_bounds = array<i64: 1, 512>}, {pipeline_mode = #tpu.pipeline_mode<synchronous>, transform_indices = @transform_4, window_bounds = array<i64: 384, 512>}, {pipeline_mode = #tpu.pipeline_mode<synchronous>, transform_indices = @transform_5, window_bounds = array<i64: 1, 512>}, {pipeline_mode = #tpu.pipeline_mode<synchronous>, transform_indices = @transform_6, window_bounds = array<i64: 256, 128>}, {pipeline_mode = #tpu.pipeline_mode<synchronous>, transform_indices = @transform_7, window_bounds = array<i64: 1, 128>}, {pipeline_mode = #tpu.pipeline_mode<synchronous>, transform_indices = @transform_8, window_bounds = array<i64: 8, 128>}]} {
    %c0_i32 = arith.constant 0 : i32
    %0 = arith.cmpi eq, %arg0, %c0_i32 : i32
    %1 = arith.extui %0 : i1 to i32
    %c0_i32_0 = arith.constant 0 : i32
    %2 = arith.cmpi ne, %1, %c0_i32_0 : i32
    scf.if %2 {
      %cst = arith.constant 0.000000e+00 : f32
      %12 = vector.broadcast %cst : f32 to vector<8x128xf32>
      %c0 = arith.constant 0 : index
      %c0_6 = arith.constant 0 : index
      %13 = vector.load %arg10[%c0, %c0_6] : memref<8x128xf32, #tpu.memory_space<vmem>>, vector<8x128xf32>
      tpu.vector_store %arg10[%c0, %c0_6], %12 {strides = array<i32>} : memref<8x128xf32, #tpu.memory_space<vmem>>, vector<8x128xf32>,
      %cst_7 = arith.constant 0.000000e+00 : f32
      %14 = vector.broadcast %cst_7 : f32 to vector<8x128xf32>
      %c0_8 = arith.constant 0 : index
      %c0_9 = arith.constant 0 : index
      %15 = vector.load %arg11[%c0_8, %c0_9] : memref<8x128xf32, #tpu.memory_space<vmem>>, vector<8x128xf32>
      tpu.vector_store %arg11[%c0_8, %c0_9], %14 {strides = array<i32>} : memref<8x128xf32, #tpu.memory_space<vmem>>, vector<8x128xf32>,
    } else {
    }
    %c1_i32 = arith.constant 1 : i32
    %3 = arith.cmpi slt, %arg0, %c1_i32 : i32
    %4 = arith.extui %3 : i1 to i32
    %c0_i32_1 = arith.constant 0 : i32
    %5 = arith.cmpi ne, %4, %c0_i32_1 : i32
    scf.if %5 {
      %c1_i32_6 = arith.constant 1 : i32
      %12 = arith.andi %arg0, %c1_i32_6 : i32
      %c64_i32 = arith.constant 64 : i32
      %13 = arith.muli %12, %c64_i32 : i32
      %14 = tpu.assume_multiple %13, 8 : i32
      %c0 = arith.constant 0 : index
      %c0_7 = arith.constant 0 : index
      %15 = vector.load %arg1[%c0, %c0_7] : memref<64x384xbf16, #tpu.memory_space<vmem>>, vector<64x384xbf16>
      %c0_8 = arith.constant 0 : index
      %c0_9 = arith.constant 0 : index
      %16 = vector.load %arg2[%c0_8, %c0_9] : memref<384x512xbf16, #tpu.memory_space<vmem>>, vector<384x512xbf16>
      %cst = arith.constant dense<0.000000e+00> : vector<64x512xf32>
      %17 = tpu.matmul %15, %16, %cst {dimension_numbers = #tpu.dot_dimension_numbers<[1], [0], [0], [1], [0, 0, 1, 1], [], []>} : vector<64x384xbf16>, vector<384x512xbf16>, vector<64x512xf32> -> vector<64x512xf32>
      %c0_10 = arith.constant 0 : index
      %c0_11 = arith.constant 0 : index
      %18 = vector.load %arg4[%c0_10, %c0_11] : memref<1x512xf32, #tpu.memory_space<vmem>>, vector<1x512xf32>
      %19 = vector.broadcast %18 : vector<1x512xf32> to vector<64x512xf32>
      %20 = arith.addf %17, %19 : vector<64x512xf32>
      %21 = arith.index_cast %14 : i32 to index
      %c0_12 = arith.constant 0 : index
      %22 = vector.load %arg12[%21, %c0_12] : memref<128x512xf32, #tpu.memory_space<vmem>>, vector<64x512xf32>
      tpu.vector_store %arg12[%21, %c0_12], %20 {strides = array<i32>} : memref<128x512xf32, #tpu.memory_space<vmem>>, vector<64x512xf32>,
    } else {
    }
    %c0_i32_2 = arith.constant 0 : i32
    %6 = arith.cmpi sgt, %arg0, %c0_i32_2 : i32
    %7 = arith.extui %6 : i1 to i32
    %c0_i32_3 = arith.constant 0 : i32
    %8 = arith.cmpi ne, %7, %c0_i32_3 : i32
    scf.if %8 {
      %c1_i32_6 = arith.constant 1 : i32
      %12 = arith.subi %arg0, %c1_i32_6 : i32
      %c1_i32_7 = arith.constant 1 : i32
      %13 = arith.andi %12, %c1_i32_7 : i32
      %c64_i32 = arith.constant 64 : i32
      %14 = arith.muli %13, %c64_i32 : i32
      %c0 = arith.constant 0 : index
      %c0_8 = arith.constant 0 : index
      %15 = vector.load %arg10[%c0, %c0_8] : memref<8x128xf32, #tpu.memory_space<vmem>>, vector<8x128xf32>
      %c0_9 = arith.constant 0 : index
      %c0_10 = arith.constant 0 : index
      %16 = vector.load %arg11[%c0_9, %c0_10] : memref<8x128xf32, #tpu.memory_space<vmem>>, vector<8x128xf32>
      %c0_i32_11 = arith.constant 0 : i32
      %c8_i32 = arith.constant 8 : i32
      %17 = arith.muli %c0_i32_11, %c8_i32 : i32
      %18 = arith.addi %14, %17 : i32
      %19 = tpu.assume_multiple %18, 8 : i32
      %20 = arith.index_cast %19 : i32 to index
      %c0_12 = arith.constant 0 : index
      %21 = vector.load %arg12[%20, %c0_12] : memref<128x512xf32, #tpu.memory_space<vmem>>, vector<8x512xf32>
      %22 = arith.truncf %15 : vector<8x128xf32> to vector<8x128xbf16>
      %c0_13 = arith.constant 0 : index
      %c0_14 = arith.constant 0 : index
      %23 = vector.load %arg3[%c0_13, %c0_14] : memref<128x512xbf16, #tpu.memory_space<vmem>>, vector<128x512xbf16>
      %cst = arith.constant dense<0.000000e+00> : vector<8x512xf32>
      %24 = tpu.matmul %22, %23, %cst {dimension_numbers = #tpu.dot_dimension_numbers<[1], [0], [0], [1], [0, 0, 1, 1], [], []>} : vector<8x128xbf16>, vector<128x512xbf16>, vector<8x512xf32> -> vector<8x512xf32>
      %25 = arith.addf %21, %24 : vector<8x512xf32>
      %26 = vector.extract_strided_slice %25 {offsets = [0, 0], sizes = [8, 128], strides = [1, 1]} : vector<8x512xf32> to vector<8x128xf32>
      %27 = arith.negf %26 : vector<8x128xf32>
      %28 = math.exp %27 : vector<8x128xf32>
      %cst_15 = arith.constant 1.000000e+00 : f32
      %29 = vector.broadcast %cst_15 : f32 to vector<8x128xf32>
      %30 = arith.addf %29, %28 : vector<8x128xf32>
      %31 = arith.divf %29, %30 : vector<8x128xf32>
      %32 = vector.extract_strided_slice %25 {offsets = [0, 128], sizes = [8, 128], strides = [1, 1]} : vector<8x512xf32> to vector<8x128xf32>
      %33 = arith.negf %32 : vector<8x128xf32>
      %34 = math.exp %33 : vector<8x128xf32>
      %cst_16 = arith.constant 1.000000e+00 : f32
      %35 = vector.broadcast %cst_16 : f32 to vector<8x128xf32>
      %36 = arith.addf %35, %34 : vector<8x128xf32>
      %37 = arith.divf %35, %36 : vector<8x128xf32>
      %38 = vector.extract_strided_slice %25 {offsets = [0, 256], sizes = [8, 128], strides = [1, 1]} : vector<8x512xf32> to vector<8x128xf32>
      %39 = math.tanh %38 : vector<8x128xf32>
      %40 = vector.extract_strided_slice %25 {offsets = [0, 384], sizes = [8, 128], strides = [1, 1]} : vector<8x512xf32> to vector<8x128xf32>
      %41 = arith.negf %40 : vector<8x128xf32>
      %42 = math.exp %41 : vector<8x128xf32>
      %cst_17 = arith.constant 1.000000e+00 : f32
      %43 = vector.broadcast %cst_17 : f32 to vector<8x128xf32>
      %44 = arith.addf %43, %42 : vector<8x128xf32>
      %45 = arith.divf %43, %44 : vector<8x128xf32>
      %46 = arith.mulf %37, %16 : vector<8x128xf32>
      %47 = arith.mulf %31, %39 : vector<8x128xf32>
      %48 = arith.addf %46, %47 : vector<8x128xf32>
      %49 = math.tanh %48 : vector<8x128xf32>
      %50 = arith.mulf %45, %49 : vector<8x128xf32>
      %c1_i32_18 = arith.constant 1 : i32
      %c8_i32_19 = arith.constant 8 : i32
      %51 = arith.muli %c1_i32_18, %c8_i32_19 : i32
      %52 = arith.addi %14, %51 : i32
      %53 = tpu.assume_multiple %52, 8 : i32
      %54 = arith.index_cast %53 : i32 to index
      %c0_20 = arith.constant 0 : index
      %55 = vector.load %arg12[%54, %c0_20] : memref<128x512xf32, #tpu.memory_space<vmem>>, vector<8x512xf32>
      %56 = arith.truncf %50 : vector<8x128xf32> to vector<8x128xbf16>
      %c0_21 = arith.constant 0 : index
      %c0_22 = arith.constant 0 : index
      %57 = vector.load %arg3[%c0_21, %c0_22] : memref<128x512xbf16, #tpu.memory_space<vmem>>, vector<128x512xbf16>
      %cst_23 = arith.constant dense<0.000000e+00> : vector<8x512xf32>
      %58 = tpu.matmul %56, %57, %cst_23 {dimension_numbers = #tpu.dot_dimension_numbers<[1], [0], [0], [1], [0, 0, 1, 1], [], []>} : vector<8x128xbf16>, vector<128x512xbf16>, vector<8x512xf32> -> vector<8x512xf32>
      %59 = arith.addf %55, %58 : vector<8x512xf32>
      %60 = vector.extract_strided_slice %59 {offsets = [0, 0], sizes = [8, 128], strides = [1, 1]} : vector<8x512xf32> to vector<8x128xf32>
      %61 = arith.negf %60 : vector<8x128xf32>
      %62 = math.exp %61 : vector<8x128xf32>
      %cst_24 = arith.constant 1.000000e+00 : f32
      %63 = vector.broadcast %cst_24 : f32 to vector<8x128xf32>
      %64 = arith.addf %63, %62 : vector<8x128xf32>
      %65 = arith.divf %63, %64 : vector<8x128xf32>
      %66 = vector.extract_strided_slice %59 {offsets = [0, 128], sizes = [8, 128], strides = [1, 1]} : vector<8x512xf32> to vector<8x128xf32>
      %67 = arith.negf %66 : vector<8x128xf32>
      %68 = math.exp %67 : vector<8x128xf32>
      %cst_25 = arith.constant 1.000000e+00 : f32
      %69 = vector.broadcast %cst_25 : f32 to vector<8x128xf32>
      %70 = arith.addf %69, %68 : vector<8x128xf32>
      %71 = arith.divf %69, %70 : vector<8x128xf32>
      %72 = vector.extract_strided_slice %59 {offsets = [0, 256], sizes = [8, 128], strides = [1, 1]} : vector<8x512xf32> to vector<8x128xf32>
      %73 = math.tanh %72 : vector<8x128xf32>
      %74 = vector.extract_strided_slice %59 {offsets = [0, 384], sizes = [8, 128], strides = [1, 1]} : vector<8x512xf32> to vector<8x128xf32>
      %75 = arith.negf %74 : vector<8x128xf32>
      %76 = math.exp %75 : vector<8x128xf32>
      %cst_26 = arith.constant 1.000000e+00 : f32
      %77 = vector.broadcast %cst_26 : f32 to vector<8x128xf32>
      %78 = arith.addf %77, %76 : vector<8x128xf32>
      %79 = arith.divf %77, %78 : vector<8x128xf32>
      %80 = arith.mulf %71, %48 : vector<8x128xf32>
      %81 = arith.mulf %65, %73 : vector<8x128xf32>
      %82 = arith.addf %80, %81 : vector<8x128xf32>
      %83 = math.tanh %82 : vector<8x128xf32>
      %84 = arith.mulf %79, %83 : vector<8x128xf32>
      %c2_i32 = arith.constant 2 : i32
      %c8_i32_27 = arith.constant 8 : i32
      %85 = arith.muli %c2_i32, %c8_i32_27 : i32
      %86 = arith.addi %14, %85 : i32
      %87 = tpu.assume_multiple %86, 8 : i32
      %88 = arith.index_cast %87 : i32 to index
      %c0_28 = arith.constant 0 : index
      %89 = vector.load %arg12[%88, %c0_28] : memref<128x512xf32, #tpu.memory_space<vmem>>, vector<8x512xf32>
      %90 = arith.truncf %84 : vector<8x128xf32> to vector<8x128xbf16>
      %c0_29 = arith.constant 0 : index
      %c0_30 = arith.constant 0 : index
      %91 = vector.load %arg3[%c0_29, %c0_30] : memref<128x512xbf16, #tpu.memory_space<vmem>>, vector<128x512xbf16>
      %cst_31 = arith.constant dense<0.000000e+00> : vector<8x512xf32>
      %92 = tpu.matmul %90, %91, %cst_31 {dimension_numbers = #tpu.dot_dimension_numbers<[1], [0], [0], [1], [0, 0, 1, 1], [], []>} : vector<8x128xbf16>, vector<128x512xbf16>, vector<8x512xf32> -> vector<8x512xf32>
      %93 = arith.addf %89, %92 : vector<8x512xf32>
      %94 = vector.extract_strided_slice %93 {offsets = [0, 0], sizes = [8, 128], strides = [1, 1]} : vector<8x512xf32> to vector<8x128xf32>
      %95 = arith.negf %94 : vector<8x128xf32>
      %96 = math.exp %95 : vector<8x128xf32>
      %cst_32 = arith.constant 1.000000e+00 : f32
      %97 = vector.broadcast %cst_32 : f32 to vector<8x128xf32>
      %98 = arith.addf %97, %96 : vector<8x128xf32>
      %99 = arith.divf %97, %98 : vector<8x128xf32>
      %100 = vector.extract_strided_slice %93 {offsets = [0, 128], sizes = [8, 128], strides = [1, 1]} : vector<8x512xf32> to vector<8x128xf32>
      %101 = arith.negf %100 : vector<8x128xf32>
      %102 = math.exp %101 : vector<8x128xf32>
      %cst_33 = arith.constant 1.000000e+00 : f32
      %103 = vector.broadcast %cst_33 : f32 to vector<8x128xf32>
      %104 = arith.addf %103, %102 : vector<8x128xf32>
      %105 = arith.divf %103, %104 : vector<8x128xf32>
      %106 = vector.extract_strided_slice %93 {offsets = [0, 256], sizes = [8, 128], strides = [1, 1]} : vector<8x512xf32> to vector<8x128xf32>
      %107 = math.tanh %106 : vector<8x128xf32>
      %108 = vector.extract_strided_slice %93 {offsets = [0, 384], sizes = [8, 128], strides = [1, 1]} : vector<8x512xf32> to vector<8x128xf32>
      %109 = arith.negf %108 : vector<8x128xf32>
      %110 = math.exp %109 : vector<8x128xf32>
      %cst_34 = arith.constant 1.000000e+00 : f32
      %111 = vector.broadcast %cst_34 : f32 to vector<8x128xf32>
      %112 = arith.addf %111, %110 : vector<8x128xf32>
      %113 = arith.divf %111, %112 : vector<8x128xf32>
      %114 = arith.mulf %105, %82 : vector<8x128xf32>
      %115 = arith.mulf %99, %107 : vector<8x128xf32>
      %116 = arith.addf %114, %115 : vector<8x128xf32>
      %117 = math.tanh %116 : vector<8x128xf32>
      %118 = arith.mulf %113, %117 : vector<8x128xf32>
      %c3_i32 = arith.constant 3 : i32
      %c8_i32_35 = arith.constant 8 : i32
      %119 = arith.muli %c3_i32, %c8_i32_35 : i32
      %120 = arith.addi %14, %119 : i32
      %121 = tpu.assume_multiple %120, 8 : i32
      %122 = arith.index_cast %121 : i32 to index
      %c0_36 = arith.constant 0 : index
      %123 = vector.load %arg12[%122, %c0_36] : memref<128x512xf32, #tpu.memory_space<vmem>>, vector<8x512xf32>
      %124 = arith.truncf %118 : vector<8x128xf32> to vector<8x128xbf16>
      %c0_37 = arith.constant 0 : index
      %c0_38 = arith.constant 0 : index
      %125 = vector.load %arg3[%c0_37, %c0_38] : memref<128x512xbf16, #tpu.memory_space<vmem>>, vector<128x512xbf16>
      %cst_39 = arith.constant dense<0.000000e+00> : vector<8x512xf32>
      %126 = tpu.matmul %124, %125, %cst_39 {dimension_numbers = #tpu.dot_dimension_numbers<[1], [0], [0], [1], [0, 0, 1, 1], [], []>} : vector<8x128xbf16>, vector<128x512xbf16>, vector<8x512xf32> -> vector<8x512xf32>
      %127 = arith.addf %123, %126 : vector<8x512xf32>
      %128 = vector.extract_strided_slice %127 {offsets = [0, 0], sizes = [8, 128], strides = [1, 1]} : vector<8x512xf32> to vector<8x128xf32>
      %129 = arith.negf %128 : vector<8x128xf32>
      %130 = math.exp %129 : vector<8x128xf32>
      %cst_40 = arith.constant 1.000000e+00 : f32
      %131 = vector.broadcast %cst_40 : f32 to vector<8x128xf32>
      %132 = arith.addf %131, %130 : vector<8x128xf32>
      %133 = arith.divf %131, %132 : vector<8x128xf32>
      %134 = vector.extract_strided_slice %127 {offsets = [0, 128], sizes = [8, 128], strides = [1, 1]} : vector<8x512xf32> to vector<8x128xf32>
      %135 = arith.negf %134 : vector<8x128xf32>
      %136 = math.exp %135 : vector<8x128xf32>
      %cst_41 = arith.constant 1.000000e+00 : f32
      %137 = vector.broadcast %cst_41 : f32 to vector<8x128xf32>
      %138 = arith.addf %137, %136 : vector<8x128xf32>
      %139 = arith.divf %137, %138 : vector<8x128xf32>
      %140 = vector.extract_strided_slice %127 {offsets = [0, 256], sizes = [8, 128], strides = [1, 1]} : vector<8x512xf32> to vector<8x128xf32>
      %141 = math.tanh %140 : vector<8x128xf32>
      %142 = vector.extract_strided_slice %127 {offsets = [0, 384], sizes = [8, 128], strides = [1, 1]} : vector<8x512xf32> to vector<8x128xf32>
      %143 = arith.negf %142 : vector<8x128xf32>
      %144 = math.exp %143 : vector<8x128xf32>
      %cst_42 = arith.constant 1.000000e+00 : f32
      %145 = vector.broadcast %cst_42 : f32 to vector<8x128xf32>
      %146 = arith.addf %145, %144 : vector<8x128xf32>
      %147 = arith.divf %145, %146 : vector<8x128xf32>
      %148 = arith.mulf %139, %116 : vector<8x128xf32>
      %149 = arith.mulf %133, %141 : vector<8x128xf32>
      %150 = arith.addf %148, %149 : vector<8x128xf32>
      %151 = math.tanh %150 : vector<8x128xf32>
      %152 = arith.mulf %147, %151 : vector<8x128xf32>
      %c4_i32 = arith.constant 4 : i32
      %c8_i32_43 = arith.constant 8 : i32
      %153 = arith.muli %c4_i32, %c8_i32_43 : i32
      %154 = arith.addi %14, %153 : i32
      %155 = tpu.assume_multiple %154, 8 : i32
      %156 = arith.index_cast %155 : i32 to index
      %c0_44 = arith.constant 0 : index
      %157 = vector.load %arg12[%156, %c0_44] : memref<128x512xf32, #tpu.memory_space<vmem>>, vector<8x512xf32>
      %158 = arith.truncf %152 : vector<8x128xf32> to vector<8x128xbf16>
      %c0_45 = arith.constant 0 : index
      %c0_46 = arith.constant 0 : index
      %159 = vector.load %arg3[%c0_45, %c0_46] : memref<128x512xbf16, #tpu.memory_space<vmem>>, vector<128x512xbf16>
      %cst_47 = arith.constant dense<0.000000e+00> : vector<8x512xf32>
      %160 = tpu.matmul %158, %159, %cst_47 {dimension_numbers = #tpu.dot_dimension_numbers<[1], [0], [0], [1], [0, 0, 1, 1], [], []>} : vector<8x128xbf16>, vector<128x512xbf16>, vector<8x512xf32> -> vector<8x512xf32>
      %161 = arith.addf %157, %160 : vector<8x512xf32>
      %162 = vector.extract_strided_slice %161 {offsets = [0, 0], sizes = [8, 128], strides = [1, 1]} : vector<8x512xf32> to vector<8x128xf32>
      %163 = arith.negf %162 : vector<8x128xf32>
      %164 = math.exp %163 : vector<8x128xf32>
      %cst_48 = arith.constant 1.000000e+00 : f32
      %165 = vector.broadcast %cst_48 : f32 to vector<8x128xf32>
      %166 = arith.addf %165, %164 : vector<8x128xf32>
      %167 = arith.divf %165, %166 : vector<8x128xf32>
      %168 = vector.extract_strided_slice %161 {offsets = [0, 128], sizes = [8, 128], strides = [1, 1]} : vector<8x512xf32> to vector<8x128xf32>
      %169 = arith.negf %168 : vector<8x128xf32>
      %170 = math.exp %169 : vector<8x128xf32>
      %cst_49 = arith.constant 1.000000e+00 : f32
      %171 = vector.broadcast %cst_49 : f32 to vector<8x128xf32>
      %172 = arith.addf %171, %170 : vector<8x128xf32>
      %173 = arith.divf %171, %172 : vector<8x128xf32>
      %174 = vector.extract_strided_slice %161 {offsets = [0, 256], sizes = [8, 128], strides = [1, 1]} : vector<8x512xf32> to vector<8x128xf32>
      %175 = math.tanh %174 : vector<8x128xf32>
      %176 = vector.extract_strided_slice %161 {offsets = [0, 384], sizes = [8, 128], strides = [1, 1]} : vector<8x512xf32> to vector<8x128xf32>
      %177 = arith.negf %176 : vector<8x128xf32>
      %178 = math.exp %177 : vector<8x128xf32>
      %cst_50 = arith.constant 1.000000e+00 : f32
      %179 = vector.broadcast %cst_50 : f32 to vector<8x128xf32>
      %180 = arith.addf %179, %178 : vector<8x128xf32>
      %181 = arith.divf %179, %180 : vector<8x128xf32>
      %182 = arith.mulf %173, %150 : vector<8x128xf32>
      %183 = arith.mulf %167, %175 : vector<8x128xf32>
      %184 = arith.addf %182, %183 : vector<8x128xf32>
      %185 = math.tanh %184 : vector<8x128xf32>
      %186 = arith.mulf %181, %185 : vector<8x128xf32>
      %c5_i32 = arith.constant 5 : i32
      %c8_i32_51 = arith.constant 8 : i32
      %187 = arith.muli %c5_i32, %c8_i32_51 : i32
      %188 = arith.addi %14, %187 : i32
      %189 = tpu.assume_multiple %188, 8 : i32
      %190 = arith.index_cast %189 : i32 to index
      %c0_52 = arith.constant 0 : index
      %191 = vector.load %arg12[%190, %c0_52] : memref<128x512xf32, #tpu.memory_space<vmem>>, vector<8x512xf32>
      %192 = arith.truncf %186 : vector<8x128xf32> to vector<8x128xbf16>
      %c0_53 = arith.constant 0 : index
      %c0_54 = arith.constant 0 : index
      %193 = vector.load %arg3[%c0_53, %c0_54] : memref<128x512xbf16, #tpu.memory_space<vmem>>, vector<128x512xbf16>
      %cst_55 = arith.constant dense<0.000000e+00> : vector<8x512xf32>
      %194 = tpu.matmul %192, %193, %cst_55 {dimension_numbers = #tpu.dot_dimension_numbers<[1], [0], [0], [1], [0, 0, 1, 1], [], []>} : vector<8x128xbf16>, vector<128x512xbf16>, vector<8x512xf32> -> vector<8x512xf32>
      %195 = arith.addf %191, %194 : vector<8x512xf32>
      %196 = vector.extract_strided_slice %195 {offsets = [0, 0], sizes = [8, 128], strides = [1, 1]} : vector<8x512xf32> to vector<8x128xf32>
      %197 = arith.negf %196 : vector<8x128xf32>
      %198 = math.exp %197 : vector<8x128xf32>
      %cst_56 = arith.constant 1.000000e+00 : f32
      %199 = vector.broadcast %cst_56 : f32 to vector<8x128xf32>
      %200 = arith.addf %199, %198 : vector<8x128xf32>
      %201 = arith.divf %199, %200 : vector<8x128xf32>
      %202 = vector.extract_strided_slice %195 {offsets = [0, 128], sizes = [8, 128], strides = [1, 1]} : vector<8x512xf32> to vector<8x128xf32>
      %203 = arith.negf %202 : vector<8x128xf32>
      %204 = math.exp %203 : vector<8x128xf32>
      %cst_57 = arith.constant 1.000000e+00 : f32
      %205 = vector.broadcast %cst_57 : f32 to vector<8x128xf32>
      %206 = arith.addf %205, %204 : vector<8x128xf32>
      %207 = arith.divf %205, %206 : vector<8x128xf32>
      %208 = vector.extract_strided_slice %195 {offsets = [0, 256], sizes = [8, 128], strides = [1, 1]} : vector<8x512xf32> to vector<8x128xf32>
      %209 = math.tanh %208 : vector<8x128xf32>
      %210 = vector.extract_strided_slice %195 {offsets = [0, 384], sizes = [8, 128], strides = [1, 1]} : vector<8x512xf32> to vector<8x128xf32>
      %211 = arith.negf %210 : vector<8x128xf32>
      %212 = math.exp %211 : vector<8x128xf32>
      %cst_58 = arith.constant 1.000000e+00 : f32
      %213 = vector.broadcast %cst_58 : f32 to vector<8x128xf32>
      %214 = arith.addf %213, %212 : vector<8x128xf32>
      %215 = arith.divf %213, %214 : vector<8x128xf32>
      %216 = arith.mulf %207, %184 : vector<8x128xf32>
      %217 = arith.mulf %201, %209 : vector<8x128xf32>
      %218 = arith.addf %216, %217 : vector<8x128xf32>
      %219 = math.tanh %218 : vector<8x128xf32>
      %220 = arith.mulf %215, %219 : vector<8x128xf32>
      %c6_i32 = arith.constant 6 : i32
      %c8_i32_59 = arith.constant 8 : i32
      %221 = arith.muli %c6_i32, %c8_i32_59 : i32
      %222 = arith.addi %14, %221 : i32
      %223 = tpu.assume_multiple %222, 8 : i32
      %224 = arith.index_cast %223 : i32 to index
      %c0_60 = arith.constant 0 : index
      %225 = vector.load %arg12[%224, %c0_60] : memref<128x512xf32, #tpu.memory_space<vmem>>, vector<8x512xf32>
      %226 = arith.truncf %220 : vector<8x128xf32> to vector<8x128xbf16>
      %c0_61 = arith.constant 0 : index
      %c0_62 = arith.constant 0 : index
      %227 = vector.load %arg3[%c0_61, %c0_62] : memref<128x512xbf16, #tpu.memory_space<vmem>>, vector<128x512xbf16>
      %cst_63 = arith.constant dense<0.000000e+00> : vector<8x512xf32>
      %228 = tpu.matmul %226, %227, %cst_63 {dimension_numbers = #tpu.dot_dimension_numbers<[1], [0], [0], [1], [0, 0, 1, 1], [], []>} : vector<8x128xbf16>, vector<128x512xbf16>, vector<8x512xf32> -> vector<8x512xf32>
      %229 = arith.addf %225, %228 : vector<8x512xf32>
      %230 = vector.extract_strided_slice %229 {offsets = [0, 0], sizes = [8, 128], strides = [1, 1]} : vector<8x512xf32> to vector<8x128xf32>
      %231 = arith.negf %230 : vector<8x128xf32>
      %232 = math.exp %231 : vector<8x128xf32>
      %cst_64 = arith.constant 1.000000e+00 : f32
      %233 = vector.broadcast %cst_64 : f32 to vector<8x128xf32>
      %234 = arith.addf %233, %232 : vector<8x128xf32>
      %235 = arith.divf %233, %234 : vector<8x128xf32>
      %236 = vector.extract_strided_slice %229 {offsets = [0, 128], sizes = [8, 128], strides = [1, 1]} : vector<8x512xf32> to vector<8x128xf32>
      %237 = arith.negf %236 : vector<8x128xf32>
      %238 = math.exp %237 : vector<8x128xf32>
      %cst_65 = arith.constant 1.000000e+00 : f32
      %239 = vector.broadcast %cst_65 : f32 to vector<8x128xf32>
      %240 = arith.addf %239, %238 : vector<8x128xf32>
      %241 = arith.divf %239, %240 : vector<8x128xf32>
      %242 = vector.extract_strided_slice %229 {offsets = [0, 256], sizes = [8, 128], strides = [1, 1]} : vector<8x512xf32> to vector<8x128xf32>
      %243 = math.tanh %242 : vector<8x128xf32>
      %244 = vector.extract_strided_slice %229 {offsets = [0, 384], sizes = [8, 128], strides = [1, 1]} : vector<8x512xf32> to vector<8x128xf32>
      %245 = arith.negf %244 : vector<8x128xf32>
      %246 = math.exp %245 : vector<8x128xf32>
      %cst_66 = arith.constant 1.000000e+00 : f32
      %247 = vector.broadcast %cst_66 : f32 to vector<8x128xf32>
      %248 = arith.addf %247, %246 : vector<8x128xf32>
      %249 = arith.divf %247, %248 : vector<8x128xf32>
      %250 = arith.mulf %241, %218 : vector<8x128xf32>
      %251 = arith.mulf %235, %243 : vector<8x128xf32>
      %252 = arith.addf %250, %251 : vector<8x128xf32>
      %253 = math.tanh %252 : vector<8x128xf32>
      %254 = arith.mulf %249, %253 : vector<8x128xf32>
      %c7_i32 = arith.constant 7 : i32
      %c8_i32_67 = arith.constant 8 : i32
      %255 = arith.muli %c7_i32, %c8_i32_67 : i32
      %256 = arith.addi %14, %255 : i32
      %257 = tpu.assume_multiple %256, 8 : i32
      %258 = arith.index_cast %257 : i32 to index
      %c0_68 = arith.constant 0 : index
      %259 = vector.load %arg12[%258, %c0_68] : memref<128x512xf32, #tpu.memory_space<vmem>>, vector<8x512xf32>
      %260 = arith.truncf %254 : vector<8x128xf32> to vector<8x128xbf16>
      %c0_69 = arith.constant 0 : index
      %c0_70 = arith.constant 0 : index
      %261 = vector.load %arg3[%c0_69, %c0_70] : memref<128x512xbf16, #tpu.memory_space<vmem>>, vector<128x512xbf16>
      %cst_71 = arith.constant dense<0.000000e+00> : vector<8x512xf32>
      %262 = tpu.matmul %260, %261, %cst_71 {dimension_numbers = #tpu.dot_dimension_numbers<[1], [0], [0], [1], [0, 0, 1, 1], [], []>} : vector<8x128xbf16>, vector<128x512xbf16>, vector<8x512xf32> -> vector<8x512xf32>
      %263 = arith.addf %259, %262 : vector<8x512xf32>
      %264 = vector.extract_strided_slice %263 {offsets = [0, 0], sizes = [8, 128], strides = [1, 1]} : vector<8x512xf32> to vector<8x128xf32>
      %265 = arith.negf %264 : vector<8x128xf32>
      %266 = math.exp %265 : vector<8x128xf32>
      %cst_72 = arith.constant 1.000000e+00 : f32
      %267 = vector.broadcast %cst_72 : f32 to vector<8x128xf32>
      %268 = arith.addf %267, %266 : vector<8x128xf32>
      %269 = arith.divf %267, %268 : vector<8x128xf32>
      %270 = vector.extract_strided_slice %263 {offsets = [0, 128], sizes = [8, 128], strides = [1, 1]} : vector<8x512xf32> to vector<8x128xf32>
      %271 = arith.negf %270 : vector<8x128xf32>
      %272 = math.exp %271 : vector<8x128xf32>
      %cst_73 = arith.constant 1.000000e+00 : f32
      %273 = vector.broadcast %cst_73 : f32 to vector<8x128xf32>
      %274 = arith.addf %273, %272 : vector<8x128xf32>
      %275 = arith.divf %273, %274 : vector<8x128xf32>
      %276 = vector.extract_strided_slice %263 {offsets = [0, 256], sizes = [8, 128], strides = [1, 1]} : vector<8x512xf32> to vector<8x128xf32>
      %277 = math.tanh %276 : vector<8x128xf32>
      %278 = vector.extract_strided_slice %263 {offsets = [0, 384], sizes = [8, 128], strides = [1, 1]} : vector<8x512xf32> to vector<8x128xf32>
      %279 = arith.negf %278 : vector<8x128xf32>
      %280 = math.exp %279 : vector<8x128xf32>
      %cst_74 = arith.constant 1.000000e+00 : f32
      %281 = vector.broadcast %cst_74 : f32 to vector<8x128xf32>
      %282 = arith.addf %281, %280 : vector<8x128xf32>
      %283 = arith.divf %281, %282 : vector<8x128xf32>
      %284 = arith.mulf %275, %252 : vector<8x128xf32>
      %285 = arith.mulf %269, %277 : vector<8x128xf32>
      %286 = arith.addf %284, %285 : vector<8x128xf32>
      %287 = math.tanh %286 : vector<8x128xf32>
      %288 = arith.mulf %283, %287 : vector<8x128xf32>
      %c8_i32_75 = arith.constant 8 : i32
      %c0_76 = arith.constant 0 : index
      %c0_77 = arith.constant 0 : index
      %289 = vector.load %arg10[%c0_76, %c0_77] : memref<8x128xf32, #tpu.memory_space<vmem>>, vector<8x128xf32>
      tpu.vector_store %arg10[%c0_76, %c0_77], %288 {strides = array<i32>} : memref<8x128xf32, #tpu.memory_space<vmem>>, vector<8x128xf32>,
      %c0_78 = arith.constant 0 : index
      %c0_79 = arith.constant 0 : index
      %290 = vector.load %arg11[%c0_78, %c0_79] : memref<8x128xf32, #tpu.memory_space<vmem>>, vector<8x128xf32>
      tpu.vector_store %arg11[%c0_78, %c0_79], %286 {strides = array<i32>} : memref<8x128xf32, #tpu.memory_space<vmem>>, vector<8x128xf32>,
    } else {
    }
    %c1_i32_4 = arith.constant 1 : i32
    %9 = arith.cmpi eq, %arg0, %c1_i32_4 : i32
    %10 = arith.extui %9 : i1 to i32
    %c0_i32_5 = arith.constant 0 : i32
    %11 = arith.cmpi ne, %10, %c0_i32_5 : i32
    scf.if %11 {
      %c56 = arith.constant 56 : index
      %c0 = arith.constant 0 : index
      %12 = vector.load %arg1[%c56, %c0] : memref<64x384xbf16, #tpu.memory_space<vmem>>, vector<8x384xbf16>
      %c0_6 = arith.constant 0 : index
      %c0_7 = arith.constant 0 : index
      %13 = vector.load %arg5[%c0_6, %c0_7] : memref<384x512xbf16, #tpu.memory_space<vmem>>, vector<384x512xbf16>
      %cst = arith.constant dense<0.000000e+00> : vector<8x512xf32>
      %14 = tpu.matmul %12, %13, %cst {dimension_numbers = #tpu.dot_dimension_numbers<[1], [0], [0], [1], [0, 0, 1, 1], [], []>} : vector<8x384xbf16>, vector<384x512xbf16>, vector<8x512xf32> -> vector<8x512xf32>
      %c0_8 = arith.constant 0 : index
      %c0_9 = arith.constant 0 : index
      %15 = vector.load %arg6[%c0_8, %c0_9] : memref<1x512xf32, #tpu.memory_space<vmem>>, vector<1x512xf32>
      %16 = vector.broadcast %15 : vector<1x512xf32> to vector<8x512xf32>
      %17 = arith.addf %14, %16 : vector<8x512xf32>
      %18 = vector.extract_strided_slice %17 {offsets = [0, 0], sizes = [8, 128], strides = [1, 1]} : vector<8x512xf32> to vector<8x128xf32>
      %19 = arith.negf %18 : vector<8x128xf32>
      %20 = math.exp %19 : vector<8x128xf32>
      %cst_10 = arith.constant 1.000000e+00 : f32
      %21 = vector.broadcast %cst_10 : f32 to vector<8x128xf32>
      %22 = arith.addf %21, %20 : vector<8x128xf32>
      %23 = arith.divf %21, %22 : vector<8x128xf32>
      %24 = vector.extract_strided_slice %17 {offsets = [0, 256], sizes = [8, 128], strides = [1, 1]} : vector<8x512xf32> to vector<8x128xf32>
      %25 = math.tanh %24 : vector<8x128xf32>
      %26 = vector.extract_strided_slice %17 {offsets = [0, 384], sizes = [8, 128], strides = [1, 1]} : vector<8x512xf32> to vector<8x128xf32>
      %27 = arith.negf %26 : vector<8x128xf32>
      %28 = math.exp %27 : vector<8x128xf32>
      %cst_11 = arith.constant 1.000000e+00 : f32
      %29 = vector.broadcast %cst_11 : f32 to vector<8x128xf32>
      %30 = arith.addf %29, %28 : vector<8x128xf32>
      %31 = arith.divf %29, %30 : vector<8x128xf32>
      %32 = arith.mulf %23, %25 : vector<8x128xf32>
      %33 = math.tanh %32 : vector<8x128xf32>
      %34 = arith.mulf %31, %33 : vector<8x128xf32>
      %c0_12 = arith.constant 0 : index
      %c0_13 = arith.constant 0 : index
      %35 = vector.load %arg10[%c0_12, %c0_13] : memref<8x128xf32, #tpu.memory_space<vmem>>, vector<8x128xf32>
      %36 = tpu.concatenate %35, %34 in 1 : vector<8x128xf32>, vector<8x128xf32> -> vector<8x256xf32>
      %37 = arith.truncf %36 : vector<8x256xf32> to vector<8x256xbf16>
      %c0_14 = arith.constant 0 : index
      %c0_15 = arith.constant 0 : index
      %38 = vector.load %arg7[%c0_14, %c0_15] : memref<256x128xbf16, #tpu.memory_space<vmem>>, vector<256x128xbf16>
      %cst_16 = arith.constant dense<0.000000e+00> : vector<8x128xf32>
      %39 = tpu.matmul %37, %38, %cst_16 {dimension_numbers = #tpu.dot_dimension_numbers<[1], [0], [0], [1], [0, 0, 1, 1], [], []>} : vector<8x256xbf16>, vector<256x128xbf16>, vector<8x128xf32> -> vector<8x128xf32>
      %c0_17 = arith.constant 0 : index
      %c0_18 = arith.constant 0 : index
      %40 = vector.load %arg8[%c0_17, %c0_18] : memref<1x128xf32, #tpu.memory_space<vmem>>, vector<1x128xf32>
      %41 = vector.broadcast %40 : vector<1x128xf32> to vector<8x128xf32>
      %42 = arith.addf %39, %41 : vector<8x128xf32>
      %c0_19 = arith.constant 0 : index
      %c0_20 = arith.constant 0 : index
      %43 = vector.load %arg9[%c0_19, %c0_20] : memref<8x128xf32, #tpu.memory_space<vmem>>, vector<8x128xf32>
      tpu.vector_store %arg9[%c0_19, %c0_20], %42 {strides = array<i32>} : memref<8x128xf32, #tpu.memory_space<vmem>>, vector<8x128xf32>,
    } else {
    }
    return
  }
  func.func @transform_0(%arg0: i32) -> (i32, i32) {
    %c0_i32 = arith.constant 0 : i32
    %0 = arith.minsi %arg0, %c0_i32 : i32
    %c0_i32_0 = arith.constant 0 : i32
    %c0_i32_1 = arith.constant 0 : i32
    return %0, %c0_i32_0 : i32, i32
  }
  func.func @transform_1(%arg0: i32) -> (i32, i32) {
    %c0_i32 = arith.constant 0 : i32
    %c0_i32_0 = arith.constant 0 : i32
    %c0_i32_1 = arith.constant 0 : i32
    return %c0_i32, %c0_i32_0 : i32, i32
  }
  func.func @transform_2(%arg0: i32) -> (i32, i32) {
    %c0_i32 = arith.constant 0 : i32
    %c0_i32_0 = arith.constant 0 : i32
    %c0_i32_1 = arith.constant 0 : i32
    return %c0_i32, %c0_i32_0 : i32, i32
  }
  func.func @transform_3(%arg0: i32) -> (i32, i32) {
    %c0_i32 = arith.constant 0 : i32
    %c0_i32_0 = arith.constant 0 : i32
    %c0_i32_1 = arith.constant 0 : i32
    return %c0_i32, %c0_i32_0 : i32, i32
  }
  func.func @transform_4(%arg0: i32) -> (i32, i32) {
    %c0_i32 = arith.constant 0 : i32
    %c0_i32_0 = arith.constant 0 : i32
    %c0_i32_1 = arith.constant 0 : i32
    return %c0_i32, %c0_i32_0 : i32, i32
  }
  func.func @transform_5(%arg0: i32) -> (i32, i32) {
    %c0_i32 = arith.constant 0 : i32
    %c0_i32_0 = arith.constant 0 : i32
    %c0_i32_1 = arith.constant 0 : i32
    return %c0_i32, %c0_i32_0 : i32, i32
  }
  func.func @transform_6(%arg0: i32) -> (i32, i32) {
    %c0_i32 = arith.constant 0 : i32
    %c0_i32_0 = arith.constant 0 : i32
    %c0_i32_1 = arith.constant 0 : i32
    return %c0_i32, %c0_i32_0 : i32, i32
  }
  func.func @transform_7(%arg0: i32) -> (i32, i32) {
    %c0_i32 = arith.constant 0 : i32
    %c0_i32_0 = arith.constant 0 : i32
    %c0_i32_1 = arith.constant 0 : i32
    return %c0_i32, %c0_i32_0 : i32, i32
  }
  func.func @transform_8(%arg0: i32) -> (i32, i32) {
    %c0_i32 = arith.constant 0 : i32
    %c0_i32_0 = arith.constant 0 : i32
    %c0_i32_1 = arith.constant 0 : i32
    return %c0_i32, %c0_i32_0 : i32, i32
  }
}

</mosaic_0001>

<bundles_post_ra>
// kernel: tpu_custom_call.1
= control target key start
LH: loop header
LB: loop body
LE: loop exit
PB: predicated region body
PF: predicated region fallthrough
CT: control target
= control target key end

     0   :  { %13 = vsyncpa [#allocation6], 0  ;;  %s5712_s0 = inlined_call_operand.hbm [shape: bf16[64,384], index: 0, kind: input, shape index: {}]   ;;  %s5713_s1 = inlined_call_operand.hbm [shape: bf16[384,512], index: 1, kind: input, shape index: {}]   ;;  %s5714_s2 = inlined_call_operand.hbm [shape: bf16[128,512], index: 2, kind: input, shape index: {}]   ;;  %s5715_s3 = inlined_call_operand.vmem [shape: f32[1,512], index: 3, kind: input, shape index: {}]   ;;  %s5716_s4 = inlined_call_operand.hbm [shape: bf16[384,512], index: 4, kind: input, shape index: {}]   ;;  %s5717_s5 = inlined_call_operand.vmem [shape: f32[1,512], index: 5, kind: input, shape index: {}]   ;;  %s5718_s6 = inlined_call_operand.hbm [shape: bf16[256,128], index: 6, kind: input, shape index: {}]   ;;  %s5719_s7 = inlined_call_operand.vmem [shape: f32[1,128], index: 7, kind: input, shape index: {}]   ;;  %s5720_s8 = inlined_call_operand.hbm [shape: f32[8,128], index: 8, kind: output, shape index: {}]  }
   0x1   :  { %15 = vsyncpa [#allocation6 + $0x1], 0 }
   0x2   :  { %16 = vsyncpa [#allocation9], 0 }
   0x3   :  { %17 = vsyncpa [#allocation12], 0 }
   0x4   :  { %18 = vsyncpa [#allocation7], 0  ;;  %s5002_s27 = smov 0   ;;  %s5004_s28 = smov 0  }
   0x5   :  { %s5006_s29 = smov 0   ;;  %s5008_s30 = smov 0  }
   0x6 LB: > { %s5021_s9 = sadd.s32 4294967295, %s4939_s30   ;;  %p48_p0 = scmp.ne.s32.totalorder %s4931_s28, %s4927_s27  ;;  %s4939_s30 = sphi %s5008_s30, %s5739_s30   ;;  %s4935_s29 = sphi %s5006_s29, %s5738_s29   ;;  %s4931_s28 = sphi %s5004_s28, %s5737_s28   ;;  %s4927_s27 = sphi %s5002_s27, %s5736_s27  }
   0x7   : > { %p5721_p1 = scmp.eq.s32.totalorder %s5021_s9, 0  ;;  %p3651_p2 = scmp.ge.s32.totalorder %s4939_s30, 1 }
   0x8   : > { %p227_p3 = scmp.lt.s32.totalorder %s4939_s30, 3  ;;  %s4941_s12 = smov [#allocation8]  }
   0x9   : > { %p5030_p5 = por %p5721_p1, %p48_p0  ;;  %s239_s13 = sshll.u32 %s4941_s12, 4  ;;  %s5038_s13 = int_to_ptr.vmem [resolvable:$true] %s239_s13 }
   0xa   : > { %p5034_p6 = pnand %p3651_p2, %p227_p3  ;;  %s4942_s15 = smov [#allocation11]  }
   0xb   : > { %s5724_s10 = scalar_select %p5030_p5, 1, 0 }
   0xc   : > { %s5725_s11 = scalar_select %p5034_p6, 1, 0 }
   0xd   : > { %p4107_p7 = pneg %p5034_p6  ;;  %s268_s16 = sshll.u32 %s4942_s15, 4  ;;  %s5048_s16 = int_to_ptr.vmem [resolvable:$true] %s268_s16 }
   0xe   : > { %s4943_s17 = smov [#allocation10]   ;;  %s4725_s21 = scalar_lea.hbm %s5713_s1, 12288 }
   0xf   : > { %p5044_p8 = pnand %p4107_p7, %p5721_p1  ;;  %s5050_s18 = sshll.u32 %s4943_s17, 4  ;;  %s253_s18 = int_to_ptr.vmem [resolvable:$true] %s5050_s18 }
  0x10   : > { %p4726_p9 = scmp.ne.s32.totalorder %s5713_s1, %s4725_s21  ;;  %p4732_p13 = scmp.lt.u32.totalorder %s4725_s21, %s5713_s1 }
  0x11   : > { %p5060_p10 = pneg %p5044_p8 }
  0x13   : > { %p4728_p11 = pnand %p5060_p10, %p4726_p9 }
  0x15   : > { %p4729_p12 = pneg %p4728_p11 }
  0x17   : > { %p4734_p0 = pnand %p4732_p13, %p4729_p12 }
  0x19   : > { %4737 = shalt.err (!%p4734_p0)
}
  0x1a   : > { %s4738_s27 = scalar_lea.vmem %s5038_s13, 12288  ;;  %p4746_p4 = scmp.lt.s32.totalorder %s5038_s13, %s5038_s13 }
  0x1b   : > { %p4739_p2 = scmp.ne.s32.totalorder %s5038_s13, %s4738_s27  ;;  %p4747_p1 = scmp.lt.s32.totalorder %s4738_s27, %s4738_s27 }
  0x1d   : > { %p4741_p3 = pnand %p4739_p2, %p5060_p10  ;;  %p4748_p9 = por %p4747_p1, %p4746_p4 }
  0x1f   : > { %p4742_p7 = pneg %p4741_p3 }
  0x21   : > { %p4749_p11 = pnand %p4748_p9, %p4742_p7 }
  0x23   : > { %4752 = shalt.err (!%p4749_p11)
}
  0x24   : > { %s4944_s12 = smov 256   ;;  %s4945_s15 = smov 16  }
  0x25   : > { %4110 = dma.hbm_to_vmem [thread:$0]  (!%p5044_p8), %s5713_s1, 12288, %s5038_s13, [#allocation9], %s4944_s12, %s4944_s12, %s4945_s15  }
  0x26   : > { %s4753_s22 = scalar_lea.hbm %s5716_s4, 12288 }
  0x27   : > { %p4754_p1 = scmp.ne.s32.totalorder %s5716_s4, %s4753_s22  ;;  %p4760_p13 = scmp.lt.u32.totalorder %s4753_s22, %s5716_s4 }
  0x29   : > { %p4756_p4 = pnand %p4754_p1, %p5060_p10 }
  0x2b   : > { %p4757_p12 = pneg %p4756_p4 }
  0x2d   : > { %p4762_p0 = pnand %p4760_p13, %p4757_p12 }
  0x2f   : > { %4765 = shalt.err (!%p4762_p0)
}
  0x30   : > { %s4766_s13 = scalar_lea.vmem %s5048_s16, 12288  ;;  %p4774_p9 = scmp.lt.s32.totalorder %s5048_s16, %s5048_s16 }
  0x31   : > { %p4767_p2 = scmp.ne.s32.totalorder %s5048_s16, %s4766_s13  ;;  %p4775_p11 = scmp.lt.s32.totalorder %s4766_s13, %s4766_s13 }
  0x33   : > { %p4769_p3 = pnand %p4767_p2, %p5060_p10  ;;  %p4776_p1 = por %p4775_p11, %p4774_p9 }
  0x35   : > { %p4770_p7 = pneg %p4769_p3 }
  0x37   : > { %p4777_p4 = pnand %p4776_p1, %p4770_p7 }
  0x39   : > { %4780 = shalt.err (!%p4777_p4)
}
  0x3a   : > { %4116 = dma.hbm_to_vmem [thread:$0]  (!%p5044_p8), %s5716_s4, 12288, %s5048_s16, [#allocation12], %s4944_s12, %s4944_s12, %s4945_s15  }
  0x3b   : > { %s4781_s22 = scalar_lea.hbm %s5714_s2, 4096 }
  0x3c   : > { %p4782_p12 = scmp.ne.s32.totalorder %s5714_s2, %s4781_s22  ;;  %p4788_p2 = scmp.lt.u32.totalorder %s4781_s22, %s5714_s2 }
  0x3e   : > { %p4784_p13 = pnand %p4782_p12, %p5060_p10 }
  0x40   : > { %p4785_p0 = pneg %p4784_p13 }
  0x42   : > { %p4790_p3 = pnand %p4788_p2, %p4785_p0 }
  0x44   : > { %4793 = shalt.err (!%p4790_p3)
}
  0x45   : > { %s4794_s13 = scalar_lea.vmem %s253_s18, 4096  ;;  %p4802_p1 = scmp.lt.s32.totalorder %s253_s18, %s253_s18 }
  0x46   : > { %p4795_p7 = scmp.ne.s32.totalorder %s253_s18, %s4794_s13  ;;  %p4803_p4 = scmp.lt.s32.totalorder %s4794_s13, %s4794_s13 }
  0x48   : > { %p4797_p9 = pnand %p4795_p7, %p5060_p10  ;;  %p4804_p5 = por %p4803_p4, %p4802_p1 }
  0x4a   : > { %p4798_p11 = pneg %p4797_p9 }
  0x4c   : > { %p4805_p6 = pnand %p4804_p5, %p4798_p11 }
  0x4e   : > { %4808 = shalt.err (!%p4805_p6)
}
  0x4f   : > { %4113 = dma.hbm_to_vmem [thread:$0]  (!%p5044_p8), %s5714_s2, 4096, %s253_s18, [#allocation9], %s4944_s12, %s4944_s12, %s4945_s15  }
  0x50   : > { %s4946_s19 = smov [#allocation13]   ;;  %s4809_s23 = scalar_lea.hbm %s5718_s6, 2048 }
  0x51   : > { %s284_s20 = sshll.u32 %s4946_s19, 4  ;;  %p4810_p5 = scmp.ne.s32.totalorder %s5718_s6, %s4809_s23  ;;  %s285_s20 = int_to_ptr.vmem [resolvable:$true] %s284_s20 }
  0x52   : > { %p4816_p13 = scmp.lt.u32.totalorder %s4809_s23, %s5718_s6 }
  0x53   : > { %p4812_p6 = pnand %p4810_p5, %p5060_p10 }
  0x55   : > { %p4813_p12 = pneg %p4812_p6 }
  0x57   : > { %p4818_p0 = pnand %p4816_p13, %p4813_p12 }
  0x59   : > { %4821 = shalt.err (!%p4818_p0)
}
  0x5a   : > { %s4822_s18 = scalar_lea.vmem %s285_s20, 2048  ;;  %p4830_p9 = scmp.lt.s32.totalorder %s285_s20, %s285_s20 }
  0x5b   : > { %p4823_p2 = scmp.ne.s32.totalorder %s285_s20, %s4822_s18  ;;  %p4831_p11 = scmp.lt.s32.totalorder %s4822_s18, %s4822_s18 }
  0x5d   : > { %p4825_p3 = pnand %p4823_p2, %p5060_p10  ;;  %p4832_p1 = por %p4831_p11, %p4830_p9 }
  0x5f   : > { %p4826_p7 = pneg %p4825_p3 }
  0x61   : > { %p4833_p4 = pnand %p4832_p1, %p4826_p7 }
  0x63   : > { %4836 = shalt.err (!%p4833_p4)
}
  0x64   : > { %s4947_s12 = smov 64   ;;  %s4948_s15 = smov 4  }
  0x65   : > { %4119 = dma.hbm_to_vmem [thread:$0]  (!%p5044_p8), %s5718_s6, 2048, %s285_s20, [#allocation12], %s4947_s12, %s4947_s12, %s4948_s15  }
  0x66   : > { %s5151_s17 = sadd.s32 1, %s4939_s30   ;;  %p28_p10 = scmp.lt.s32.totalorder %s4939_s30, 0 }
  0x67   : > { %p30_p5 = scmp.lt.s32.totalorder %s5151_s17, 0  ;;  %s35_s19 = sadd.s32 1, %s4935_s29 }
  0x68   : > { %s29_s21 = scalar_select %p28_p10, %s4939_s30, 0 }
  0x69   : > { %s31_s22 = scalar_select %p30_p5, %s5151_s17, 0 }
  0x6a   : > { %p42_p6 = scmp.ne.s32.totalorder %s4935_s29, %s4931_s28  ;;  %p43_p12 = scmp.eq.s32.totalorder %s4939_s30, 0 }
  0x6b   : > { %s32_s23 = ssub.s32 %s29_s21, %s31_s22  ;;  %p4128_p13 = scmp.lt.s32.totalorder %s4939_s30, 2 }
  0x6c   : > { %p33_p0 = scmp.eq.s32.totalorder %s32_s23, 0  ;;  %p44_p2 = por %p43_p12, %p42_p6 }
  0x6d   : > { %s301_s14 = sand.u32 1, %s4935_s29   ;;  %s4083_s25 = smul.u32 1536, %s29_s21 }
  0x6e   : > { %s5164_s26 = scalar_select %p33_p0, %s4935_s29, %s35_s19  }
  0x6f   : > { %s4082_s20 = smul.u32 96, %s301_s14  ;;  %s5169_s18 = scalar_lea.hbm %s5712_s0, %s4083_s25 }
  0x70   : > { %p5171_p8 = pnand %p4128_p13, %p44_p2  ;;  %s5177_s24 = scalar_lea.sflag [#allocation6], %s301_s14 }
  0x71   : > { %s305_s30 = scalar_lea.vmem [#allocation5], %s4082_s20  ;;  %s4837_s16 = scalar_lea.hbm %s5169_s18, 1536 }
  0x72   : > { %s315_s15 = sshll.u32 %s305_s30, 4  ;;  %p4838_p3 = scmp.ne.s32.totalorder %s5169_s18, %s4837_s16  ;;  %s5175_s15 = int_to_ptr.vmem [resolvable:$true] %s315_s15 }
  0x73   : > { %p4839_p7 = pneg %p5171_p8  ;;  %s4842_s22 = scalar_lea.hbm %s5712_s0, 1536 }
  0x74   : > { %p4843_p1 = scmp.lt.u32.totalorder %s5169_s18, %s5712_s0  ;;  %p4844_p4 = scmp.lt.u32.totalorder %s4842_s22, %s4837_s16 }
  0x75   : > { %p4840_p9 = pnand %p4839_p7, %p4838_p3  ;;  %p4846_p5 = scmp.lt.u32.totalorder %s4837_s16, %s5169_s18 }
  0x76   : > { %p4845_p10 = por %p4844_p4, %p4843_p1 }
  0x77   : > { %p4841_p11 = pneg %p4840_p9 }
  0x78   : > { %p4847_p6 = por %p4846_p5, %p4845_p10 }
  0x7a   : > { %p4848_p12 = pnand %p4847_p6, %p4841_p11 }
  0x7c   : > { %4851 = shalt.err (!%p4848_p12)
}
  0x7d   : > { %s4852_s14 = scalar_lea.vmem %s5175_s15, 1536  ;;  %s4949_s20 = smov [#allocation5]  }
  0x7e   : > { %p4853_p13 = scmp.ne.s32.totalorder %s5175_s15, %s4852_s14  ;;  %s4857_s27 = sshll.u32 %s4949_s20, 4  ;;  %s4858_s27 = int_to_ptr.vmem [resolvable:$false] %s4857_s27 }
  0x7f   : > { %s4859_s13 = scalar_lea.vmem %s4858_s27, 3072  ;;  %p4860_p3 = scmp.lt.s32.totalorder %s5175_s15, %s4858_s27 }
  0x80   : > { %p4855_p0 = pnand %p4853_p13, %p4839_p7  ;;  %p4861_p9 = scmp.lt.s32.totalorder %s4859_s13, %s4852_s14 }
  0x82   : > { %p4856_p2 = pneg %p4855_p0  ;;  %p4862_p1 = por %p4861_p9, %p4860_p3 }
  0x84   : > { %p4863_p4 = pnand %p4862_p1, %p4856_p2 }
  0x86   : > { %4866 = shalt.err (!%p4863_p4)
}
  0x87   : > { %s4950_s30 = smov 192   ;;  %s4951_s16 = smov 12  }
  0x88   : > { %4123 = dma.hbm_to_vmem [thread:$0]  (!%p5171_p8), %s5169_s18, 1536, %s5175_s15, %s5177_s24, %s4950_s30, %s4950_s30, %s4951_s16  }
  0x89   : > { %p5729_p7 = scmp.ne.s32.totalorder %s5725_s11, 0 }
  0x8a   : > { %s329_s19 = sand.u32 (!%p5729_p7), 1, %s4931_s28   ;;  %p5730_p11 = scmp.ne.s32.totalorder (!%p5729_p7), %s5724_s10, 0 }
  0x8b   : > { %327 = sbr.rel (%p5729_p7) target bundleno = 3216 (0xc90), region = 52  ;;  %s330_s22 = scalar_lea.sflag (!%p5729_p7), [#allocation6], %s329_s19 }
  0x8c   : > { %s4084_s21 = smul.u32 (!%p5729_p7), 96, %s329_s19 }
  0x8e   : > { %s5208_s23 = scalar_lea.vmem (!%p5729_p7), [#allocation5], %s4084_s21 }
  0x92   : > { %4910 = dma.done.wait (%p5730_p11), %s330_s22, 1536  }
  0x93   : > { %4912 = vsyncadd (%p5730_p11), %s330_s22, 4294965760  ;;  %p5731_p10 = scmp.eq.s32.totalorder %s5021_s9, 0 }
  0x95   : > { %4914 = dma.done.wait (%p5731_p10), [#allocation9], 16384   ;;  %p5732_p8 = pmov %p5731_p10 }
  0x97   : > { %4916 = vsyncadd (%p5732_p8), [#allocation9], 4294950912  ;;  %p5733_p5 = pmov %p5732_p8 }
  0x99   : > { %4918 = dma.done.wait (%p5733_p5), [#allocation12], 14336   ;;  %p5734_p6 = pmov %p5733_p5 }
  0x9a   : > { %p5735_p12 = scmp.ne.s32.totalorder %s5021_s9, 0 }
  0x9b   : > { %4920 = vsyncadd (%p5734_p6), [#allocation12], 4294952960  ;;  %v4952_v0 = vmov (!%p5735_p12), 0.0  }
  0x9c   : > { %384 = sbr.rel (%p5735_p12) target bundleno = 163 (0xa3), region = 76  ;;  %385 = vst [vmem:[#allocation2] sm:$0xff] (!%p5735_p12), %v4952_v0  ;;  %386 = vst [vmem:[#allocation3] sm:$0xff] (!%p5735_p12), %v4952_v0 }
  0xa3 PF: > { %p3666_p13 = scmp.ge.s32.totalorder %s5021_s9, 1 }
  0xa4   : > { %v4182_v1 = vld [vmem:[#allocation8 + $0x4] ss:$16 sps:$4 sm:$0xff] (!%p3666_p13)   ;;  %v4184_v2 = vld [vmem:[#allocation8 + $0xc] ss:$16 sps:$4 sm:$0xff] (!%p3666_p13)   ;;  %v4186_v3 = vld [vmem:[#allocation8] ss:$16 sps:$4 sm:$0xff] (!%p3666_p13)  }
  0xa5   : > { %390 = sbr.rel (%p3666_p13) target bundleno = 503 (0x1f7), region = 80  ;;  %1071 = vmatprep.subr.bf16.mxu0 (!%p3666_p13), %v4182_v1  ;;  %v4187_v4 = vld [vmem:[#allocation8 + $0x8] ss:$16 sps:$4 sm:$0xff] (!%p3666_p13)   ;;  %1217 = vmatprep.subr.bf16.mxu1 (!%p3666_p13), %v4184_v2  ;;  %v4188_v5 = vld [vmem:[#allocation8 + $0x24] ss:$16 sps:$4 sm:$0xff] (!%p3666_p13)   ;;  %s391_s10 = sand.u32 (!%p3666_p13), 1, %s5021_s9 }
  0xa6   : > { %1072 = vmatpush1.bf16.msra.mxu0 (!%p3666_p13), %v4186_v3  ;;  %1218 = vmatpush1.bf16.msra.mxu1 (!%p3666_p13), %v4187_v4  ;;  %v4190_v6 = vld [vmem:[#allocation8 + $0x2c] ss:$16 sps:$4 sm:$0xff] (!%p3666_p13)   ;;  %v4192_v7 = vld [vmem:[#allocation8 + $0x20] ss:$16 sps:$4 sm:$0xff] (!%p3666_p13)   ;;  %v4193_v8 = vld [vmem:[#allocation8 + $0x28] ss:$16 sps:$4 sm:$0xff] (!%p3666_p13)  }
  0xa7   : > { %1073 = vmatprep.subr.bf16.mxu0 (!%p3666_p13), %v4188_v5  ;;  %1219 = vmatprep.subr.bf16.mxu1 (!%p3666_p13), %v4190_v6  ;;  %v4194_v9 = vld [vmem:[#allocation8 + $0x44] ss:$16 sps:$4 sm:$0xff] (!%p3666_p13)   ;;  %v4196_v10 = vld [vmem:[#allocation8 + $0x4c] ss:$16 sps:$4 sm:$0xff] (!%p3666_p13)   ;;  %v4198_v11 = vld [vmem:[#allocation8 + $0x40] ss:$16 sps:$4 sm:$0xff] (!%p3666_p13)  }
  0xa8   : > { %v4199_v12 = vld [vmem:[#allocation8 + $0x48] ss:$16 sps:$4 sm:$0xff] (!%p3666_p13)   ;;  %v4200_v13 = vld [vmem:[#allocation8 + $0x64] ss:$16 sps:$4 sm:$0xff] (!%p3666_p13)   ;;  %v4202_v14 = vld [vmem:[#allocation8 + $0x6c] ss:$16 sps:$4 sm:$0xff] (!%p3666_p13)  }
  0xa9   : > { %v4204_v15 = vld [vmem:[#allocation8 + $0x60] ss:$16 sps:$4 sm:$0xff] (!%p3666_p13)   ;;  %v4205_v16 = vld [vmem:[#allocation8 + $0x68] ss:$16 sps:$4 sm:$0xff] (!%p3666_p13)   ;;  %v4206_v17 = vld [vmem:[#allocation8 + $0x84] ss:$16 sps:$4 sm:$0xff] (!%p3666_p13)  }
  0xaa   : > { %1074 = vmatpush1.bf16.msra.mxu0 (!%p3666_p13), %v4192_v7  ;;  %1220 = vmatpush1.bf16.msra.mxu1 (!%p3666_p13), %v4193_v8  ;;  %v4208_v18 = vld [vmem:[#allocation8 + $0x8c] ss:$16 sps:$4 sm:$0xff] (!%p3666_p13)   ;;  %v4210_v19 = vld [vmem:[#allocation8 + $0x80] ss:$16 sps:$4 sm:$0xff] (!%p3666_p13)   ;;  %v4211_v20 = vld [vmem:[#allocation8 + $0x88] ss:$16 sps:$4 sm:$0xff] (!%p3666_p13)  }
  0xab   : > { %1075 = vmatprep.subr.bf16.mxu0 (!%p3666_p13), %v4194_v9  ;;  %1221 = vmatprep.subr.bf16.mxu1 (!%p3666_p13), %v4196_v10  ;;  %v4212_v21 = vld [vmem:[#allocation8 + $0xa4] ss:$16 sps:$4 sm:$0xff] (!%p3666_p13)   ;;  %v4214_v22 = vld [vmem:[#allocation8 + $0xac] ss:$16 sps:$4 sm:$0xff] (!%p3666_p13)   ;;  %v4216_v23 = vld [vmem:[#allocation8 + $0xa0] ss:$16 sps:$4 sm:$0xff] (!%p3666_p13)  }
  0xac   : > { %v4217_v24 = vld [vmem:[#allocation8 + $0xa8] ss:$16 sps:$4 sm:$0xff]   ;;  %v4218_v25 = vld [vmem:[#allocation8 + $0xc4] ss:$16 sps:$4 sm:$0xff]   ;;  %v4220_v26 = vld [vmem:[#allocation8 + $0xcc] ss:$16 sps:$4 sm:$0xff]  }
  0xad   : > { %v4222_v27 = vld [vmem:[#allocation8 + $0xc0] ss:$16 sps:$4 sm:$0xff]   ;;  %v4223_v28 = vld [vmem:[#allocation8 + $0xc8] ss:$16 sps:$4 sm:$0xff]   ;;  %v4224_v29 = vld [vmem:[#allocation8 + $0xe4] ss:$16 sps:$4 sm:$0xff]  }
  0xae   : > { %1076 = vmatpush1.bf16.msra.mxu0 %v4198_v11  ;;  %1222 = vmatpush1.bf16.msra.mxu1 %v4199_v12  ;;  %v4226_v30 = vld [vmem:[#allocation8 + $0xec] ss:$16 sps:$4 sm:$0xff]   ;;  %v4228_v31 = vld [vmem:[#allocation8 + $0xe0] ss:$16 sps:$4 sm:$0xff]   ;;  %v4229_v32 = vld [vmem:[#allocation8 + $0xe8] ss:$16 sps:$4 sm:$0xff]  }
  0xaf   : > { %1077 = vmatprep.subr.bf16.mxu0 %v4200_v13  ;;  %1223 = vmatprep.subr.bf16.mxu1 %v4202_v14  ;;  %v4230_v33 = vld [vmem:[#allocation8 + $0x104] ss:$16 sps:$4 sm:$0xff]   ;;  %v4232_v34 = vld [vmem:[#allocation8 + $0x10c] ss:$16 sps:$4 sm:$0xff]   ;;  %v4234_v35 = vld [vmem:[#allocation8 + $0x100] ss:$16 sps:$4 sm:$0xff]  }
  0xb0   : > { %v4235_v36 = vld [vmem:[#allocation8 + $0x108] ss:$16 sps:$4 sm:$0xff]   ;;  %v4236_v37 = vld [vmem:[#allocation8 + $0x124] ss:$16 sps:$4 sm:$0xff]   ;;  %v4238_v38 = vld [vmem:[#allocation8 + $0x12c] ss:$16 sps:$4 sm:$0xff]  }
  0xb1   : > { %v4240_v39 = vld [vmem:[#allocation8 + $0x120] ss:$16 sps:$4 sm:$0xff]   ;;  %v4241_v40 = vld [vmem:[#allocation8 + $0x128] ss:$16 sps:$4 sm:$0xff]   ;;  %v4242_v41 = vld [vmem:[#allocation8 + $0x144] ss:$16 sps:$4 sm:$0xff]  }
  0xb2   : > { %1078 = vmatpush1.bf16.msra.mxu0 %v4204_v15  ;;  %1224 = vmatpush1.bf16.msra.mxu1 %v4205_v16  ;;  %v4244_v42 = vld [vmem:[#allocation8 + $0x14c] ss:$16 sps:$4 sm:$0xff]   ;;  %v4246_v43 = vld [vmem:[#allocation8 + $0x140] ss:$16 sps:$4 sm:$0xff]   ;;  %v4247_v44 = vld [vmem:[#allocation8 + $0x148] ss:$16 sps:$4 sm:$0xff]  }
  0xb3   : > { %1079 = vmatprep.subr.bf16.mxu0 %v4206_v17  ;;  %1225 = vmatprep.subr.bf16.mxu1 %v4208_v18  ;;  %v4248_v45 = vld [vmem:[#allocation8 + $0x164] ss:$16 sps:$4 sm:$0xff]   ;;  %v4250_v46 = vld [vmem:[#allocation8 + $0x16c] ss:$16 sps:$4 sm:$0xff]   ;;  %v4252_v47 = vld [vmem:[#allocation8 + $0x160] ss:$16 sps:$4 sm:$0xff]  }
  0xb4   : > { %v4253_v48 = vld [vmem:[#allocation8 + $0x168] ss:$16 sps:$4 sm:$0xff]   ;;  %v4280_v49 = vld [vmem:[%s5208_s23 + $0x4] ss:$12 sps:$4 sm:$0xff]   ;;  %v4256_v51 = vld [vmem:[#allocation8 + $0x18c] ss:$16 sps:$4 sm:$0xff]  }
  0xb5   : > { %v4254_v50 = vld [vmem:[#allocation8 + $0x184] ss:$16 sps:$4 sm:$0xff]   ;;  %1103 = vmatprep.mubr.bf16.mxu0 %v4280_v49  ;;  %1249 = vmatprep.mubr.bf16.mxu1 %v4280_v49  ;;  %v4258_v52 = vld [vmem:[#allocation8 + $0x180] ss:$16 sps:$4 sm:$0xff]   ;;  %v4259_v53 = vld [vmem:[#allocation8 + $0x188] ss:$16 sps:$4 sm:$0xff]  }
  0xb6   : > { %1080 = vmatpush1.bf16.msra.mxu0 %v4210_v19  ;;  %1226 = vmatpush1.bf16.msra.mxu1 %v4211_v20  ;;  %v4260_v54 = vld [vmem:[#allocation8 + $0x1a4] ss:$16 sps:$4 sm:$0xff]   ;;  %v4262_v55 = vld [vmem:[#allocation8 + $0x1ac] ss:$16 sps:$4 sm:$0xff]   ;;  %v4264_v56 = vld [vmem:[#allocation8 + $0x1a0] ss:$16 sps:$4 sm:$0xff]  }
  0xb7   : > { %1081 = vmatprep.subr.bf16.mxu0 %v4212_v21  ;;  %1227 = vmatprep.subr.bf16.mxu1 %v4214_v22  ;;  %v4265_v57 = vld [vmem:[#allocation8 + $0x1a8] ss:$16 sps:$4 sm:$0xff]   ;;  %v4266_v58 = vld [vmem:[#allocation8 + $0x1c4] ss:$16 sps:$4 sm:$0xff]   ;;  %v4268_v59 = vld [vmem:[#allocation8 + $0x1cc] ss:$16 sps:$4 sm:$0xff]  }
  0xb8   : > { %v4270_v60 = vld [vmem:[#allocation8 + $0x1c0] ss:$16 sps:$4 sm:$0xff]   ;;  %v4271_v61 = vld [vmem:[#allocation8 + $0x1c8] ss:$16 sps:$4 sm:$0xff]   ;;  %v4272_v62 = vld [vmem:[#allocation8 + $0x1e4] ss:$16 sps:$4 sm:$0xff]  }
  0xb9   : > { %v4274_v63 = vld [vmem:[#allocation8 + $0x1ec] ss:$16 sps:$4 sm:$0xff]   ;;  %v4276_v0 = vld [vmem:[#allocation8 + $0x1e0] ss:$16 sps:$4 sm:$0xff]   ;;  %v4277_v1 = vld [vmem:[#allocation8 + $0x1e8] ss:$16 sps:$4 sm:$0xff]  }
  0xba   : > { %1082 = vmatpush1.bf16.msra.mxu0 %v4216_v23  ;;  %1228 = vmatpush1.bf16.msra.mxu1 %v4217_v24  ;;  %v4283_v2 = vld [vmem:[#allocation8 + $0x204] ss:$16 sps:$4 sm:$0xff]   ;;  %v4286_v3 = vld [vmem:[#allocation8 + $0x20c] ss:$16 sps:$4 sm:$0xff]   ;;  %v4281_v5 = vld [vmem:[#allocation8 + $0x200] ss:$16 sps:$4 sm:$0xff]  }
  0xbb   : > { %1083 = vmatprep.subr.bf16.mxu0 %v4218_v25  ;;  %1229 = vmatprep.subr.bf16.mxu1 %v4220_v26  ;;  %v4278_v4 = vld [vmem:[%s5208_s23] ss:$12 sps:$4 sm:$0xff]   ;;  %v4284_v6 = vld [vmem:[#allocation8 + $0x208] ss:$16 sps:$4 sm:$0xff]   ;;  %v4289_v7 = vld [vmem:[#allocation8 + $0x224] ss:$16 sps:$4 sm:$0xff]  }
  0xbc   : > { %v4292_v8 = vld [vmem:[#allocation8 + $0x22c] ss:$16 sps:$4 sm:$0xff]   ;;  %v4287_v10 = vld [vmem:[#allocation8 + $0x220] ss:$16 sps:$4 sm:$0xff]   ;;  %v4290_v11 = vld [vmem:[#allocation8 + $0x228] ss:$16 sps:$4 sm:$0xff]  }
  0xbd   : > { %v4293_v9 = vld [vmem:[%s5208_s23 + $0x1c] ss:$12 sps:$4 sm:$0xff]   ;;  %v4298_v12 = vld [vmem:[#allocation8 + $0x244] ss:$16 sps:$4 sm:$0xff]   ;;  %v4296_v15 = vld [vmem:[#allocation8 + $0x240] ss:$16 sps:$4 sm:$0xff]  }
  0xbe   : > { %1084 = vmatpush1.bf16.msra.mxu0 %v4222_v27  ;;  %1230 = vmatpush1.bf16.msra.mxu1 %v4223_v28  ;;  %v4301_v13 = vld [vmem:[#allocation8 + $0x24c] ss:$16 sps:$4 sm:$0xff]   ;;  %v4295_v14 = vld [vmem:[%s5208_s23 + $0x18] ss:$12 sps:$4 sm:$0xff]   ;;  %v4308_v19 = vld [vmem:[%s5208_s23 + $0x34] ss:$12 sps:$4 sm:$0xff]  }
  0xbf   : > { %1085 = vmatprep.subr.bf16.mxu0 %v4224_v29  ;;  %1231 = vmatprep.subr.bf16.mxu1 %v4226_v30  ;;  %v4299_v16 = vld [vmem:[#allocation8 + $0x248] ss:$16 sps:$4 sm:$0xff]   ;;  %v4304_v17 = vld [vmem:[#allocation8 + $0x264] ss:$16 sps:$4 sm:$0xff]   ;;  %v4307_v18 = vld [vmem:[#allocation8 + $0x26c] ss:$16 sps:$4 sm:$0xff]  }
  0xc0   : > { %v4302_v20 = vld [vmem:[#allocation8 + $0x260] ss:$16 sps:$4 sm:$0xff]   ;;  %v4305_v21 = vld [vmem:[#allocation8 + $0x268] ss:$16 sps:$4 sm:$0xff]   ;;  %v4313_v22 = vld [vmem:[#allocation8 + $0x284] ss:$16 sps:$4 sm:$0xff]  }
  0xc1   : > { %v4316_v23 = vld [vmem:[#allocation8 + $0x28c] ss:$16 sps:$4 sm:$0xff]   ;;  %v4311_v25 = vld [vmem:[#allocation8 + $0x280] ss:$16 sps:$4 sm:$0xff]   ;;  %v4314_v26 = vld [vmem:[#allocation8 + $0x288] ss:$16 sps:$4 sm:$0xff]  }
  0xc2   : > { %1086 = vmatpush1.bf16.msra.mxu0 %v4228_v31  ;;  %1232 = vmatpush1.bf16.msra.mxu1 %v4229_v32  ;;  %v4310_v24 = vld [vmem:[%s5208_s23 + $0x30] ss:$12 sps:$4 sm:$0xff]   ;;  %v4319_v27 = vld [vmem:[#allocation8 + $0x2a4] ss:$16 sps:$4 sm:$0xff]   ;;  %v4323_v29 = vld [vmem:[%s5208_s23 + $0x4c] ss:$12 sps:$4 sm:$0xff]  }
  0xc3   : > { %1087 = vmatprep.subr.bf16.mxu0 %v4230_v33  ;;  %1233 = vmatprep.subr.bf16.mxu1 %v4232_v34  ;;  %v4322_v28 = vld [vmem:[#allocation8 + $0x2ac] ss:$16 sps:$4 sm:$0xff]   ;;  %v4317_v30 = vld [vmem:[#allocation8 + $0x2a0] ss:$16 sps:$4 sm:$0xff]   ;;  %v4320_v31 = vld [vmem:[#allocation8 + $0x2a8] ss:$16 sps:$4 sm:$0xff]  }
  0xc4   : > { %v4328_v32 = vld [vmem:[#allocation8 + $0x2c4] ss:$16 sps:$4 sm:$0xff]   ;;  %v4331_v33 = vld [vmem:[#allocation8 + $0x2cc] ss:$16 sps:$4 sm:$0xff]   ;;  %s3667_s11 = sshll.u32 %s391_s10, 6 }
  0xc5   : > { %v4325_v34 = vld [vmem:[%s5208_s23 + $0x48] ss:$12 sps:$4 sm:$0xff]   ;;  %s1363_s15 = sshra.s32 %s3667_s11, 3 }
  0xc6   : > { %1088 = vmatpush1.bf16.msra.mxu0 %v4234_v35  ;;  %1234 = vmatpush1.bf16.msra.mxu1 %v4235_v36  ;;  %v4326_v35 = vld [vmem:[#allocation8 + $0x2c0] ss:$16 sps:$4 sm:$0xff]   ;;  %v4329_v36 = vld [vmem:[#allocation8 + $0x2c8] ss:$16 sps:$4 sm:$0xff]   ;;  %s3976_s24 = sshll.u32 %s1363_s15, 5 }
  0xc7   : > { %1089 = vmatprep.subr.bf16.mxu0 %v4236_v37  ;;  %1235 = vmatprep.subr.bf16.mxu1 %v4238_v38  ;;  %v4334_v37 = vld [vmem:[#allocation8 + $0x2e4] ss:$16 sps:$4 sm:$0xff]   ;;  %v4337_v38 = vld [vmem:[#allocation8 + $0x2ec] ss:$16 sps:$4 sm:$0xff]   ;;  %s5253_s25 = scalar_lea.vmem [#allocation4], %s3976_s24 }
  0xca   : > { %1090 = vmatpush1.bf16.msra.mxu0 %v4240_v39  ;;  %1236 = vmatpush1.bf16.msra.mxu1 %v4241_v40  ;;  %v4332_v39 = vld [vmem:[#allocation8 + $0x2e0] ss:$16 sps:$4 sm:$0xff]   ;;  %v4335_v40 = vld [vmem:[#allocation8 + $0x2e8] ss:$16 sps:$4 sm:$0xff]  }
  0xcb   : > { %1091 = vmatprep.subr.bf16.mxu0 %v4242_v41  ;;  %1237 = vmatprep.subr.bf16.mxu1 %v4244_v42  ;;  %v4953_v41 = vmov 0   ;;  %v4338_v42 = vld [vmem:[%s5208_s23 + $0x8] ss:$12 sps:$4 sm:$0xff]  }
  0xce   : > { %1092 = vmatpush1.bf16.msra.mxu0 %v4246_v43  ;;  %1238 = vmatpush1.bf16.msra.mxu1 %v4247_v44  ;;  %v4339_v43 = vld [vmem:[%s5208_s23 + $0x20] ss:$12 sps:$4 sm:$0xff]   ;;  %v4340_v44 = vld [vmem:[%s5208_s23 + $0x38] ss:$12 sps:$4 sm:$0xff]  }
  0xcf   : > { %1093 = vmatprep.subr.bf16.mxu0 %v4248_v45  ;;  %1239 = vmatprep.subr.bf16.mxu1 %v4250_v46  ;;  %v4341_v45 = vld [vmem:[%s5208_s23 + $0x50] ss:$12 sps:$4 sm:$0xff]   ;;  %v507_v46 = vlaneseq }
  0xd2   : > { %1094 = vmatpush1.bf16.msra.mxu0 %v4252_v47  ;;  %1240 = vmatpush1.bf16.msra.mxu1 %v4253_v48  ;;  %v508_v47 = vshrl.u32 %v507_v46, 7 }
  0xd3   : > { %1095 = vmatprep.subr.bf16.mxu0 %v4254_v50  ;;  %1241 = vmatprep.subr.bf16.mxu1 %v4256_v51  ;;  %v505_v50 = vld [vmem:[%s5715_s3] sm:$0xf] }
  0xd4   : > { %v509_v48 = vsub.s32 0, %v508_v47  ;;  %v517_v49 = vsub.s32 2, %v508_v47  ;;  %v513_v51 = vsub.s32 1, %v508_v47 }
  0xd6   : > { %1096 = vmatpush1.bf16.msra.mxu0 %v4258_v52  ;;  %1242 = vmatpush1.bf16.msra.mxu1 %v4259_v53  ;;  %v521_v52 = vsub.s32 3, %v508_v47  ;;  %v5241_v53 = vrot.slane %v505_v50, %v509_v48 }
  0xd7   : > { %1097 = vmatprep.subr.bf16.mxu0 %v4260_v54  ;;  %1243 = vmatprep.subr.bf16.mxu1 %v4262_v55  ;;  %v5243_v54 = vrot.slane %v505_v50, %v517_v49  ;;  %v5245_v55 = vrot.slane %v505_v50, %v513_v51 }
  0xda   : > { %1098 = vmatpush1.bf16.msra.mxu0 %v4264_v56  ;;  %1244 = vmatpush1.bf16.msra.mxu1 %v4265_v57  ;;  %v5247_v56 = vrot.slane %v505_v50, %v521_v52 }
  0xdb   : > { %1099 = vmatprep.subr.bf16.mxu0 %v4266_v58  ;;  %1245 = vmatprep.subr.bf16.mxu1 %v4268_v59 }
  0xde   : > { %1100 = vmatpush1.bf16.msra.mxu0 %v4270_v60  ;;  %1246 = vmatpush1.bf16.msra.mxu1 %v4271_v61 }
  0xdf   : > { %1101 = vmatprep.subr.bf16.mxu0 %v4272_v62  ;;  %1247 = vmatprep.subr.bf16.mxu1 %v4274_v63 }
  0xe2   : > { %1102 = vmatpush1.bf16.msra.mxu0 %v4276_v0  ;;  %1248 = vmatpush1.bf16.msra.mxu1 %v4277_v1 }
  0xe3   : > { %1144 = vmatprep.subr.bf16.mxu0 %v4283_v2  ;;  %1290 = vmatprep.subr.bf16.mxu1 %v4286_v3 }
  0xe5   : > { %1104 = vmatmul.mubr.bf16.vlgmr.msra.gmra.mrb[0].mxu0 %v4278_v4  ;;  %1250 = vmatmul.mubr.bf16.vlgmr.msra.gmra.mrb[0].mxu1 %v4278_v4 }
  0xe6   : > { %1145 = vmatpush1.bf16.msra.mxu0 %v4281_v5  ;;  %1291 = vmatpush1.bf16.msra.mxu1 %v4284_v6 }
  0xe7   : > { %1146 = vmatprep.subr.bf16.mxu0 %v4289_v7  ;;  %1292 = vmatprep.subr.bf16.mxu1 %v4292_v8 }
  0xe8   : > { %1113 = vmatprep.mubr.bf16.mxu0 %v4293_v9  ;;  %1259 = vmatprep.mubr.bf16.mxu1 %v4293_v9 }
  0xea   : > { %1147 = vmatpush1.bf16.msra.mxu0 %v4287_v10  ;;  %1293 = vmatpush1.bf16.msra.mxu1 %v4290_v11 }
  0xeb   : > { %1148 = vmatprep.subr.bf16.mxu0 %v4298_v12  ;;  %1294 = vmatprep.subr.bf16.mxu1 %v4301_v13 }
  0xed   : > { %1114 = vmatmul.mubr.bf16.gmra.mrb[4].mxu0 %v4295_v14  ;;  %1260 = vmatmul.mubr.bf16.gmra.mrb[4].mxu1 %v4295_v14 }
  0xee   : > { %1149 = vmatpush1.bf16.msra.mxu0 %v4296_v15  ;;  %1295 = vmatpush1.bf16.msra.mxu1 %v4299_v16 }
  0xef   : > { %1150 = vmatprep.subr.bf16.mxu0 %v4304_v17  ;;  %1296 = vmatprep.subr.bf16.mxu1 %v4307_v18 }
  0xf0   : > { %1123 = vmatprep.mubr.bf16.mxu0 %v4308_v19  ;;  %1269 = vmatprep.mubr.bf16.mxu1 %v4308_v19 }
  0xf2   : > { %1151 = vmatpush1.bf16.msra.mxu0 %v4302_v20  ;;  %1297 = vmatpush1.bf16.msra.mxu1 %v4305_v21 }
  0xf3   : > { %1152 = vmatprep.subr.bf16.mxu0 %v4313_v22  ;;  %1298 = vmatprep.subr.bf16.mxu1 %v4316_v23 }
  0xf5   : > { %1124 = vmatmul.mubr.bf16.gmra.mrb[8].mxu0 %v4310_v24  ;;  %1270 = vmatmul.mubr.bf16.gmra.mrb[8].mxu1 %v4310_v24 }
  0xf6   : > { %1153 = vmatpush1.bf16.msra.mxu0 %v4311_v25  ;;  %1299 = vmatpush1.bf16.msra.mxu1 %v4314_v26 }
  0xf7   : > { %1154 = vmatprep.subr.bf16.mxu0 %v4319_v27  ;;  %1300 = vmatprep.subr.bf16.mxu1 %v4322_v28 }
  0xf8   : > { %1133 = vmatprep.mubr.bf16.mxu0 %v4323_v29  ;;  %1279 = vmatprep.mubr.bf16.mxu1 %v4323_v29 }
  0xfa   : > { %1155 = vmatpush1.bf16.msra.mxu0 %v4317_v30  ;;  %1301 = vmatpush1.bf16.msra.mxu1 %v4320_v31 }
  0xfb   : > { %1156 = vmatprep.subr.bf16.mxu0 %v4328_v32  ;;  %1302 = vmatprep.subr.bf16.mxu1 %v4331_v33 }
  0xfd   : > { %1134 = vmatmul.mubr.bf16.gmra.mrb[12].mxu0 %v4325_v34  ;;  %1280 = vmatmul.mubr.bf16.gmra.mrb[12].mxu1 %v4325_v34 }
  0xfe   : > { %1157 = vmatpush1.bf16.msra.mxu0 %v4326_v35  ;;  %1303 = vmatpush1.bf16.msra.mxu1 %v4329_v36 }
  0xff   : > { %1158 = vmatprep.subr.bf16.mxu0 %v4334_v37  ;;  %1304 = vmatprep.subr.bf16.mxu1 %v4337_v38 }
 0x100   : > { %1176 = vmatprep.mubr.bf16.mxu0 %v4953_v41  ;;  %1322 = vmatprep.mubr.bf16.mxu1 %v4953_v41 }
 0x102   : > { %1159 = vmatpush1.bf16.msra.mxu0 %v4332_v39  ;;  %1305 = vmatpush1.bf16.msra.mxu1 %v4335_v40 }
 0x105   : > { %1177 = vmatmul.mubr.bf16.vlgmr.msra.gmra.mrb[0].mxu0 %v4338_v42  ;;  %1323 = vmatmul.mubr.bf16.vlgmr.msra.gmra.mrb[0].mxu1 %v4338_v42 }
 0x106   : > { %1186 = vmatprep.mubr.bf16.mxu0 %v4953_v41  ;;  %1332 = vmatprep.mubr.bf16.mxu1 %v4953_v41 }
 0x10d   : > { %1187 = vmatmul.mubr.bf16.gmra.mrb[4].mxu0 %v4339_v43  ;;  %1333 = vmatmul.mubr.bf16.gmra.mrb[4].mxu1 %v4339_v43 }
 0x10e   : > { %1196 = vmatprep.mubr.bf16.mxu0 %v4953_v41  ;;  %1342 = vmatprep.mubr.bf16.mxu1 %v4953_v41 }
 0x115   : > { %1197 = vmatmul.mubr.bf16.gmra.mrb[8].mxu0 %v4340_v44  ;;  %1343 = vmatmul.mubr.bf16.gmra.mrb[8].mxu1 %v4340_v44 }
 0x116   : > { %1206 = vmatprep.mubr.bf16.mxu0 %v4953_v41  ;;  %1352 = vmatprep.mubr.bf16.mxu1 %v4953_v41 }
 0x11d   : > { %1207 = vmatmul.mubr.bf16.gmra.mrb[12].mxu0 %v4341_v45  ;;  %1353 = vmatmul.mubr.bf16.gmra.mrb[12].mxu1 %v4341_v45 }
 0x1d8   : > { %v1178_v57 = vpop.f32.mrb[0].mxu0  ;;  %v1324_v58 = vpop.f32.mrb[0].mxu1 }
 0x1d9   : > { %v4007_v59 = vadd.f32 %v1178_v57, %v5241_v53  ;;  %v4023_v60 = vadd.f32 %v1324_v58, %v5243_v54  ;;  %v1180_v61 = vpop.f32.mrb[1].mxu0  ;;  %v1326_v62 = vpop.f32.mrb[1].mxu1 }
 0x1da   : > { %v4008_v63 = vadd.f32 %v1180_v61, %v5245_v55  ;;  %v4024_v0 = vadd.f32 %v1326_v62, %v5247_v56  ;;  %v1182_v1 = vpop.f32.mrb[2].mxu0  ;;  %v1328_v2 = vpop.f32.mrb[2].mxu1 }
 0x1db   : > { %1368 = vst [vmem:[%s5253_s25] sm:$0xff] %v4007_v59  ;;  %1370 = vst [vmem:[%s5253_s25 + $0x10] sm:$0xff] %v4023_v60  ;;  %v4009_v3 = vadd.f32 %v1182_v1, %v5241_v53  ;;  %v4025_v4 = vadd.f32 %v1328_v2, %v5243_v54  ;;  %v1184_v5 = vpop.f32.mrb[3].mxu0  ;;  %v1330_v6 = vpop.f32.mrb[3].mxu1 }
 0x1dc   : > { %1369 = vst [vmem:[%s5253_s25 + $0x8] sm:$0xff] %v4008_v63  ;;  %1371 = vst [vmem:[%s5253_s25 + $0x18] sm:$0xff] %v4024_v0  ;;  %v4010_v7 = vadd.f32 %v1184_v5, %v5245_v55  ;;  %v4026_v8 = vadd.f32 %v1330_v6, %v5247_v56 }
 0x1dd   : > { %1372 = vst [vmem:[%s5253_s25 + $0x20] sm:$0xff] %v4009_v3  ;;  %1374 = vst [vmem:[%s5253_s25 + $0x30] sm:$0xff] %v4025_v4 }
 0x1de   : > { %1373 = vst [vmem:[%s5253_s25 + $0x28] sm:$0xff] %v4010_v7  ;;  %1375 = vst [vmem:[%s5253_s25 + $0x38] sm:$0xff] %v4026_v8 }
 0x1e0   : > { %v1188_v9 = vpop.f32.mrb[4].mxu0  ;;  %v1334_v10 = vpop.f32.mrb[4].mxu1 }
 0x1e1   : > { %v4011_v11 = vadd.f32 %v1188_v9, %v5241_v53  ;;  %v4027_v12 = vadd.f32 %v1334_v10, %v5243_v54  ;;  %v1190_v13 = vpop.f32.mrb[5].mxu0  ;;  %v1336_v14 = vpop.f32.mrb[5].mxu1 }
 0x1e2   : > { %v4012_v15 = vadd.f32 %v1190_v13, %v5245_v55  ;;  %v4028_v16 = vadd.f32 %v1336_v14, %v5247_v56  ;;  %v1192_v17 = vpop.f32.mrb[6].mxu0  ;;  %v1338_v18 = vpop.f32.mrb[6].mxu1 }
 0x1e3   : > { %1376 = vst [vmem:[%s5253_s25 + $0x40] sm:$0xff] %v4011_v11  ;;  %1378 = vst [vmem:[%s5253_s25 + $0x50] sm:$0xff] %v4027_v12  ;;  %v4013_v19 = vadd.f32 %v1192_v17, %v5241_v53  ;;  %v4029_v20 = vadd.f32 %v1338_v18, %v5243_v54  ;;  %v1194_v21 = vpop.f32.mrb[7].mxu0  ;;  %v1340_v22 = vpop.f32.mrb[7].mxu1 }
 0x1e4   : > { %1377 = vst [vmem:[%s5253_s25 + $0x48] sm:$0xff] %v4012_v15  ;;  %1379 = vst [vmem:[%s5253_s25 + $0x58] sm:$0xff] %v4028_v16  ;;  %v4014_v23 = vadd.f32 %v1194_v21, %v5245_v55  ;;  %v4030_v24 = vadd.f32 %v1340_v22, %v5247_v56 }
 0x1e5   : > { %1380 = vst [vmem:[%s5253_s25 + $0x60] sm:$0xff] %v4013_v19  ;;  %1382 = vst [vmem:[%s5253_s25 + $0x70] sm:$0xff] %v4029_v20 }
 0x1e6   : > { %1381 = vst [vmem:[%s5253_s25 + $0x68] sm:$0xff] %v4014_v23  ;;  %1383 = vst [vmem:[%s5253_s25 + $0x78] sm:$0xff] %v4030_v24 }
 0x1e8   : > { %v1198_v25 = vpop.f32.mrb[8].mxu0  ;;  %v1344_v26 = vpop.f32.mrb[8].mxu1 }
 0x1e9   : > { %v4015_v27 = vadd.f32 %v1198_v25, %v5241_v53  ;;  %v4031_v28 = vadd.f32 %v1344_v26, %v5243_v54  ;;  %v1200_v29 = vpop.f32.mrb[9].mxu0  ;;  %v1346_v30 = vpop.f32.mrb[9].mxu1 }
 0x1ea   : > { %v4016_v31 = vadd.f32 %v1200_v29, %v5245_v55  ;;  %v4032_v32 = vadd.f32 %v1346_v30, %v5247_v56  ;;  %v1202_v33 = vpop.f32.mrb[10].mxu0  ;;  %v1348_v34 = vpop.f32.mrb[10].mxu1 }
 0x1eb   : > { %1384 = vst [vmem:[%s5253_s25 + $0x80] sm:$0xff] %v4015_v27  ;;  %1386 = vst [vmem:[%s5253_s25 + $0x90] sm:$0xff] %v4031_v28  ;;  %v4017_v35 = vadd.f32 %v1202_v33, %v5241_v53  ;;  %v4033_v36 = vadd.f32 %v1348_v34, %v5243_v54  ;;  %v1204_v37 = vpop.f32.mrb[11].mxu0  ;;  %v1350_v38 = vpop.f32.mrb[11].mxu1 }
 0x1ec   : > { %1385 = vst [vmem:[%s5253_s25 + $0x88] sm:$0xff] %v4016_v31  ;;  %1387 = vst [vmem:[%s5253_s25 + $0x98] sm:$0xff] %v4032_v32  ;;  %v4018_v39 = vadd.f32 %v1204_v37, %v5245_v55  ;;  %v4034_v40 = vadd.f32 %v1350_v38, %v5247_v56 }
 0x1ed   : > { %1388 = vst [vmem:[%s5253_s25 + $0xa0] sm:$0xff] %v4017_v35  ;;  %1390 = vst [vmem:[%s5253_s25 + $0xb0] sm:$0xff] %v4033_v36 }
 0x1ee   : > { %1389 = vst [vmem:[%s5253_s25 + $0xa8] sm:$0xff] %v4018_v39  ;;  %1391 = vst [vmem:[%s5253_s25 + $0xb8] sm:$0xff] %v4034_v40 }
 0x1f0   : > { %v1208_v41 = vpop.f32.mrb[12].mxu0  ;;  %v1354_v42 = vpop.f32.mrb[12].mxu1 }
 0x1f1   : > { %v4019_v43 = vadd.f32 %v1208_v41, %v5241_v53  ;;  %v4035_v44 = vadd.f32 %v1354_v42, %v5243_v54  ;;  %v1210_v45 = vpop.f32.mrb[13].mxu0  ;;  %v1356_v46 = vpop.f32.mrb[13].mxu1 }
 0x1f2   : > { %v4020_v47 = vadd.f32 %v1210_v45, %v5245_v55  ;;  %v4036_v48 = vadd.f32 %v1356_v46, %v5247_v56  ;;  %v1212_v49 = vpop.f32.mrb[14].mxu0  ;;  %v1358_v50 = vpop.f32.mrb[14].mxu1 }
 0x1f3   : > { %1392 = vst [vmem:[%s5253_s25 + $0xc0] sm:$0xff] %v4019_v43  ;;  %1394 = vst [vmem:[%s5253_s25 + $0xd0] sm:$0xff] %v4035_v44  ;;  %v4021_v51 = vadd.f32 %v1212_v49, %v5241_v53  ;;  %v4037_v52 = vadd.f32 %v1358_v50, %v5243_v54  ;;  %v1214_v57 = vpop.f32.mrb[15].mxu0  ;;  %v1360_v58 = vpop.f32.mrb[15].mxu1 }
 0x1f4   : > { %1393 = vst [vmem:[%s5253_s25 + $0xc8] sm:$0xff] %v4020_v47  ;;  %1395 = vst [vmem:[%s5253_s25 + $0xd8] sm:$0xff] %v4036_v48  ;;  %v4022_v59 = vadd.f32 %v1214_v57, %v5245_v55  ;;  %v4038_v60 = vadd.f32 %v1360_v58, %v5247_v56 }
 0x1f5   : > { %1396 = vst [vmem:[%s5253_s25 + $0xe0] sm:$0xff] %v4021_v51  ;;  %1398 = vst [vmem:[%s5253_s25 + $0xf0] sm:$0xff] %v4037_v52 }
 0x1f6   : > { %1397 = vst [vmem:[%s5253_s25 + $0xe8] sm:$0xff] %v4022_v59  ;;  %1399 = vst [vmem:[%s5253_s25 + $0xf8] sm:$0xff] %v4038_v60 }
 0x1f7 PF: > { %p3778_p0 = scmp.le.s32.totalorder %s5021_s9, 0 }
 0x1f8   : > { %v5316_v61 = vld [vmem:[#allocation10 + $0x4] ss:$16 sps:$4 sm:$0xff] (!%p3778_p0)   ;;  %v5318_v53 = vld [vmem:[#allocation10] ss:$16 sps:$4 sm:$0xff] (!%p3778_p0)   ;;  %v4954_v54 = vmov (!%p3778_p0), 0   ;;  %s3779_s14 = sadd.s32 (!%p3778_p0), 4294967295, %s5021_s9 }
 0x1f9   : > { %1403 = sbr.rel (%p3778_p0) target bundleno = 2617 (0xa39), region = 84  ;;  %1643 = vmatprep.mubr.bf16.mxu0 (!%p3778_p0), %v4954_v54  ;;  %1684 = vmatprep.mubr.bf16.mxu1 (!%p3778_p0), %v4954_v54  ;;  %v5323_v55 = vld [vmem:[#allocation10 + $0x24] ss:$16 sps:$4 sm:$0xff] (!%p3778_p0)   ;;  %v5326_v56 = vld [vmem:[#allocation10 + $0x20] ss:$16 sps:$4 sm:$0xff] (!%p3778_p0)   ;;  %s1405_s20 = sand.u32 (!%p3778_p0), 1, %s3779_s14 }
 0x1fa   : > { %1611 = vmatprep.subr.bf16.mxu0 (!%p3778_p0), %v5316_v61  ;;  %v5329_v62 = vld [vmem:[#allocation10 + $0x44] ss:$16 sps:$4 sm:$0xff] (!%p3778_p0)   ;;  %v5331_v63 = vld [vmem:[#allocation10 + $0xc] ss:$16 sps:$4 sm:$0xff] (!%p3778_p0)   ;;  %v5333_v0 = vld [vmem:[#allocation10 + $0x8] ss:$16 sps:$4 sm:$0xff] (!%p3778_p0)  }
 0x1fb   : > { %1612 = vmatpush1.bf16.msra.mxu0 (!%p3778_p0), %v5318_v53  ;;  %v5336_v1 = vld [vmem:[#allocation10 + $0x40] ss:$16 sps:$4 sm:$0xff] (!%p3778_p0)   ;;  %1652 = vmatprep.subr.bf16.mxu1 (!%p3778_p0), %v5331_v63  ;;  %v5340_v2 = vld [vmem:[#allocation10 + $0x64] ss:$16 sps:$4 sm:$0xff] (!%p3778_p0)   ;;  %v5343_v3 = vld [vmem:[#allocation10 + $0x2c] ss:$16 sps:$4 sm:$0xff] (!%p3778_p0)  }
 0x1fc   : > { %1613 = vmatprep.subr.bf16.mxu0 (!%p3778_p0), %v5323_v55  ;;  %1653 = vmatpush1.bf16.msra.mxu1 (!%p3778_p0), %v5333_v0  ;;  %v5345_v4 = vld [vmem:[#allocation10 + $0x28] ss:$16 sps:$4 sm:$0xff] (!%p3778_p0)   ;;  %v5349_v5 = vld [vmem:[#allocation10 + $0x60] ss:$16 sps:$4 sm:$0xff] (!%p3778_p0)   ;;  %v5351_v6 = vld [vmem:[#allocation10 + $0x84] ss:$16 sps:$4 sm:$0xff] (!%p3778_p0)  }
 0x1fd   : > { %1654 = vmatprep.subr.bf16.mxu1 (!%p3778_p0), %v5343_v3  ;;  %v5353_v7 = vld [vmem:[#allocation10 + $0x4c] ss:$16 sps:$4 sm:$0xff] (!%p3778_p0)   ;;  %v5357_v8 = vld [vmem:[#allocation10 + $0x48] ss:$16 sps:$4 sm:$0xff] (!%p3778_p0)   ;;  %v5363_v10 = vld [vmem:[#allocation10 + $0x80] ss:$16 sps:$4 sm:$0xff] (!%p3778_p0)  }
 0x1fe   : > { %v5360_v9 = vld [vmem:[#allocation10 + $0x6c] ss:$16 sps:$4 sm:$0xff] (!%p3778_p0)   ;;  %v5366_v11 = vld [vmem:[#allocation10 + $0xa4] ss:$16 sps:$4 sm:$0xff] (!%p3778_p0)   ;;  %v5369_v12 = vld [vmem:[#allocation10 + $0x68] ss:$16 sps:$4 sm:$0xff] (!%p3778_p0)  }
 0x1ff   : > { %1614 = vmatpush1.bf16.msra.mxu0 (!%p3778_p0), %v5326_v56  ;;  %v5372_v13 = vld [vmem:[#allocation10 + $0x8c] ss:$16 sps:$4 sm:$0xff] (!%p3778_p0)   ;;  %v5374_v14 = vld [vmem:[#allocation10 + $0xa0] ss:$16 sps:$4 sm:$0xff] (!%p3778_p0)   ;;  %v5377_v15 = vld [vmem:[#allocation10 + $0xc4] ss:$16 sps:$4 sm:$0xff] (!%p3778_p0)  }
 0x200   : > { %1615 = vmatprep.subr.bf16.mxu0 %v5329_v62  ;;  %1655 = vmatpush1.bf16.msra.mxu1 %v5345_v4  ;;  %v5381_v16 = vld [vmem:[#allocation10 + $0x88] ss:$16 sps:$4 sm:$0xff]   ;;  %v5384_v17 = vld [vmem:[#allocation10 + $0xac] ss:$16 sps:$4 sm:$0xff]   ;;  %v5387_v18 = vld [vmem:[#allocation10 + $0xc0] ss:$16 sps:$4 sm:$0xff]  }
 0x201   : > { %1656 = vmatprep.subr.bf16.mxu1 %v5353_v7  ;;  %v5390_v19 = vld [vmem:[#allocation10 + $0xe4] ss:$16 sps:$4 sm:$0xff]   ;;  %v5393_v20 = vld [vmem:[#allocation10 + $0xa8] ss:$16 sps:$4 sm:$0xff]   ;;  %v5396_v21 = vld [vmem:[#allocation10 + $0xcc] ss:$16 sps:$4 sm:$0xff]  }
 0x202   : > { %v5399_v22 = vld [vmem:[#allocation10 + $0xe0] ss:$16 sps:$4 sm:$0xff]   ;;  %v5403_v24 = vld [vmem:[#allocation10 + $0xc8] ss:$16 sps:$4 sm:$0xff]   ;;  %v5406_v25 = vld [vmem:[#allocation10 + $0xec] ss:$16 sps:$4 sm:$0xff]  }
 0x203   : > { %1616 = vmatpush1.bf16.msra.mxu0 %v5336_v1  ;;  %v1407_v23 = vld [vmem:[#allocation2] sm:$0xff]  ;;  %v5410_v27 = vld [vmem:[#allocation10 + $0xe8] ss:$16 sps:$4 sm:$0xff]   ;;  %s5451_s27 = sshll.u32 %s1405_s20, 6 }
 0x204   : > { %1617 = vmatprep.subr.bf16.mxu0 %v5340_v2  ;;  %1657 = vmatpush1.bf16.msra.mxu1 %v5357_v8  ;;  %v1418_v26 = vpack.c.bf16 %v1407_v23, %v1407_v23  ;;  %s1409_s13 = sshra.s32 %s5451_s27, 3  ;;  %v1408_v57 = vld [vmem:[#allocation3] sm:$0xff]  ;;  %s1721_s19 = sadd.s32 8, %s5451_s27 }
 0x205   : > { %1658 = vmatprep.subr.bf16.mxu1 %v5360_v9  ;;  %s3977_s30 = sshll.u32 %s1409_s13, 5  ;;  %s1722_s21 = sshra.s32 %s1721_s19, 3 }
 0x206   : > { %s1413_s16 = scalar_lea.vmem [#allocation4], %s3977_s30  ;;  %s3978_s22 = sshll.u32 %s1722_s21, 5 }
 0x207   : > { %1618 = vmatpush1.bf16.msra.mxu0 %v5349_v5  ;;  %v1414_v28 = vld [vmem:[%s1413_s16] sm:$0xff]  ;;  %v1415_v29 = vld [vmem:[%s1413_s16 + $0x8] sm:$0xff]  ;;  %v1417_v38 = vld [vmem:[%s1413_s16 + $0x18] sm:$0xff]  ;;  %s1726_s10 = scalar_lea.vmem [#allocation4], %s3978_s22  ;;  %s1842_s11 = sadd.s32 16, %s5451_s27 }
 0x208   : > { %1619 = vmatprep.subr.bf16.mxu0 %v5351_v6  ;;  %1659 = vmatpush1.bf16.msra.mxu1 %v5369_v12  ;;  %v1416_v44 = vld [vmem:[%s1413_s16 + $0x10] sm:$0xff]  ;;  %s1843_s18 = sshra.s32 %s1842_s11, 3  ;;  %s1963_s24 = sadd.s32 24, %s5451_s27 }
 0x209   : > { %1660 = vmatprep.subr.bf16.mxu1 %v5372_v13  ;;  %s3979_s12 = sshll.u32 %s1843_s18, 5  ;;  %s1964_s25 = sshra.s32 %s1963_s24, 3 }
 0x20a   : > { %s1847_s15 = scalar_lea.vmem [#allocation4], %s3979_s12  ;;  %s3980_s14 = sshll.u32 %s1964_s25, 5 }
 0x20b   : > { %1620 = vmatpush1.bf16.msra.mxu0 %v5363_v10  ;;  %s1968_s20 = scalar_lea.vmem [#allocation4], %s3980_s14  ;;  %s2084_s13 = sadd.s32 32, %s5451_s27 }
 0x20c   : > { %1621 = vmatprep.subr.bf16.mxu0 %v5366_v11  ;;  %1661 = vmatpush1.bf16.msra.mxu1 %v5381_v16  ;;  %s2085_s30 = sshra.s32 %s2084_s13, 3  ;;  %s2205_s21 = sadd.s32 40, %s5451_s27 }
 0x20d   : > { %1662 = vmatprep.subr.bf16.mxu1 %v5384_v17  ;;  %s3981_s16 = sshll.u32 %s2085_s30, 5  ;;  %s2206_s22 = sshra.s32 %s2205_s21, 3 }
 0x20e   : > { %s2089_s19 = scalar_lea.vmem [#allocation4], %s3981_s16  ;;  %s2326_s18 = sadd.s32 48, %s5451_s27 }
 0x20f   : > { %1622 = vmatpush1.bf16.msra.mxu0 %v5374_v14  ;;  %s2327_s12 = sshra.s32 %s2326_s18, 3  ;;  %s2447_s25 = sadd.s32 56, %s5451_s27 }
 0x210   : > { %1623 = vmatprep.subr.bf16.mxu0 %v5377_v15  ;;  %1663 = vmatpush1.bf16.msra.mxu1 %v5393_v20  ;;  %s2448_s14 = sshra.s32 %s2447_s25, 3 }
 0x211   : > { %1664 = vmatprep.subr.bf16.mxu1 %v5396_v21 }
 0x213   : > { %1624 = vmatpush1.bf16.msra.mxu0 %v5387_v18 }
 0x214   : > { %1625 = vmatprep.subr.bf16.mxu0 %v5390_v19  ;;  %1665 = vmatpush1.bf16.msra.mxu1 %v5403_v24 }
 0x215   : > { %1666 = vmatprep.subr.bf16.mxu1 %v5406_v25 }
 0x217   : > { %1626 = vmatpush1.bf16.msra.mxu0 %v5399_v22 }
 0x218   : > { %1732 = vmatprep.subr.bf16.mxu0 %v5316_v61  ;;  %1667 = vmatpush1.bf16.msra.mxu1 %v5410_v27 }
 0x219   : > { %1773 = vmatprep.subr.bf16.mxu1 %v5331_v63 }
 0x21a   : > { %1644 = vmatmul.mubr.bf16.vlgmr.msra.gmra.mrb[0].mxu0 %v1418_v26 }
 0x21b   : > { %1733 = vmatpush1.bf16.msra.mxu0 %v5318_v53  ;;  %1764 = vmatprep.mubr.bf16.mxu0 %v4954_v54 }
 0x21c   : > { %1734 = vmatprep.subr.bf16.mxu0 %v5323_v55  ;;  %1685 = vmatmul.mubr.bf16.vlgmr.msra.gmra.mrb[0].mxu1 %v1418_v26 }
 0x21d   : > { %1774 = vmatpush1.bf16.msra.mxu1 %v5333_v0  ;;  %1805 = vmatprep.mubr.bf16.mxu1 %v4954_v54 }
 0x21e   : > { %1775 = vmatprep.subr.bf16.mxu1 %v5343_v3 }
 0x21f   : > { %1735 = vmatpush1.bf16.msra.mxu0 %v5326_v56 }
 0x220   : > { %1736 = vmatprep.subr.bf16.mxu0 %v5329_v62 }
 0x221   : > { %1776 = vmatpush1.bf16.msra.mxu1 %v5345_v4 }
 0x222   : > { %1777 = vmatprep.subr.bf16.mxu1 %v5353_v7 }
 0x223   : > { %1737 = vmatpush1.bf16.msra.mxu0 %v5336_v1 }
 0x224   : > { %1738 = vmatprep.subr.bf16.mxu0 %v5340_v2 }
 0x225   : > { %1778 = vmatpush1.bf16.msra.mxu1 %v5357_v8 }
 0x226   : > { %1779 = vmatprep.subr.bf16.mxu1 %v5360_v9 }
 0x227   : > { %1739 = vmatpush1.bf16.msra.mxu0 %v5349_v5 }
 0x228   : > { %1740 = vmatprep.subr.bf16.mxu0 %v5351_v6 }
 0x229   : > { %1780 = vmatpush1.bf16.msra.mxu1 %v5369_v12 }
 0x22a   : > { %1781 = vmatprep.subr.bf16.mxu1 %v5372_v13 }
 0x22b   : > { %1741 = vmatpush1.bf16.msra.mxu0 %v5363_v10 }
 0x22c   : > { %1742 = vmatprep.subr.bf16.mxu0 %v5366_v11 }
 0x22d   : > { %1782 = vmatpush1.bf16.msra.mxu1 %v5381_v16 }
 0x22e   : > { %1783 = vmatprep.subr.bf16.mxu1 %v5384_v17 }
 0x22f   : > { %1743 = vmatpush1.bf16.msra.mxu0 %v5374_v14 }
 0x230   : > { %1744 = vmatprep.subr.bf16.mxu0 %v5377_v15 }
 0x231   : > { %1784 = vmatpush1.bf16.msra.mxu1 %v5393_v20 }
 0x232   : > { %1785 = vmatprep.subr.bf16.mxu1 %v5396_v21 }
 0x233   : > { %1745 = vmatpush1.bf16.msra.mxu0 %v5387_v18 }
 0x234   : > { %1746 = vmatprep.subr.bf16.mxu0 %v5390_v19 }
 0x235   : > { %1786 = vmatpush1.bf16.msra.mxu1 %v5403_v24 }
 0x236   : > { %1787 = vmatprep.subr.bf16.mxu1 %v5406_v25 }
 0x237   : > { %1747 = vmatpush1.bf16.msra.mxu0 %v5399_v22 }
 0x238   : > { %1853 = vmatprep.subr.bf16.mxu0 %v5316_v61 }
 0x239   : > { %1788 = vmatpush1.bf16.msra.mxu1 %v5410_v27 }
 0x23a   : > { %1894 = vmatprep.subr.bf16.mxu1 %v5331_v63 }
 0x2ed   : > { %v1645_v30 = vpop.f32.mrb[0].mxu0 }
 0x2ee   : > { %v1693_v31 = vadd.f32 %v1645_v30, %v1414_v28  ;;  %v1647_v32 = vpop.f32.mrb[1].mxu0 }
 0x2ef   : > { %v1694_v33 = vadd.f32 %v1647_v32, %v1415_v29  ;;  %v1649_v34 = vpop.f32.mrb[2].mxu0  ;;  %v1686_v39 = vpop.f32.mrb[0].mxu1 }
 0x2f0   : > { %v3815_v35 = vmul.f32 -1.442695, %v1693_v31  ;;  %v1650_v36 = vpop.f32.mrb[3].mxu0  ;;  %v1688_v40 = vpop.f32.mrb[1].mxu1  ;;  %v1695_v46 = vadd.f32 %v1686_v39, %v1416_v44  ;;  %v1728_v34 = vld [vmem:[%s1726_s10 + $0x8] sm:$0xff] }
 0x2f1   : > { %v3816_v37 = vmul.f32 -1.442695, %v1694_v33  ;;  %v1696_v41 = vadd.f32 %v1688_v40, %v1417_v38  ;;  %v1690_v42 = vpop.f32.mrb[2].mxu1  ;;  %v1727_v33 = vld [vmem:[%s1726_s10] sm:$0xff] }
 0x2f2   : > { %4390 = vpow2.f32 %v3815_v35  ;;  %v1691_v43 = vpop.f32.mrb[3].mxu1 }
 0x2f3   : > { %4392 = vpow2.f32 %v3816_v37  ;;  %v3817_v45 = vmul.f32 -1.442695, %v1696_v41 }
 0x2f5   : > { %4394 = vpow2.f32 %v3817_v45 }
 0x2f6   : > { %4396 = vtanh.f32 %v1695_v46 }
 0x2fc   : > { %v4391_v47 = vpop.eup %4390 }
 0x2fd   : > { %v4393_v48 = vpop.eup %4392  ;;  %v1700_v49 = vadd.f32 1.0, %v4391_v47  ;;  %v1730_v47 = vld [vmem:[%s1726_s10 + $0x18] sm:$0xff] }
 0x2fe   : > { %v1706_v50 = vadd.f32 1.0, %v4393_v48 }
 0x2ff   : > { %4398 = vrcp.f32 %v1700_v49  ;;  %v4395_v51 = vpop.eup %4394  ;;  %v1729_v49 = vld [vmem:[%s1726_s10 + $0x10] sm:$0xff]  ;;  %s3982_s10 = sshll.u32 %s2206_s22, 5 }
 0x300   : > { %4400 = vrcp.f32 %v1706_v50  ;;  %v4397_v52 = vpop.eup %4396  ;;  %v1713_v59 = vadd.f32 1.0, %v4395_v51  ;;  %s2210_s11 = scalar_lea.vmem [#allocation4], %s3982_s10 }
 0x302   : > { %4402 = vrcp.f32 %v1713_v59 }
 0x309   : > { %v4399_v58 = vpop.eup %4398 }
 0x30a   : > { %v4401_v60 = vpop.eup %4400  ;;  %v1717_v23 = vmul.f32 %v4399_v58, %v4397_v52 }
 0x30b   : > { %v1716_v26 = vmul.f32 %v4401_v60, %v1408_v57 }
 0x30c   : > { %v4403_v29 = vpop.eup %4402 }
 0x30d   : > { %v5454_v28 = vadd.f32 %v1717_v23, %v1716_v26 }
 0x30f   : > { %4404 = vtanh.f32 %v5454_v28 }
 0x319   : > { %v4405_v30 = vpop.eup %4404 }
 0x31a   : > { %v1720_v31 = vmul.f32 %v4405_v30, %v4403_v29 }
 0x31c   : > { %v1731_v32 = vpack.c.bf16 %v1720_v31, %v1720_v31 }
 0x31e   : > { %1765 = vmatmul.mubr.bf16.vlgmr.msra.gmra.mrb[4].mxu0 %v1731_v32  ;;  %1806 = vmatmul.mubr.bf16.vlgmr.msra.gmra.mrb[4].mxu1 %v1731_v32 }
 0x31f   : > { %1854 = vmatpush1.bf16.msra.mxu0 %v5318_v53  ;;  %1895 = vmatpush1.bf16.msra.mxu1 %v5333_v0 }
 0x320   : > { %1855 = vmatprep.subr.bf16.mxu0 %v5323_v55  ;;  %1896 = vmatprep.subr.bf16.mxu1 %v5343_v3 }
 0x321   : > { %1885 = vmatprep.mubr.bf16.mxu0 %v4954_v54  ;;  %1926 = vmatprep.mubr.bf16.mxu1 %v4954_v54 }
 0x323   : > { %1856 = vmatpush1.bf16.msra.mxu0 %v5326_v56  ;;  %1897 = vmatpush1.bf16.msra.mxu1 %v5345_v4 }
 0x324   : > { %1857 = vmatprep.subr.bf16.mxu0 %v5329_v62  ;;  %1898 = vmatprep.subr.bf16.mxu1 %v5353_v7 }
 0x327   : > { %1858 = vmatpush1.bf16.msra.mxu0 %v5336_v1  ;;  %1899 = vmatpush1.bf16.msra.mxu1 %v5357_v8 }
 0x328   : > { %1859 = vmatprep.subr.bf16.mxu0 %v5340_v2  ;;  %1900 = vmatprep.subr.bf16.mxu1 %v5360_v9 }
 0x32b   : > { %1860 = vmatpush1.bf16.msra.mxu0 %v5349_v5  ;;  %1901 = vmatpush1.bf16.msra.mxu1 %v5369_v12 }
 0x32c   : > { %1861 = vmatprep.subr.bf16.mxu0 %v5351_v6  ;;  %1902 = vmatprep.subr.bf16.mxu1 %v5372_v13 }
 0x32f   : > { %1862 = vmatpush1.bf16.msra.mxu0 %v5363_v10  ;;  %1903 = vmatpush1.bf16.msra.mxu1 %v5381_v16 }
 0x330   : > { %1863 = vmatprep.subr.bf16.mxu0 %v5366_v11  ;;  %1904 = vmatprep.subr.bf16.mxu1 %v5384_v17 }
 0x333   : > { %1864 = vmatpush1.bf16.msra.mxu0 %v5374_v14  ;;  %1905 = vmatpush1.bf16.msra.mxu1 %v5393_v20 }
 0x334   : > { %1865 = vmatprep.subr.bf16.mxu0 %v5377_v15  ;;  %1906 = vmatprep.subr.bf16.mxu1 %v5396_v21 }
 0x337   : > { %1866 = vmatpush1.bf16.msra.mxu0 %v5387_v18  ;;  %1907 = vmatpush1.bf16.msra.mxu1 %v5403_v24 }
 0x338   : > { %1867 = vmatprep.subr.bf16.mxu0 %v5390_v19  ;;  %1908 = vmatprep.subr.bf16.mxu1 %v5406_v25 }
 0x33b   : > { %1868 = vmatpush1.bf16.msra.mxu0 %v5399_v22  ;;  %1909 = vmatpush1.bf16.msra.mxu1 %v5410_v27 }
 0x33c   : > { %1974 = vmatprep.subr.bf16.mxu0 %v5316_v61  ;;  %2015 = vmatprep.subr.bf16.mxu1 %v5331_v63 }
 0x3f1   : > { %v1766_v35 = vpop.f32.mrb[4].mxu0  ;;  %v1807_v36 = vpop.f32.mrb[4].mxu1 }
 0x3f2   : > { %v1814_v37 = vadd.f32 %v1766_v35, %v1727_v33  ;;  %v1768_v38 = vpop.f32.mrb[5].mxu0  ;;  %v1809_v39 = vpop.f32.mrb[5].mxu1  ;;  %v1816_v51 = vadd.f32 %v1807_v36, %v1729_v49 }
 0x3f3   : > { %v1815_v40 = vadd.f32 %v1768_v38, %v1728_v34  ;;  %v1770_v41 = vpop.f32.mrb[6].mxu0  ;;  %v1811_v42 = vpop.f32.mrb[6].mxu1  ;;  %v1817_v48 = vadd.f32 %v1809_v39, %v1730_v47  ;;  %v1849_v38 = vld [vmem:[%s1847_s15 + $0x8] sm:$0xff] }
 0x3f4   : > { %v3820_v43 = vmul.f32 -1.442695, %v1814_v37  ;;  %v1771_v44 = vpop.f32.mrb[7].mxu0  ;;  %v1812_v45 = vpop.f32.mrb[7].mxu1 }
 0x3f5   : > { %v3821_v46 = vmul.f32 -1.442695, %v1815_v40  ;;  %v3822_v50 = vmul.f32 -1.442695, %v1817_v48 }
 0x3f6   : > { %4406 = vpow2.f32 %v3820_v43 }
 0x3f7   : > { %4408 = vpow2.f32 %v3821_v46 }
 0x3f8   : > { %4410 = vpow2.f32 %v3822_v50 }
 0x3f9   : > { %4412 = vtanh.f32 %v1816_v51  ;;  %v1851_v51 = vld [vmem:[%s1847_s15 + $0x18] sm:$0xff] }
 0x400   : > { %v4407_v52 = vpop.eup %4406 }
 0x401   : > { %v4409_v57 = vpop.eup %4408  ;;  %v1821_v58 = vadd.f32 1.0, %v4407_v52 }
 0x402   : > { %v1827_v59 = vadd.f32 1.0, %v4409_v57  ;;  %v4411_v60 = vpop.eup %4410  ;;  %v1850_v57 = vld [vmem:[%s1847_s15 + $0x10] sm:$0xff] }
 0x403   : > { %4414 = vrcp.f32 %v1821_v58  ;;  %v4413_v23 = vpop.eup %4412  ;;  %v1834_v31 = vadd.f32 1.0, %v4411_v60 }
 0x404   : > { %4416 = vrcp.f32 %v1827_v59 }
 0x405   : > { %4418 = vrcp.f32 %v1834_v31 }
 0x40d   : > { %v4415_v26 = vpop.eup %4414 }
 0x40e   : > { %v4417_v29 = vpop.eup %4416  ;;  %v1838_v30 = vmul.f32 %v4415_v26, %v4413_v23 }
 0x40f   : > { %v1837_v32 = vmul.f32 %v4417_v29, %v5454_v28  ;;  %v4419_v34 = vpop.eup %4418  ;;  %v1848_v28 = vld [vmem:[%s1847_s15] sm:$0xff]  ;;  %s3983_s15 = sshll.u32 %s2327_s12, 5 }
 0x410   : > { %s2331_s24 = scalar_lea.vmem [#allocation4], %s3983_s15 }
 0x411   : > { %v5493_v33 = vadd.f32 %v1838_v30, %v1837_v32 }
 0x413   : > { %4420 = vtanh.f32 %v5493_v33 }
 0x41d   : > { %v4421_v35 = vpop.eup %4420 }
 0x41e   : > { %v1841_v36 = vmul.f32 %v4421_v35, %v4419_v34 }
 0x420   : > { %v1852_v37 = vpack.c.bf16 %v1841_v36, %v1841_v36 }
 0x422   : > { %1886 = vmatmul.mubr.bf16.vlgmr.msra.gmra.mrb[8].mxu0 %v1852_v37  ;;  %1927 = vmatmul.mubr.bf16.vlgmr.msra.gmra.mrb[8].mxu1 %v1852_v37 }
 0x423   : > { %1975 = vmatpush1.bf16.msra.mxu0 %v5318_v53  ;;  %2016 = vmatpush1.bf16.msra.mxu1 %v5333_v0 }
 0x424   : > { %1976 = vmatprep.subr.bf16.mxu0 %v5323_v55  ;;  %2017 = vmatprep.subr.bf16.mxu1 %v5343_v3 }
 0x425   : > { %2006 = vmatprep.mubr.bf16.mxu0 %v4954_v54  ;;  %2047 = vmatprep.mubr.bf16.mxu1 %v4954_v54 }
 0x427   : > { %1977 = vmatpush1.bf16.msra.mxu0 %v5326_v56  ;;  %2018 = vmatpush1.bf16.msra.mxu1 %v5345_v4 }
 0x428   : > { %1978 = vmatprep.subr.bf16.mxu0 %v5329_v62  ;;  %2019 = vmatprep.subr.bf16.mxu1 %v5353_v7 }
 0x42b   : > { %1979 = vmatpush1.bf16.msra.mxu0 %v5336_v1  ;;  %2020 = vmatpush1.bf16.msra.mxu1 %v5357_v8 }
 0x42c   : > { %1980 = vmatprep.subr.bf16.mxu0 %v5340_v2  ;;  %2021 = vmatprep.subr.bf16.mxu1 %v5360_v9 }
 0x42f   : > { %1981 = vmatpush1.bf16.msra.mxu0 %v5349_v5  ;;  %2022 = vmatpush1.bf16.msra.mxu1 %v5369_v12 }
 0x430   : > { %1982 = vmatprep.subr.bf16.mxu0 %v5351_v6  ;;  %2023 = vmatprep.subr.bf16.mxu1 %v5372_v13 }
 0x433   : > { %1983 = vmatpush1.bf16.msra.mxu0 %v5363_v10  ;;  %2024 = vmatpush1.bf16.msra.mxu1 %v5381_v16 }
 0x434   : > { %1984 = vmatprep.subr.bf16.mxu0 %v5366_v11  ;;  %2025 = vmatprep.subr.bf16.mxu1 %v5384_v17 }
 0x437   : > { %1985 = vmatpush1.bf16.msra.mxu0 %v5374_v14  ;;  %2026 = vmatpush1.bf16.msra.mxu1 %v5393_v20 }
 0x438   : > { %1986 = vmatprep.subr.bf16.mxu0 %v5377_v15  ;;  %2027 = vmatprep.subr.bf16.mxu1 %v5396_v21 }
 0x43b   : > { %1987 = vmatpush1.bf16.msra.mxu0 %v5387_v18  ;;  %2028 = vmatpush1.bf16.msra.mxu1 %v5403_v24 }
 0x43c   : > { %1988 = vmatprep.subr.bf16.mxu0 %v5390_v19  ;;  %2029 = vmatprep.subr.bf16.mxu1 %v5406_v25 }
 0x43f   : > { %1989 = vmatpush1.bf16.msra.mxu0 %v5399_v22  ;;  %2030 = vmatpush1.bf16.msra.mxu1 %v5410_v27 }
 0x440   : > { %2095 = vmatprep.subr.bf16.mxu0 %v5316_v61  ;;  %2136 = vmatprep.subr.bf16.mxu1 %v5331_v63 }
 0x4f5   : > { %v1887_v39 = vpop.f32.mrb[8].mxu0  ;;  %v1928_v40 = vpop.f32.mrb[8].mxu1 }
 0x4f6   : > { %v1935_v41 = vadd.f32 %v1887_v39, %v1848_v28  ;;  %v1889_v42 = vpop.f32.mrb[9].mxu0  ;;  %v1930_v43 = vpop.f32.mrb[9].mxu1  ;;  %v1937_v59 = vadd.f32 %v1928_v40, %v1850_v57 }
 0x4f7   : > { %v1936_v44 = vadd.f32 %v1889_v42, %v1849_v38  ;;  %v1891_v45 = vpop.f32.mrb[10].mxu0  ;;  %v1932_v46 = vpop.f32.mrb[10].mxu1  ;;  %v1938_v52 = vadd.f32 %v1930_v43, %v1851_v51  ;;  %v1970_v42 = vld [vmem:[%s1968_s20 + $0x8] sm:$0xff] }
 0x4f8   : > { %v3825_v47 = vmul.f32 -1.442695, %v1935_v41  ;;  %v1892_v48 = vpop.f32.mrb[11].mxu0  ;;  %v1933_v49 = vpop.f32.mrb[11].mxu1 }
 0x4f9   : > { %v3826_v50 = vmul.f32 -1.442695, %v1936_v44  ;;  %v3827_v58 = vmul.f32 -1.442695, %v1938_v52 }
 0x4fa   : > { %4422 = vpow2.f32 %v3825_v47 }
 0x4fb   : > { %4424 = vpow2.f32 %v3826_v50 }
 0x4fc   : > { %4426 = vpow2.f32 %v3827_v58 }
 0x4fd   : > { %4428 = vtanh.f32 %v1937_v59  ;;  %v1972_v59 = vld [vmem:[%s1968_s20 + $0x18] sm:$0xff] }
 0x504   : > { %v4423_v60 = vpop.eup %4422 }
 0x505   : > { %v4425_v23 = vpop.eup %4424  ;;  %v1942_v26 = vadd.f32 1.0, %v4423_v60 }
 0x506   : > { %v1948_v29 = vadd.f32 1.0, %v4425_v23  ;;  %v4427_v30 = vpop.eup %4426  ;;  %v1971_v23 = vld [vmem:[%s1968_s20 + $0x10] sm:$0xff] }
 0x507   : > { %4430 = vrcp.f32 %v1942_v26  ;;  %v4429_v31 = vpop.eup %4428  ;;  %v1955_v36 = vadd.f32 1.0, %v4427_v30 }
 0x508   : > { %4432 = vrcp.f32 %v1948_v29 }
 0x509   : > { %4434 = vrcp.f32 %v1955_v36 }
 0x511   : > { %v4431_v32 = vpop.eup %4430 }
 0x512   : > { %v4433_v34 = vpop.eup %4432  ;;  %v1959_v35 = vmul.f32 %v4431_v32, %v4429_v31 }
 0x513   : > { %v1958_v37 = vmul.f32 %v4433_v34, %v5493_v33  ;;  %v4435_v38 = vpop.eup %4434  ;;  %v1969_v33 = vld [vmem:[%s1968_s20] sm:$0xff]  ;;  %s3984_s20 = sshll.u32 %s2448_s14, 5 }
 0x514   : > { %s2452_s13 = scalar_lea.vmem [#allocation4], %s3984_s20 }
 0x515   : > { %v5532_v28 = vadd.f32 %v1959_v35, %v1958_v37 }
 0x517   : > { %4436 = vtanh.f32 %v5532_v28 }
 0x521   : > { %v4437_v39 = vpop.eup %4436 }
 0x522   : > { %v1962_v40 = vmul.f32 %v4437_v39, %v4435_v38 }
 0x524   : > { %v1973_v41 = vpack.c.bf16 %v1962_v40, %v1962_v40 }
 0x526   : > { %2007 = vmatmul.mubr.bf16.vlgmr.msra.gmra.mrb[12].mxu0 %v1973_v41  ;;  %2048 = vmatmul.mubr.bf16.vlgmr.msra.gmra.mrb[12].mxu1 %v1973_v41 }
 0x527   : > { %2096 = vmatpush1.bf16.msra.mxu0 %v5318_v53  ;;  %2137 = vmatpush1.bf16.msra.mxu1 %v5333_v0 }
 0x528   : > { %2097 = vmatprep.subr.bf16.mxu0 %v5323_v55  ;;  %2138 = vmatprep.subr.bf16.mxu1 %v5343_v3 }
 0x529   : > { %2127 = vmatprep.mubr.bf16.mxu0 %v4954_v54  ;;  %2168 = vmatprep.mubr.bf16.mxu1 %v4954_v54 }
 0x52b   : > { %2098 = vmatpush1.bf16.msra.mxu0 %v5326_v56  ;;  %2139 = vmatpush1.bf16.msra.mxu1 %v5345_v4 }
 0x52c   : > { %2099 = vmatprep.subr.bf16.mxu0 %v5329_v62  ;;  %2140 = vmatprep.subr.bf16.mxu1 %v5353_v7 }
 0x52f   : > { %2100 = vmatpush1.bf16.msra.mxu0 %v5336_v1  ;;  %2141 = vmatpush1.bf16.msra.mxu1 %v5357_v8 }
 0x530   : > { %2101 = vmatprep.subr.bf16.mxu0 %v5340_v2  ;;  %2142 = vmatprep.subr.bf16.mxu1 %v5360_v9 }
 0x533   : > { %2102 = vmatpush1.bf16.msra.mxu0 %v5349_v5  ;;  %2143 = vmatpush1.bf16.msra.mxu1 %v5369_v12 }
 0x534   : > { %2103 = vmatprep.subr.bf16.mxu0 %v5351_v6  ;;  %2144 = vmatprep.subr.bf16.mxu1 %v5372_v13 }
 0x537   : > { %2104 = vmatpush1.bf16.msra.mxu0 %v5363_v10  ;;  %2145 = vmatpush1.bf16.msra.mxu1 %v5381_v16 }
 0x538   : > { %2105 = vmatprep.subr.bf16.mxu0 %v5366_v11  ;;  %2146 = vmatprep.subr.bf16.mxu1 %v5384_v17 }
 0x53b   : > { %2106 = vmatpush1.bf16.msra.mxu0 %v5374_v14  ;;  %2147 = vmatpush1.bf16.msra.mxu1 %v5393_v20 }
 0x53c   : > { %2107 = vmatprep.subr.bf16.mxu0 %v5377_v15  ;;  %2148 = vmatprep.subr.bf16.mxu1 %v5396_v21 }
 0x53f   : > { %2108 = vmatpush1.bf16.msra.mxu0 %v5387_v18  ;;  %2149 = vmatpush1.bf16.msra.mxu1 %v5403_v24 }
 0x540   : > { %2109 = vmatprep.subr.bf16.mxu0 %v5390_v19  ;;  %2150 = vmatprep.subr.bf16.mxu1 %v5406_v25 }
 0x543   : > { %2110 = vmatpush1.bf16.msra.mxu0 %v5399_v22  ;;  %2151 = vmatpush1.bf16.msra.mxu1 %v5410_v27 }
 0x544   : > { %2216 = vmatprep.subr.bf16.mxu0 %v5316_v61  ;;  %2257 = vmatprep.subr.bf16.mxu1 %v5331_v63 }
 0x5f9   : > { %v2008_v43 = vpop.f32.mrb[12].mxu0  ;;  %v2049_v44 = vpop.f32.mrb[12].mxu1 }
 0x5fa   : > { %v2056_v45 = vadd.f32 %v2008_v43, %v1969_v33  ;;  %v2010_v46 = vpop.f32.mrb[13].mxu0  ;;  %v2051_v47 = vpop.f32.mrb[13].mxu1  ;;  %v2058_v29 = vadd.f32 %v2049_v44, %v1971_v23 }
 0x5fb   : > { %v2057_v48 = vadd.f32 %v2010_v46, %v1970_v42  ;;  %v2012_v49 = vpop.f32.mrb[14].mxu0  ;;  %v2053_v50 = vpop.f32.mrb[14].mxu1  ;;  %v2059_v60 = vadd.f32 %v2051_v47, %v1972_v59  ;;  %v2092_v59 = vld [vmem:[%s2089_s19 + $0x10] sm:$0xff] }
 0x5fc   : > { %v3830_v51 = vmul.f32 -1.442695, %v2056_v45  ;;  %v2013_v52 = vpop.f32.mrb[15].mxu0  ;;  %v2054_v57 = vpop.f32.mrb[15].mxu1 }
 0x5fd   : > { %v3831_v58 = vmul.f32 -1.442695, %v2057_v48  ;;  %v3832_v26 = vmul.f32 -1.442695, %v2059_v60 }
 0x5fe   : > { %4438 = vpow2.f32 %v3830_v51 }
 0x5ff   : > { %4440 = vpow2.f32 %v3831_v58 }
 0x600   : > { %4442 = vpow2.f32 %v3832_v26 }
 0x601   : > { %4444 = vtanh.f32 %v2058_v29 }
 0x608   : > { %v4439_v30 = vpop.eup %4438 }
 0x609   : > { %v4441_v31 = vpop.eup %4440  ;;  %v2063_v32 = vadd.f32 1.0, %v4439_v30 }
 0x60a   : > { %v2069_v34 = vadd.f32 1.0, %v4441_v31  ;;  %v4443_v35 = vpop.eup %4442 }
 0x60b   : > { %4446 = vrcp.f32 %v2063_v32  ;;  %v4445_v36 = vpop.eup %4444  ;;  %v2076_v40 = vadd.f32 1.0, %v4443_v35 }
 0x60c   : > { %4448 = vrcp.f32 %v2069_v34 }
 0x60d   : > { %4450 = vrcp.f32 %v2076_v40 }
 0x615   : > { %v4447_v37 = vpop.eup %4446 }
 0x616   : > { %v4449_v38 = vpop.eup %4448  ;;  %v2080_v39 = vmul.f32 %v4447_v37, %v4445_v36 }
 0x617   : > { %v2079_v41 = vmul.f32 %v4449_v38, %v5532_v28  ;;  %v4451_v42 = vpop.eup %4450 }
 0x619   : > { %v5571_v33 = vadd.f32 %v2080_v39, %v2079_v41 }
 0x61b   : > { %4452 = vtanh.f32 %v5571_v33 }
 0x625   : > { %v4453_v43 = vpop.eup %4452 }
 0x626   : > { %v2083_v44 = vmul.f32 %v4453_v43, %v4451_v42 }
 0x628   : > { %v2094_v45 = vpack.c.bf16 %v2083_v44, %v2083_v44 }
 0x62a   : > { %2128 = vmatmul.mubr.bf16.vlgmr.msra.gmra.mrb[16].mxu0 %v2094_v45  ;;  %2169 = vmatmul.mubr.bf16.vlgmr.msra.gmra.mrb[16].mxu1 %v2094_v45  ;;  %v5613_v45 = vld [vmem:[#allocation10] ss:$16 sps:$4 sm:$0xff]  }
 0x62b   : > { %2217 = vmatpush1.bf16.msra.mxu0 %v5318_v53  ;;  %2258 = vmatpush1.bf16.msra.mxu1 %v5333_v0  ;;  %v2090_v53 = vld [vmem:[%s2089_s19] sm:$0xff] }
 0x62c   : > { %2218 = vmatprep.subr.bf16.mxu0 %v5323_v55  ;;  %2259 = vmatprep.subr.bf16.mxu1 %v5343_v3  ;;  %v2091_v55 = vld [vmem:[%s2089_s19 + $0x8] sm:$0xff] }
 0x62d   : > { %2248 = vmatprep.mubr.bf16.mxu0 %v4954_v54  ;;  %2289 = vmatprep.mubr.bf16.mxu1 %v4954_v54 }
 0x62f   : > { %2219 = vmatpush1.bf16.msra.mxu0 %v5326_v56  ;;  %2260 = vmatpush1.bf16.msra.mxu1 %v5345_v4 }
 0x630   : > { %2220 = vmatprep.subr.bf16.mxu0 %v5329_v62  ;;  %2261 = vmatprep.subr.bf16.mxu1 %v5353_v7 }
 0x633   : > { %2221 = vmatpush1.bf16.msra.mxu0 %v5336_v1  ;;  %2262 = vmatpush1.bf16.msra.mxu1 %v5357_v8 }
 0x634   : > { %2222 = vmatprep.subr.bf16.mxu0 %v5340_v2  ;;  %2263 = vmatprep.subr.bf16.mxu1 %v5360_v9 }
 0x637   : > { %2223 = vmatpush1.bf16.msra.mxu0 %v5349_v5  ;;  %2264 = vmatpush1.bf16.msra.mxu1 %v5369_v12 }
 0x638   : > { %2224 = vmatprep.subr.bf16.mxu0 %v5351_v6  ;;  %2265 = vmatprep.subr.bf16.mxu1 %v5372_v13 }
 0x63b   : > { %2225 = vmatpush1.bf16.msra.mxu0 %v5363_v10  ;;  %2266 = vmatpush1.bf16.msra.mxu1 %v5381_v16 }
 0x63c   : > { %2226 = vmatprep.subr.bf16.mxu0 %v5366_v11  ;;  %2267 = vmatprep.subr.bf16.mxu1 %v5384_v17 }
 0x63f   : > { %2227 = vmatpush1.bf16.msra.mxu0 %v5374_v14  ;;  %2268 = vmatpush1.bf16.msra.mxu1 %v5393_v20 }
 0x640   : > { %2228 = vmatprep.subr.bf16.mxu0 %v5377_v15  ;;  %2269 = vmatprep.subr.bf16.mxu1 %v5396_v21 }
 0x643   : > { %2229 = vmatpush1.bf16.msra.mxu0 %v5387_v18  ;;  %2270 = vmatpush1.bf16.msra.mxu1 %v5403_v24 }
 0x644   : > { %2230 = vmatprep.subr.bf16.mxu0 %v5390_v19  ;;  %2271 = vmatprep.subr.bf16.mxu1 %v5406_v25 }
 0x647   : > { %2231 = vmatpush1.bf16.msra.mxu0 %v5399_v22  ;;  %2272 = vmatpush1.bf16.msra.mxu1 %v5410_v27 }
 0x648   : > { %2337 = vmatprep.subr.bf16.mxu0 %v5316_v61  ;;  %2378 = vmatprep.subr.bf16.mxu1 %v5331_v63  ;;  %v2093_v63 = vld [vmem:[%s2089_s19 + $0x18] sm:$0xff] }
 0x6fd   : > { %v2129_v56 = vpop.f32.mrb[16].mxu0  ;;  %v2170_v62 = vpop.f32.mrb[16].mxu1 }
 0x6fe   : > { %v2177_v28 = vadd.f32 %v2129_v56, %v2090_v53  ;;  %v2131_v46 = vpop.f32.mrb[17].mxu0  ;;  %v2172_v47 = vpop.f32.mrb[17].mxu1  ;;  %v2179_v23 = vadd.f32 %v2170_v62, %v2092_v59  ;;  %v5617_v53 = vld [vmem:[#allocation10 + $0x24] ss:$16 sps:$4 sm:$0xff]   ;;  %v4527_v59 = vld [vmem:[#allocation10 + $0x4c] ss:$16 sps:$4 sm:$0xff]  }
 0x6ff   : > { %v2178_v48 = vadd.f32 %v2131_v46, %v2091_v55  ;;  %v2133_v49 = vpop.f32.mrb[18].mxu0  ;;  %v2174_v50 = vpop.f32.mrb[18].mxu1  ;;  %v2180_v58 = vadd.f32 %v2172_v47, %v2093_v63  ;;  %v5627_v55 = vld [vmem:[#allocation10 + $0x44] ss:$16 sps:$4 sm:$0xff]   ;;  %v4525_v63 = vld [vmem:[#allocation10 + $0x2c] ss:$16 sps:$4 sm:$0xff]  }
 0x700   : > { %v3835_v51 = vmul.f32 -1.442695, %v2177_v28  ;;  %v2134_v52 = vpop.f32.mrb[19].mxu0  ;;  %v2175_v57 = vpop.f32.mrb[19].mxu1 }
 0x701   : > { %v3836_v61 = vmul.f32 -1.442695, %v2178_v48  ;;  %v3837_v60 = vmul.f32 -1.442695, %v2180_v58  ;;  %v4526_v58 = vld [vmem:[#allocation10 + $0x28] ss:$16 sps:$4 sm:$0xff]  }
 0x702   : > { %4454 = vpow2.f32 %v3835_v51 }
 0x703   : > { %4456 = vpow2.f32 %v3836_v61  ;;  %v4524_v61 = vld [vmem:[#allocation10 + $0x8] ss:$16 sps:$4 sm:$0xff]  }
 0x704   : > { %4458 = vpow2.f32 %v3837_v60  ;;  %v4528_v60 = vld [vmem:[#allocation10 + $0x40] ss:$16 sps:$4 sm:$0xff]  }
 0x705   : > { %4460 = vtanh.f32 %v2179_v23  ;;  %v4529_v23 = vld [vmem:[#allocation10 + $0x48] ss:$16 sps:$4 sm:$0xff]  }
 0x70c   : > { %v4455_v26 = vpop.eup %4454 }
 0x70d   : > { %v4457_v29 = vpop.eup %4456  ;;  %v2184_v30 = vadd.f32 1.0, %v4455_v26  ;;  %v4530_v26 = vld [vmem:[#allocation10 + $0x64] ss:$16 sps:$4 sm:$0xff]  }
 0x70e   : > { %v2190_v31 = vadd.f32 1.0, %v4457_v29  ;;  %v4459_v32 = vpop.eup %4458  ;;  %v4531_v29 = vld [vmem:[#allocation10 + $0x6c] ss:$16 sps:$4 sm:$0xff]  }
 0x70f   : > { %4462 = vrcp.f32 %v2184_v30  ;;  %v4461_v34 = vpop.eup %4460  ;;  %v2197_v38 = vadd.f32 1.0, %v4459_v32  ;;  %v4532_v30 = vld [vmem:[#allocation10 + $0x60] ss:$16 sps:$4 sm:$0xff]   ;;  %v4535_v32 = vld [vmem:[#allocation10 + $0x8c] ss:$16 sps:$4 sm:$0xff]  }
 0x710   : > { %4464 = vrcp.f32 %v2190_v31  ;;  %v4533_v31 = vld [vmem:[#allocation10 + $0x68] ss:$16 sps:$4 sm:$0xff]  }
 0x711   : > { %4466 = vrcp.f32 %v2197_v38  ;;  %v4540_v38 = vld [vmem:[#allocation10 + $0xa0] ss:$16 sps:$4 sm:$0xff]  }
 0x719   : > { %v4463_v35 = vpop.eup %4462 }
 0x71a   : > { %v4465_v36 = vpop.eup %4464  ;;  %v2201_v37 = vmul.f32 %v4463_v35, %v4461_v34  ;;  %v4536_v34 = vld [vmem:[#allocation10 + $0x80] ss:$16 sps:$4 sm:$0xff]   ;;  %v4537_v35 = vld [vmem:[#allocation10 + $0x88] ss:$16 sps:$4 sm:$0xff]  }
 0x71b   : > { %v2200_v39 = vmul.f32 %v4465_v36, %v5571_v33  ;;  %v4467_v41 = vpop.eup %4466  ;;  %v5623_v33 = vld [vmem:[#allocation10 + $0x20] ss:$16 sps:$4 sm:$0xff]   ;;  %v4538_v36 = vld [vmem:[#allocation10 + $0xa4] ss:$16 sps:$4 sm:$0xff]  }
 0x71d   : > { %v5610_v40 = vadd.f32 %v2201_v37, %v2200_v39  ;;  %v4539_v37 = vld [vmem:[#allocation10 + $0xac] ss:$16 sps:$4 sm:$0xff]   ;;  %v4541_v39 = vld [vmem:[#allocation10 + $0xa8] ss:$16 sps:$4 sm:$0xff]  }
 0x71f   : > { %4468 = vtanh.f32 %v5610_v40 }
 0x729   : > { %v4469_v42 = vpop.eup %4468 }
 0x72a   : > { %v2204_v43 = vmul.f32 %v4469_v42, %v4467_v41  ;;  %v4543_v41 = vld [vmem:[#allocation10 + $0xcc] ss:$16 sps:$4 sm:$0xff]   ;;  %v4544_v42 = vld [vmem:[#allocation10 + $0xc0] ss:$16 sps:$4 sm:$0xff]  }
 0x72c   : > { %v2215_v44 = vpack.c.bf16 %v2204_v43, %v2204_v43  ;;  %v4545_v43 = vld [vmem:[#allocation10 + $0xc8] ss:$16 sps:$4 sm:$0xff]  }
 0x72e   : > { %2249 = vmatmul.mubr.bf16.vlgmr.msra.gmra.mrb[20].mxu0 %v2215_v44  ;;  %2290 = vmatmul.mubr.bf16.vlgmr.msra.gmra.mrb[20].mxu1 %v2215_v44  ;;  %v4546_v44 = vld [vmem:[#allocation10 + $0xe4] ss:$16 sps:$4 sm:$0xff]  }
 0x72f   : > { %2338 = vmatpush1.bf16.msra.mxu0 %v5613_v45  ;;  %2379 = vmatpush1.bf16.msra.mxu1 %v5333_v0  ;;  %v4522_v0 = vld [vmem:[#allocation10 + $0x4] ss:$16 sps:$4 sm:$0xff]  }
 0x730   : > { %2339 = vmatprep.subr.bf16.mxu0 %v5617_v53  ;;  %2380 = vmatprep.subr.bf16.mxu1 %v5343_v3  ;;  %v2212_v3 = vld [vmem:[%s2210_s11 + $0x8] sm:$0xff] }
 0x731   : > { %2369 = vmatprep.mubr.bf16.mxu0 %v4954_v54  ;;  %2410 = vmatprep.mubr.bf16.mxu1 %v4954_v54 }
 0x733   : > { %2340 = vmatpush1.bf16.msra.mxu0 %v5623_v33  ;;  %2381 = vmatpush1.bf16.msra.mxu1 %v5345_v4 }
 0x734   : > { %2341 = vmatprep.subr.bf16.mxu0 %v5627_v55  ;;  %2382 = vmatprep.subr.bf16.mxu1 %v5353_v7 }
 0x737   : > { %2342 = vmatpush1.bf16.msra.mxu0 %v5336_v1  ;;  %2383 = vmatpush1.bf16.msra.mxu1 %v5357_v8  ;;  %v4523_v1 = vld [vmem:[#allocation10 + $0xc] ss:$16 sps:$4 sm:$0xff]  }
 0x738   : > { %2343 = vmatprep.subr.bf16.mxu0 %v5340_v2  ;;  %2384 = vmatprep.subr.bf16.mxu1 %v5360_v9  ;;  %v2211_v2 = vld [vmem:[%s2210_s11] sm:$0xff] }
 0x73b   : > { %2344 = vmatpush1.bf16.msra.mxu0 %v5349_v5  ;;  %2385 = vmatpush1.bf16.msra.mxu1 %v5369_v12 }
 0x73c   : > { %2345 = vmatprep.subr.bf16.mxu0 %v5351_v6  ;;  %2386 = vmatprep.subr.bf16.mxu1 %v5372_v13 }
 0x73f   : > { %2346 = vmatpush1.bf16.msra.mxu0 %v5363_v10  ;;  %2387 = vmatpush1.bf16.msra.mxu1 %v5381_v16  ;;  %v2214_v16 = vld [vmem:[%s2210_s11 + $0x18] sm:$0xff] }
 0x740   : > { %2347 = vmatprep.subr.bf16.mxu0 %v5366_v11  ;;  %2388 = vmatprep.subr.bf16.mxu1 %v5384_v17 }
 0x743   : > { %2348 = vmatpush1.bf16.msra.mxu0 %v5374_v14  ;;  %2389 = vmatpush1.bf16.msra.mxu1 %v5393_v20 }
 0x744   : > { %2349 = vmatprep.subr.bf16.mxu0 %v5377_v15  ;;  %2390 = vmatprep.subr.bf16.mxu1 %v5396_v21 }
 0x747   : > { %2350 = vmatpush1.bf16.msra.mxu0 %v5387_v18  ;;  %2391 = vmatpush1.bf16.msra.mxu1 %v5403_v24  ;;  %v2213_v18 = vld [vmem:[%s2210_s11 + $0x10] sm:$0xff] }
 0x748   : > { %2351 = vmatprep.subr.bf16.mxu0 %v5390_v19  ;;  %2392 = vmatprep.subr.bf16.mxu1 %v5406_v25 }
 0x74b   : > { %2352 = vmatpush1.bf16.msra.mxu0 %v5399_v22  ;;  %2393 = vmatpush1.bf16.msra.mxu1 %v5410_v27 }
 0x74c   : > { %2458 = vmatprep.subr.bf16.mxu0 %v4522_v0  ;;  %2499 = vmatprep.subr.bf16.mxu1 %v4523_v1  ;;  %v2333_v0 = vld [vmem:[%s2331_s24 + $0x8] sm:$0xff] }
 0x801   : > { %v2250_v4 = vpop.f32.mrb[20].mxu0  ;;  %v2291_v5 = vpop.f32.mrb[20].mxu1 }
 0x802   : > { %v2298_v6 = vadd.f32 %v2250_v4, %v2211_v2  ;;  %v2252_v7 = vpop.f32.mrb[21].mxu0  ;;  %v2293_v8 = vpop.f32.mrb[21].mxu1  ;;  %v2300_v20 = vadd.f32 %v2291_v5, %v2213_v18 }
 0x803   : > { %v2299_v9 = vadd.f32 %v2252_v7, %v2212_v3  ;;  %v2254_v10 = vpop.f32.mrb[22].mxu0  ;;  %v2295_v11 = vpop.f32.mrb[22].mxu1  ;;  %v2301_v17 = vadd.f32 %v2293_v8, %v2214_v16 }
 0x804   : > { %v3840_v12 = vmul.f32 -1.442695, %v2298_v6  ;;  %v2255_v13 = vpop.f32.mrb[23].mxu0  ;;  %v2296_v14 = vpop.f32.mrb[23].mxu1 }
 0x805   : > { %v3841_v15 = vmul.f32 -1.442695, %v2299_v9  ;;  %v3842_v19 = vmul.f32 -1.442695, %v2301_v17  ;;  %v2335_v13 = vld [vmem:[%s2331_s24 + $0x18] sm:$0xff] }
 0x806   : > { %4470 = vpow2.f32 %v3840_v12 }
 0x807   : > { %4472 = vpow2.f32 %v3841_v15  ;;  %v2334_v15 = vld [vmem:[%s2331_s24 + $0x10] sm:$0xff] }
 0x808   : > { %4474 = vpow2.f32 %v3842_v19 }
 0x809   : > { %4476 = vtanh.f32 %v2300_v20 }
 0x810   : > { %v4471_v21 = vpop.eup %4470 }
 0x811   : > { %v4473_v22 = vpop.eup %4472  ;;  %v2305_v24 = vadd.f32 1.0, %v4471_v21 }
 0x812   : > { %v2311_v25 = vadd.f32 1.0, %v4473_v22  ;;  %v4475_v27 = vpop.eup %4474 }
 0x813   : > { %4478 = vrcp.f32 %v2305_v24  ;;  %v4477_v56 = vpop.eup %4476  ;;  %v2318_v47 = vadd.f32 1.0, %v4475_v27 }
 0x814   : > { %4480 = vrcp.f32 %v2311_v25 }
 0x815   : > { %4482 = vrcp.f32 %v2318_v47 }
 0x81d   : > { %v4479_v62 = vpop.eup %4478 }
 0x81e   : > { %v4481_v28 = vpop.eup %4480  ;;  %v2322_v46 = vmul.f32 %v4479_v62, %v4477_v56 }
 0x81f   : > { %v2321_v48 = vmul.f32 %v4481_v28, %v5610_v40  ;;  %v4483_v50 = vpop.eup %4482  ;;  %v4542_v40 = vld [vmem:[#allocation10 + $0xc4] ss:$16 sps:$4 sm:$0xff]  }
 0x821   : > { %v5655_v49 = vadd.f32 %v2322_v46, %v2321_v48 }
 0x823   : > { %4484 = vtanh.f32 %v5655_v49 }
 0x82d   : > { %v4485_v51 = vpop.eup %4484 }
 0x82e   : > { %v2325_v52 = vmul.f32 %v4485_v51, %v4483_v50 }
 0x830   : > { %v2336_v57 = vpack.c.bf16 %v2325_v52, %v2325_v52  ;;  %v2453_v52 = vld [vmem:[%s2452_s13] sm:$0xff] }
 0x832   : > { %2370 = vmatmul.mubr.bf16.vlgmr.msra.gmra.mrb[24].mxu0 %v2336_v57  ;;  %2411 = vmatmul.mubr.bf16.vlgmr.msra.gmra.mrb[24].mxu1 %v2336_v57  ;;  %v2454_v57 = vld [vmem:[%s2452_s13 + $0x8] sm:$0xff] }
 0x833   : > { %2459 = vmatpush1.bf16.msra.mxu0 %v5613_v45  ;;  %2500 = vmatpush1.bf16.msra.mxu1 %v4524_v61  ;;  %v4547_v45 = vld [vmem:[#allocation10 + $0xec] ss:$16 sps:$4 sm:$0xff]  }
 0x834   : > { %2460 = vmatprep.subr.bf16.mxu0 %v5617_v53  ;;  %2501 = vmatprep.subr.bf16.mxu1 %v4525_v63  ;;  %v4548_v53 = vld [vmem:[#allocation10 + $0xe0] ss:$16 sps:$4 sm:$0xff]  }
 0x835   : > { %2490 = vmatprep.mubr.bf16.mxu0 %v4954_v54  ;;  %2531 = vmatprep.mubr.bf16.mxu1 %v4954_v54  ;;  %v4534_v54 = vld [vmem:[#allocation10 + $0x84] ss:$16 sps:$4 sm:$0xff]  }
 0x837   : > { %2461 = vmatpush1.bf16.msra.mxu0 %v5623_v33  ;;  %2502 = vmatpush1.bf16.msra.mxu1 %v4526_v58  ;;  %v4549_v33 = vld [vmem:[#allocation10 + $0xe8] ss:$16 sps:$4 sm:$0xff]  }
 0x838   : > { %2462 = vmatprep.subr.bf16.mxu0 %v5627_v55  ;;  %2503 = vmatprep.subr.bf16.mxu1 %v4527_v59  ;;  %v2332_v55 = vld [vmem:[%s2331_s24] sm:$0xff] }
 0x83b   : > { %2463 = vmatpush1.bf16.msra.mxu0 %v4528_v60  ;;  %2504 = vmatpush1.bf16.msra.mxu1 %v4529_v23 }
 0x83c   : > { %2464 = vmatprep.subr.bf16.mxu0 %v4530_v26  ;;  %2505 = vmatprep.subr.bf16.mxu1 %v4531_v29 }
 0x83f   : > { %2465 = vmatpush1.bf16.msra.mxu0 %v4532_v30  ;;  %2506 = vmatpush1.bf16.msra.mxu1 %v4533_v31 }
 0x840   : > { %2466 = vmatprep.subr.bf16.mxu0 %v4534_v54  ;;  %2507 = vmatprep.subr.bf16.mxu1 %v4535_v32  ;;  %v2456_v32 = vld [vmem:[%s2452_s13 + $0x18] sm:$0xff] }
 0x843   : > { %2467 = vmatpush1.bf16.msra.mxu0 %v4536_v34  ;;  %2508 = vmatpush1.bf16.msra.mxu1 %v4537_v35  ;;  %v2455_v35 = vld [vmem:[%s2452_s13 + $0x10] sm:$0xff] }
 0x844   : > { %2468 = vmatprep.subr.bf16.mxu0 %v4538_v36  ;;  %2509 = vmatprep.subr.bf16.mxu1 %v4539_v37 }
 0x847   : > { %2469 = vmatpush1.bf16.msra.mxu0 %v4540_v38  ;;  %2510 = vmatpush1.bf16.msra.mxu1 %v4541_v39 }
 0x848   : > { %2470 = vmatprep.subr.bf16.mxu0 %v4542_v40  ;;  %2511 = vmatprep.subr.bf16.mxu1 %v4543_v41 }
 0x84b   : > { %2471 = vmatpush1.bf16.msra.mxu0 %v4544_v42  ;;  %2512 = vmatpush1.bf16.msra.mxu1 %v4545_v43 }
 0x84c   : > { %2472 = vmatprep.subr.bf16.mxu0 %v4546_v44  ;;  %2513 = vmatprep.subr.bf16.mxu1 %v4547_v45 }
 0x84f   : > { %2473 = vmatpush1.bf16.msra.mxu0 %v4548_v53  ;;  %2514 = vmatpush1.bf16.msra.mxu1 %v4549_v33 }
 0x905   : > { %v2371_v1 = vpop.f32.mrb[24].mxu0  ;;  %v2412_v2 = vpop.f32.mrb[24].mxu1 }
 0x906   : > { %v2419_v3 = vadd.f32 %v2371_v1, %v2332_v55  ;;  %v2373_v4 = vpop.f32.mrb[25].mxu0  ;;  %v2414_v5 = vpop.f32.mrb[25].mxu1  ;;  %v2421_v17 = vadd.f32 %v2412_v2, %v2334_v15 }
 0x907   : > { %v2420_v6 = vadd.f32 %v2373_v4, %v2333_v0  ;;  %v2375_v7 = vpop.f32.mrb[26].mxu0  ;;  %v2416_v8 = vpop.f32.mrb[26].mxu1  ;;  %v2422_v14 = vadd.f32 %v2414_v5, %v2335_v13 }
 0x908   : > { %v3845_v9 = vmul.f32 -1.442695, %v2419_v3  ;;  %v2376_v10 = vpop.f32.mrb[27].mxu0  ;;  %v2417_v11 = vpop.f32.mrb[27].mxu1 }
 0x909   : > { %v3846_v12 = vmul.f32 -1.442695, %v2420_v6  ;;  %v3847_v16 = vmul.f32 -1.442695, %v2422_v14 }
 0x90a   : > { %4486 = vpow2.f32 %v3845_v9 }
 0x90b   : > { %4488 = vpow2.f32 %v3846_v12 }
 0x90c   : > { %4490 = vpow2.f32 %v3847_v16 }
 0x90d   : > { %4492 = vtanh.f32 %v2421_v17 }
 0x914   : > { %v4487_v18 = vpop.eup %4486 }
 0x915   : > { %v4489_v19 = vpop.eup %4488  ;;  %v2426_v20 = vadd.f32 1.0, %v4487_v18 }
 0x916   : > { %v2432_v21 = vadd.f32 1.0, %v4489_v19  ;;  %v4491_v22 = vpop.eup %4490 }
 0x917   : > { %4494 = vrcp.f32 %v2426_v20  ;;  %v4493_v24 = vpop.eup %4492  ;;  %v2439_v62 = vadd.f32 1.0, %v4491_v22 }
 0x918   : > { %4496 = vrcp.f32 %v2432_v21 }
 0x919   : > { %4498 = vrcp.f32 %v2439_v62 }
 0x921   : > { %v4495_v25 = vpop.eup %4494 }
 0x922   : > { %v4497_v27 = vpop.eup %4496  ;;  %v2443_v56 = vmul.f32 %v4495_v25, %v4493_v24 }
 0x923   : > { %v2442_v28 = vmul.f32 %v4497_v27, %v5655_v49  ;;  %v4499_v47 = vpop.eup %4498 }
 0x925   : > { %v2444_v46 = vadd.f32 %v2443_v56, %v2442_v28 }
 0x927   : > { %4500 = vtanh.f32 %v2444_v46 }
 0x931   : > { %v4501_v48 = vpop.eup %4500 }
 0x932   : > { %v2446_v50 = vmul.f32 %v4501_v48, %v4499_v47 }
 0x934   : > { %v2457_v51 = vpack.c.bf16 %v2446_v50, %v2446_v50 }
 0x936   : > { %2491 = vmatmul.mubr.bf16.vlgmr.msra.gmra.mrb[28].mxu0 %v2457_v51  ;;  %2532 = vmatmul.mubr.bf16.vlgmr.msra.gmra.mrb[28].mxu1 %v2457_v51 }
 0xa09   : > { %v2492_v61 = vpop.f32.mrb[28].mxu0  ;;  %v2533_v63 = vpop.f32.mrb[28].mxu1 }
 0xa0a   : > { %v2540_v58 = vadd.f32 %v2492_v61, %v2453_v52  ;;  %v2494_v59 = vpop.f32.mrb[29].mxu0  ;;  %v2535_v49 = vpop.f32.mrb[29].mxu1  ;;  %v2542_v37 = vadd.f32 %v2533_v63, %v2455_v35 }
 0xa0b   : > { %v2541_v60 = vadd.f32 %v2494_v59, %v2454_v57  ;;  %v2496_v23 = vpop.f32.mrb[30].mxu0  ;;  %v2537_v26 = vpop.f32.mrb[30].mxu1  ;;  %v2543_v34 = vadd.f32 %v2535_v49, %v2456_v32 }
 0xa0c   : > { %v3850_v29 = vmul.f32 -1.442695, %v2540_v58  ;;  %v2497_v30 = vpop.f32.mrb[31].mxu0  ;;  %v2538_v31 = vpop.f32.mrb[31].mxu1 }
 0xa0d   : > { %v3851_v54 = vmul.f32 -1.442695, %v2541_v60  ;;  %v3852_v36 = vmul.f32 -1.442695, %v2543_v34 }
 0xa0e   : > { %4502 = vpow2.f32 %v3850_v29 }
 0xa0f   : > { %4504 = vpow2.f32 %v3851_v54 }
 0xa10   : > { %4506 = vpow2.f32 %v3852_v36 }
 0xa11   : > { %4508 = vtanh.f32 %v2542_v37 }
 0xa18   : > { %v4503_v38 = vpop.eup %4502 }
 0xa19   : > { %v4505_v39 = vpop.eup %4504  ;;  %v2547_v40 = vadd.f32 1.0, %v4503_v38 }
 0xa1a   : > { %v2553_v41 = vadd.f32 1.0, %v4505_v39  ;;  %v4507_v42 = vpop.eup %4506 }
 0xa1b   : > { %4510 = vrcp.f32 %v2547_v40  ;;  %v4509_v43 = vpop.eup %4508  ;;  %v2560_v33 = vadd.f32 1.0, %v4507_v42 }
 0xa1c   : > { %4512 = vrcp.f32 %v2553_v41 }
 0xa1d   : > { %4514 = vrcp.f32 %v2560_v33 }
 0xa25   : > { %v4511_v44 = vpop.eup %4510 }
 0xa26   : > { %v4513_v45 = vpop.eup %4512  ;;  %v2564_v53 = vmul.f32 %v4511_v44, %v4509_v43 }
 0xa27   : > { %v2563_v55 = vmul.f32 %v4513_v45, %v2444_v46  ;;  %v4515_v1 = vpop.eup %4514 }
 0xa29   : > { %v2565_v0 = vadd.f32 %v2564_v53, %v2563_v55 }
 0xa2b   : > { %4516 = vtanh.f32 %v2565_v0  ;;  %2569 = vst [vmem:[#allocation3] sm:$0xff] %v2565_v0 }
 0xa35   : > { %v4517_v2 = vpop.eup %4516 }
 0xa36   : > { %v2567_v3 = vmul.f32 %v4517_v2, %v4515_v1 }
 0xa38   : > { %2568 = vst [vmem:[#allocation2] sm:$0xff] %v2567_v3 }
 0xa39 PF: > { %p3853_p2 = scmp.ne.s32.totalorder %s5021_s9, 1 }
 0xa3a   : > { %v4550_v4 = vld [vmem:[#allocation11 + $0x4] ss:$16 sps:$4 sm:$0xff] (!%p3853_p2)   ;;  %v4552_v5 = vld [vmem:[#allocation11 + $0xc] ss:$16 sps:$4 sm:$0xff] (!%p3853_p2)   ;;  %v4554_v6 = vld [vmem:[#allocation11] ss:$16 sps:$4 sm:$0xff] (!%p3853_p2)  }
 0xa3b   : > { %2573 = sbr.rel (%p3853_p2) target bundleno = 3191 (0xc77), region = 88  ;;  %3180 = vmatprep.subr.bf16.mxu0 (!%p3853_p2), %v4550_v4  ;;  %v4555_v7 = vld [vmem:[#allocation11 + $0x8] ss:$16 sps:$4 sm:$0xff] (!%p3853_p2)   ;;  %3260 = vmatprep.subr.bf16.mxu1 (!%p3853_p2), %v4552_v5  ;;  %v4556_v8 = vld [vmem:[#allocation11 + $0x24] ss:$16 sps:$4 sm:$0xff] (!%p3853_p2)  }
 0xa3c   : > { %3181 = vmatpush1.bf16.msra.mxu0 (!%p3853_p2), %v4554_v6  ;;  %3261 = vmatpush1.bf16.msra.mxu1 (!%p3853_p2), %v4555_v7  ;;  %v4558_v9 = vld [vmem:[#allocation11 + $0x2c] ss:$16 sps:$4 sm:$0xff] (!%p3853_p2)   ;;  %v4560_v10 = vld [vmem:[#allocation11 + $0x20] ss:$16 sps:$4 sm:$0xff] (!%p3853_p2)   ;;  %v4561_v11 = vld [vmem:[#allocation11 + $0x28] ss:$16 sps:$4 sm:$0xff] (!%p3853_p2)  }
 0xa3d   : > { %3182 = vmatprep.subr.bf16.mxu0 (!%p3853_p2), %v4556_v8  ;;  %3262 = vmatprep.subr.bf16.mxu1 (!%p3853_p2), %v4558_v9  ;;  %v4562_v12 = vld [vmem:[#allocation11 + $0x44] ss:$16 sps:$4 sm:$0xff] (!%p3853_p2)   ;;  %v4564_v13 = vld [vmem:[#allocation11 + $0x4c] ss:$16 sps:$4 sm:$0xff] (!%p3853_p2)   ;;  %v4566_v14 = vld [vmem:[#allocation11 + $0x40] ss:$16 sps:$4 sm:$0xff] (!%p3853_p2)  }
 0xa3e   : > { %v4567_v15 = vld [vmem:[#allocation11 + $0x48] ss:$16 sps:$4 sm:$0xff] (!%p3853_p2)   ;;  %v4568_v16 = vld [vmem:[#allocation11 + $0x64] ss:$16 sps:$4 sm:$0xff] (!%p3853_p2)   ;;  %v4570_v17 = vld [vmem:[#allocation11 + $0x6c] ss:$16 sps:$4 sm:$0xff] (!%p3853_p2)  }
 0xa3f   : > { %v4572_v18 = vld [vmem:[#allocation11 + $0x60] ss:$16 sps:$4 sm:$0xff] (!%p3853_p2)   ;;  %v4573_v19 = vld [vmem:[#allocation11 + $0x68] ss:$16 sps:$4 sm:$0xff] (!%p3853_p2)   ;;  %v4574_v20 = vld [vmem:[#allocation11 + $0x84] ss:$16 sps:$4 sm:$0xff] (!%p3853_p2)  }
 0xa40   : > { %3183 = vmatpush1.bf16.msra.mxu0 (!%p3853_p2), %v4560_v10  ;;  %3263 = vmatpush1.bf16.msra.mxu1 (!%p3853_p2), %v4561_v11  ;;  %v4576_v21 = vld [vmem:[#allocation11 + $0x8c] ss:$16 sps:$4 sm:$0xff] (!%p3853_p2)   ;;  %v4578_v22 = vld [vmem:[#allocation11 + $0x80] ss:$16 sps:$4 sm:$0xff] (!%p3853_p2)   ;;  %v4579_v24 = vld [vmem:[#allocation11 + $0x88] ss:$16 sps:$4 sm:$0xff] (!%p3853_p2)  }
 0xa41   : > { %3184 = vmatprep.subr.bf16.mxu0 (!%p3853_p2), %v4562_v12  ;;  %3264 = vmatprep.subr.bf16.mxu1 (!%p3853_p2), %v4564_v13  ;;  %v4580_v25 = vld [vmem:[#allocation11 + $0xa4] ss:$16 sps:$4 sm:$0xff] (!%p3853_p2)   ;;  %v4582_v27 = vld [vmem:[#allocation11 + $0xac] ss:$16 sps:$4 sm:$0xff] (!%p3853_p2)   ;;  %v4584_v56 = vld [vmem:[#allocation11 + $0xa0] ss:$16 sps:$4 sm:$0xff] (!%p3853_p2)  }
 0xa42   : > { %v4585_v62 = vld [vmem:[#allocation11 + $0xa8] ss:$16 sps:$4 sm:$0xff]   ;;  %v4586_v28 = vld [vmem:[#allocation11 + $0xc4] ss:$16 sps:$4 sm:$0xff]   ;;  %v4588_v46 = vld [vmem:[#allocation11 + $0xcc] ss:$16 sps:$4 sm:$0xff]  }
 0xa43   : > { %v4590_v47 = vld [vmem:[#allocation11 + $0xc0] ss:$16 sps:$4 sm:$0xff]   ;;  %v4591_v48 = vld [vmem:[#allocation11 + $0xc8] ss:$16 sps:$4 sm:$0xff]   ;;  %v4592_v50 = vld [vmem:[#allocation11 + $0xe4] ss:$16 sps:$4 sm:$0xff]  }
 0xa44   : > { %3185 = vmatpush1.bf16.msra.mxu0 %v4566_v14  ;;  %3265 = vmatpush1.bf16.msra.mxu1 %v4567_v15  ;;  %v4594_v51 = vld [vmem:[#allocation11 + $0xec] ss:$16 sps:$4 sm:$0xff]   ;;  %v4596_v52 = vld [vmem:[#allocation11 + $0xe0] ss:$16 sps:$4 sm:$0xff]   ;;  %v4597_v57 = vld [vmem:[#allocation11 + $0xe8] ss:$16 sps:$4 sm:$0xff]  }
 0xa45   : > { %3186 = vmatprep.subr.bf16.mxu0 %v4568_v16  ;;  %3266 = vmatprep.subr.bf16.mxu1 %v4570_v17  ;;  %v4598_v61 = vld [vmem:[#allocation11 + $0x104] ss:$16 sps:$4 sm:$0xff]   ;;  %v4600_v63 = vld [vmem:[#allocation11 + $0x10c] ss:$16 sps:$4 sm:$0xff]   ;;  %v4602_v58 = vld [vmem:[#allocation11 + $0x100] ss:$16 sps:$4 sm:$0xff]  }
 0xa46   : > { %v4603_v59 = vld [vmem:[#allocation11 + $0x108] ss:$16 sps:$4 sm:$0xff]   ;;  %v4604_v49 = vld [vmem:[#allocation11 + $0x124] ss:$16 sps:$4 sm:$0xff]   ;;  %v4606_v60 = vld [vmem:[#allocation11 + $0x12c] ss:$16 sps:$4 sm:$0xff]  }
 0xa47   : > { %v4608_v23 = vld [vmem:[#allocation11 + $0x120] ss:$16 sps:$4 sm:$0xff]   ;;  %v4609_v26 = vld [vmem:[#allocation11 + $0x128] ss:$16 sps:$4 sm:$0xff]   ;;  %v4610_v29 = vld [vmem:[#allocation11 + $0x144] ss:$16 sps:$4 sm:$0xff]  }
 0xa48   : > { %3187 = vmatpush1.bf16.msra.mxu0 %v4572_v18  ;;  %3267 = vmatpush1.bf16.msra.mxu1 %v4573_v19  ;;  %v4612_v30 = vld [vmem:[#allocation11 + $0x14c] ss:$16 sps:$4 sm:$0xff]   ;;  %v4614_v31 = vld [vmem:[#allocation11 + $0x140] ss:$16 sps:$4 sm:$0xff]   ;;  %v4615_v54 = vld [vmem:[#allocation11 + $0x148] ss:$16 sps:$4 sm:$0xff]  }
 0xa49   : > { %3188 = vmatprep.subr.bf16.mxu0 %v4574_v20  ;;  %3268 = vmatprep.subr.bf16.mxu1 %v4576_v21  ;;  %v4616_v32 = vld [vmem:[#allocation11 + $0x164] ss:$16 sps:$4 sm:$0xff]   ;;  %v4618_v34 = vld [vmem:[#allocation11 + $0x16c] ss:$16 sps:$4 sm:$0xff]   ;;  %v4620_v36 = vld [vmem:[#allocation11 + $0x160] ss:$16 sps:$4 sm:$0xff]  }
 0xa4a   : > { %v2574_v35 = vld [vmem:[%s5208_s23 + $0x54] sm:$0xff]  ;;  %v4624_v40 = vld [vmem:[#allocation11 + $0x18c] ss:$16 sps:$4 sm:$0xff]   ;;  %v4626_v41 = vld [vmem:[#allocation11 + $0x180] ss:$16 sps:$4 sm:$0xff]   ;;  %v4955_v19 = vmov 0  }
 0xa4b   : > { %v3855_v37 = vcombine.high %v2574_v35, %v2574_v35  ;;  %v4621_v38 = vld [vmem:[#allocation11 + $0x168] ss:$16 sps:$4 sm:$0xff]   ;;  %v4622_v39 = vld [vmem:[#allocation11 + $0x184] ss:$16 sps:$4 sm:$0xff]   ;;  %v4630_v44 = vld [vmem:[#allocation11 + $0x1ac] ss:$16 sps:$4 sm:$0xff]   ;;  %v3854_v8 = vcombine.low %v2574_v35, %v2574_v35 }
 0xa4c   : > { %3189 = vmatpush1.bf16.msra.mxu0 %v4578_v22  ;;  %3269 = vmatpush1.bf16.msra.mxu1 %v4579_v24  ;;  %v4627_v42 = vld [vmem:[#allocation11 + $0x188] ss:$16 sps:$4 sm:$0xff]   ;;  %v4628_v43 = vld [vmem:[#allocation11 + $0x1a4] ss:$16 sps:$4 sm:$0xff]   ;;  %v4632_v45 = vld [vmem:[#allocation11 + $0x1a0] ss:$16 sps:$4 sm:$0xff]  }
 0xa4d   : > { %3190 = vmatprep.subr.bf16.mxu0 %v4580_v25  ;;  %3270 = vmatprep.subr.bf16.mxu1 %v4582_v27  ;;  %v4633_v53 = vld [vmem:[#allocation11 + $0x1a8] ss:$16 sps:$4 sm:$0xff]   ;;  %v4634_v33 = vld [vmem:[#allocation11 + $0x1c4] ss:$16 sps:$4 sm:$0xff]   ;;  %v4636_v55 = vld [vmem:[#allocation11 + $0x1cc] ss:$16 sps:$4 sm:$0xff]  }
 0xa4e   : > { %3212 = vmatprep.mubr.bf16.mxu0 %v3855_v37  ;;  %3292 = vmatprep.mubr.bf16.mxu1 %v3855_v37  ;;  %v4638_v0 = vld [vmem:[#allocation11 + $0x1c0] ss:$16 sps:$4 sm:$0xff]   ;;  %v4639_v1 = vld [vmem:[#allocation11 + $0x1c8] ss:$16 sps:$4 sm:$0xff]   ;;  %v4640_v2 = vld [vmem:[#allocation11 + $0x1e4] ss:$16 sps:$4 sm:$0xff]  }
 0xa4f   : > { %v4642_v3 = vld [vmem:[#allocation11 + $0x1ec] ss:$16 sps:$4 sm:$0xff]   ;;  %v4644_v4 = vld [vmem:[#allocation11 + $0x1e0] ss:$16 sps:$4 sm:$0xff]   ;;  %v4645_v5 = vld [vmem:[#allocation11 + $0x1e8] ss:$16 sps:$4 sm:$0xff]  }
 0xa50   : > { %3191 = vmatpush1.bf16.msra.mxu0 %v4584_v56  ;;  %3271 = vmatpush1.bf16.msra.mxu1 %v4585_v62  ;;  %v4650_v6 = vld [vmem:[#allocation11 + $0x204] ss:$16 sps:$4 sm:$0xff]   ;;  %v4653_v7 = vld [vmem:[#allocation11 + $0x20c] ss:$16 sps:$4 sm:$0xff]   ;;  %v4648_v9 = vld [vmem:[#allocation11 + $0x200] ss:$16 sps:$4 sm:$0xff]  }
 0xa51   : > { %3192 = vmatprep.subr.bf16.mxu0 %v4586_v28  ;;  %3272 = vmatprep.subr.bf16.mxu1 %v4588_v46  ;;  %v4651_v10 = vld [vmem:[#allocation11 + $0x208] ss:$16 sps:$4 sm:$0xff]   ;;  %v4656_v11 = vld [vmem:[#allocation11 + $0x224] ss:$16 sps:$4 sm:$0xff]   ;;  %v4659_v12 = vld [vmem:[#allocation11 + $0x22c] ss:$16 sps:$4 sm:$0xff]  }
 0xa52   : > { %v4654_v13 = vld [vmem:[#allocation11 + $0x220] ss:$16 sps:$4 sm:$0xff]   ;;  %v4657_v14 = vld [vmem:[#allocation11 + $0x228] ss:$16 sps:$4 sm:$0xff]   ;;  %v4662_v15 = vld [vmem:[#allocation11 + $0x244] ss:$16 sps:$4 sm:$0xff]  }
 0xa53   : > { %v4665_v16 = vld [vmem:[#allocation11 + $0x24c] ss:$16 sps:$4 sm:$0xff]   ;;  %v4660_v17 = vld [vmem:[#allocation11 + $0x240] ss:$16 sps:$4 sm:$0xff]   ;;  %v4663_v18 = vld [vmem:[#allocation11 + $0x248] ss:$16 sps:$4 sm:$0xff]  }
 0xa54   : > { %3193 = vmatpush1.bf16.msra.mxu0 %v4590_v47  ;;  %3273 = vmatpush1.bf16.msra.mxu1 %v4591_v48  ;;  %v4668_v20 = vld [vmem:[#allocation11 + $0x264] ss:$16 sps:$4 sm:$0xff]   ;;  %v4671_v21 = vld [vmem:[#allocation11 + $0x26c] ss:$16 sps:$4 sm:$0xff]   ;;  %v4666_v22 = vld [vmem:[#allocation11 + $0x260] ss:$16 sps:$4 sm:$0xff]  }
 0xa55   : > { %3194 = vmatprep.subr.bf16.mxu0 %v4592_v50  ;;  %3274 = vmatprep.subr.bf16.mxu1 %v4594_v51  ;;  %v4669_v24 = vld [vmem:[#allocation11 + $0x268] ss:$16 sps:$4 sm:$0xff]   ;;  %v4674_v25 = vld [vmem:[#allocation11 + $0x284] ss:$16 sps:$4 sm:$0xff]   ;;  %v4677_v27 = vld [vmem:[#allocation11 + $0x28c] ss:$16 sps:$4 sm:$0xff]  }
 0xa56   : > { %v4672_v56 = vld [vmem:[#allocation11 + $0x280] ss:$16 sps:$4 sm:$0xff]   ;;  %v4675_v62 = vld [vmem:[#allocation11 + $0x288] ss:$16 sps:$4 sm:$0xff]   ;;  %v4680_v28 = vld [vmem:[#allocation11 + $0x2a4] ss:$16 sps:$4 sm:$0xff]  }
 0xa57   : > { %v4683_v46 = vld [vmem:[#allocation11 + $0x2ac] ss:$16 sps:$4 sm:$0xff]   ;;  %v4678_v47 = vld [vmem:[#allocation11 + $0x2a0] ss:$16 sps:$4 sm:$0xff]   ;;  %v4681_v48 = vld [vmem:[#allocation11 + $0x2a8] ss:$16 sps:$4 sm:$0xff]  }
 0xa58   : > { %3195 = vmatpush1.bf16.msra.mxu0 %v4596_v52  ;;  %3275 = vmatpush1.bf16.msra.mxu1 %v4597_v57  ;;  %v4686_v50 = vld [vmem:[#allocation11 + $0x2c4] ss:$16 sps:$4 sm:$0xff]   ;;  %v4689_v51 = vld [vmem:[#allocation11 + $0x2cc] ss:$16 sps:$4 sm:$0xff]   ;;  %v4684_v52 = vld [vmem:[#allocation11 + $0x2c0] ss:$16 sps:$4 sm:$0xff]  }
 0xa59   : > { %3196 = vmatprep.subr.bf16.mxu0 %v4598_v61  ;;  %3276 = vmatprep.subr.bf16.mxu1 %v4600_v63  ;;  %v4687_v57 = vld [vmem:[#allocation11 + $0x2c8] ss:$16 sps:$4 sm:$0xff]   ;;  %v4692_v61 = vld [vmem:[#allocation11 + $0x2e4] ss:$16 sps:$4 sm:$0xff]   ;;  %v4695_v63 = vld [vmem:[#allocation11 + $0x2ec] ss:$16 sps:$4 sm:$0xff]  }
 0xa5a   : > { %v4706_v35 = vld [vmem:[#allocation13 + $0x20] sm:$0xff]   ;;  %v4708_v37 = vld [vmem:[#allocation13 + $0x28] sm:$0xff]  }
 0xa5c   : > { %3197 = vmatpush1.bf16.msra.mxu0 %v4602_v58  ;;  %3277 = vmatpush1.bf16.msra.mxu1 %v4603_v59  ;;  %v4690_v58 = vld [vmem:[#allocation11 + $0x2e0] ss:$16 sps:$4 sm:$0xff]   ;;  %v4693_v59 = vld [vmem:[#allocation11 + $0x2e8] ss:$16 sps:$4 sm:$0xff]  }
 0xa5d   : > { %3198 = vmatprep.subr.bf16.mxu0 %v4604_v49  ;;  %3278 = vmatprep.subr.bf16.mxu1 %v4606_v60  ;;  %v4696_v49 = vld [vmem:[%s5208_s23 + $0x5c] ss:$0 sps:$4 sm:$0xff]   ;;  %v4697_v60 = vld [vmem:[#allocation13 + $0x40] sm:$0xff]  }
 0xa60   : > { %3199 = vmatpush1.bf16.msra.mxu0 %v4608_v23  ;;  %3279 = vmatpush1.bf16.msra.mxu1 %v4609_v26  ;;  %v4698_v23 = vld [vmem:[#allocation13] sm:$0xff]   ;;  %v4699_v26 = vld [vmem:[#allocation13 + $0x48] sm:$0xff]  }
 0xa61   : > { %3200 = vmatprep.subr.bf16.mxu0 %v4610_v29  ;;  %3280 = vmatprep.subr.bf16.mxu1 %v4612_v30  ;;  %v4700_v29 = vld [vmem:[#allocation13 + $0x8] sm:$0xff]   ;;  %v4701_v30 = vld [vmem:[#allocation13 + $0x50] sm:$0xff]  }
 0xa64   : > { %3201 = vmatpush1.bf16.msra.mxu0 %v4614_v31  ;;  %3281 = vmatpush1.bf16.msra.mxu1 %v4615_v54  ;;  %v4702_v31 = vld [vmem:[#allocation13 + $0x10] sm:$0xff]   ;;  %v4703_v54 = vld [vmem:[#allocation13 + $0x58] sm:$0xff]  }
 0xa65   : > { %3202 = vmatprep.subr.bf16.mxu0 %v4616_v32  ;;  %3282 = vmatprep.subr.bf16.mxu1 %v4618_v34  ;;  %v4704_v32 = vld [vmem:[#allocation13 + $0x18] sm:$0xff]   ;;  %v4705_v34 = vld [vmem:[#allocation13 + $0x60] sm:$0xff]  }
 0xa68   : > { %3203 = vmatpush1.bf16.msra.mxu0 %v4620_v36  ;;  %3283 = vmatpush1.bf16.msra.mxu1 %v4621_v38  ;;  %v4707_v36 = vld [vmem:[#allocation13 + $0x68] sm:$0xff]   ;;  %v4709_v38 = vld [vmem:[#allocation13 + $0x70] sm:$0xff]  }
 0xa69   : > { %3204 = vmatprep.subr.bf16.mxu0 %v4622_v39  ;;  %3284 = vmatprep.subr.bf16.mxu1 %v4624_v40  ;;  %v4710_v39 = vld [vmem:[#allocation13 + $0x30] sm:$0xff]   ;;  %v4711_v40 = vld [vmem:[#allocation13 + $0x78] sm:$0xff]  }
 0xa6c   : > { %3205 = vmatpush1.bf16.msra.mxu0 %v4626_v41  ;;  %3285 = vmatpush1.bf16.msra.mxu1 %v4627_v42  ;;  %v4712_v41 = vld [vmem:[#allocation13 + $0x38] sm:$0xff]   ;;  %v2674_v42 = vlaneseq }
 0xa6d   : > { %3206 = vmatprep.subr.bf16.mxu0 %v4628_v43  ;;  %3286 = vmatprep.subr.bf16.mxu1 %v4630_v44 }
 0xa6e   : > { %v2675_v43 = vshrl.u32 %v2674_v42, 7 }
 0xa70   : > { %3207 = vmatpush1.bf16.msra.mxu0 %v4632_v45  ;;  %3287 = vmatpush1.bf16.msra.mxu1 %v4633_v53  ;;  %v2676_v44 = vsub.s32 0, %v2675_v43  ;;  %v2672_v45 = vld [vmem:[%s5717_s5] sm:$0xf] }
 0xa71   : > { %3208 = vmatprep.subr.bf16.mxu0 %v4634_v33  ;;  %3288 = vmatprep.subr.bf16.mxu1 %v4636_v55  ;;  %v2684_v33 = vsub.s32 3, %v2675_v43 }
 0xa72   : > { %v2677_v53 = vrot.slane %v2672_v45, %v2676_v44 }
 0xa74   : > { %3209 = vmatpush1.bf16.msra.mxu0 %v4638_v0  ;;  %3289 = vmatpush1.bf16.msra.mxu1 %v4639_v1 }
 0xa75   : > { %3210 = vmatprep.subr.bf16.mxu0 %v4640_v2  ;;  %3290 = vmatprep.subr.bf16.mxu1 %v4642_v3  ;;  %v2685_v3 = vrot.slane %v2672_v45, %v2684_v33 }
 0xa78   : > { %3211 = vmatpush1.bf16.msra.mxu0 %v4644_v4  ;;  %3291 = vmatpush1.bf16.msra.mxu1 %v4645_v5 }
 0xa79   : > { %3220 = vmatprep.subr.bf16.mxu0 %v4650_v6  ;;  %3301 = vmatprep.subr.bf16.mxu1 %v4653_v7 }
 0xa7b   : > { %3213 = vmatmul.mubr.bf16.vlgmr.msra.gmra.mrb[0].mxu0 %v3854_v8  ;;  %3293 = vmatmul.mubr.bf16.vlgmr.msra.gmra.mrb[0].mxu1 %v3854_v8 }
 0xa7c   : > { %3221 = vmatpush1.bf16.msra.mxu0 %v4648_v9  ;;  %3302 = vmatpush1.bf16.msra.mxu1 %v4651_v10  ;;  %v2680_v10 = vsub.s32 2, %v2675_v43 }
 0xa7d   : > { %3222 = vmatprep.subr.bf16.mxu0 %v4656_v11  ;;  %3303 = vmatprep.subr.bf16.mxu1 %v4659_v12 }
 0xa7e   : > { %3252 = vmatprep.mubr.bf16.mxu0 %v4955_v19  ;;  %3333 = vmatprep.mubr.bf16.mxu1 %v4955_v19  ;;  %v2681_v12 = vrot.slane %v2672_v45, %v2680_v10 }
 0xa80   : > { %3223 = vmatpush1.bf16.msra.mxu0 %v4654_v13  ;;  %3304 = vmatpush1.bf16.msra.mxu1 %v4657_v14 }
 0xa81   : > { %3224 = vmatprep.subr.bf16.mxu0 %v4662_v15  ;;  %3305 = vmatprep.subr.bf16.mxu1 %v4665_v16 }
 0xa84   : > { %3225 = vmatpush1.bf16.msra.mxu0 %v4660_v17  ;;  %3306 = vmatpush1.bf16.msra.mxu1 %v4663_v18 }
 0xa85   : > { %3226 = vmatprep.subr.bf16.mxu0 %v4668_v20  ;;  %3307 = vmatprep.subr.bf16.mxu1 %v4671_v21 }
 0xa88   : > { %3227 = vmatpush1.bf16.msra.mxu0 %v4666_v22  ;;  %3308 = vmatpush1.bf16.msra.mxu1 %v4669_v24  ;;  %v3358_v24 = vld [vmem:[#allocation2] sm:$0xff] }
 0xa89   : > { %3228 = vmatprep.subr.bf16.mxu0 %v4674_v25  ;;  %3309 = vmatprep.subr.bf16.mxu1 %v4677_v27 }
 0xa8c   : > { %3229 = vmatpush1.bf16.msra.mxu0 %v4672_v56  ;;  %3310 = vmatpush1.bf16.msra.mxu1 %v4675_v62  ;;  %v3359_v56 = vpack.c.bf16 %v3358_v24, %v3358_v24 }
 0xa8d   : > { %3230 = vmatprep.subr.bf16.mxu0 %v4680_v28  ;;  %3311 = vmatprep.subr.bf16.mxu1 %v4683_v46  ;;  %v3955_v46 = vld [vmem:[%s5719_s7] ss:$0 sm:$0xff] }
 0xa90   : > { %3231 = vmatpush1.bf16.msra.mxu0 %v4678_v47  ;;  %3312 = vmatpush1.bf16.msra.mxu1 %v4681_v48 }
 0xa91   : > { %3232 = vmatprep.subr.bf16.mxu0 %v4686_v50  ;;  %3313 = vmatprep.subr.bf16.mxu1 %v4689_v51 }
 0xa94   : > { %3233 = vmatpush1.bf16.msra.mxu0 %v4684_v52  ;;  %3314 = vmatpush1.bf16.msra.mxu1 %v4687_v57 }
 0xa95   : > { %3234 = vmatprep.subr.bf16.mxu0 %v4692_v61  ;;  %3315 = vmatprep.subr.bf16.mxu1 %v4695_v63 }
 0xa98   : > { %3235 = vmatpush1.bf16.msra.mxu0 %v4690_v58  ;;  %3316 = vmatpush1.bf16.msra.mxu1 %v4693_v59 }
 0xa99   : > { %3985 = vmatprep.subr.bf16.mxu0 %v4697_v60 }
 0xa9b   : > { %3253 = vmatmul.mubr.bf16.vlgmr.msra.gmra.mrb[0].mxu0 %v4696_v49  ;;  %3334 = vmatmul.mubr.bf16.vlgmr.msra.gmra.mrb[0].mxu1 %v4696_v49 }
 0xa9c   : > { %3986 = vmatpush3.bf16.msra.mxu0 %v4698_v23 }
 0xa9d   : > { %3987 = vmatprep.subr.bf16.mxu0 %v4699_v26 }
 0xaa0   : > { %3988 = vmatpush3.bf16.msra.mxu0 %v4700_v29 }
 0xaa1   : > { %3989 = vmatprep.subr.bf16.mxu0 %v4701_v30 }
 0xaa4   : > { %3990 = vmatpush3.bf16.msra.mxu0 %v4702_v31 }
 0xaa5   : > { %3991 = vmatprep.subr.bf16.mxu0 %v4703_v54 }
 0xaa8   : > { %3992 = vmatpush3.bf16.msra.mxu0 %v4704_v32 }
 0xaa9   : > { %3993 = vmatprep.subr.bf16.mxu0 %v4705_v34 }
 0xaac   : > { %3994 = vmatpush3.bf16.msra.mxu0 %v4706_v35 }
 0xaad   : > { %3995 = vmatprep.subr.bf16.mxu0 %v4707_v36 }
 0xab0   : > { %3996 = vmatpush3.bf16.msra.mxu0 %v4708_v37 }
 0xab1   : > { %3997 = vmatprep.subr.bf16.mxu0 %v4709_v38 }
 0xab4   : > { %3998 = vmatpush3.bf16.msra.mxu0 %v4710_v39 }
 0xab5   : > { %3999 = vmatprep.subr.bf16.mxu0 %v4711_v40 }
 0xab8   : > { %4000 = vmatpush3.bf16.msra.mxu0 %v4712_v41 }
 0xb6e   : > { %v3254_v55 = vpop.f32.mrb[0].mxu0  ;;  %v3335_v0 = vpop.f32.mrb[0].mxu1 }
 0xb6f   : > { %v4071_v1 = vadd.f32 %v3254_v55, %v2677_v53  ;;  %v3256_v2 = vpop.f32.mrb[1].mxu0  ;;  %v3337_v4 = vpop.f32.mrb[1].mxu1  ;;  %v4072_v14 = vadd.f32 %v3335_v0, %v2681_v12 }
 0xb70   : > { %v3257_v5 = vpop.f32.mrb[2].mxu0  ;;  %v3339_v6 = vpop.f32.mrb[2].mxu1  ;;  %v4073_v11 = vadd.f32 %v3337_v4, %v2685_v3 }
 0xb71   : > { %v3953_v7 = vmul.f32 -1.442695, %v4071_v1  ;;  %v3258_v8 = vpop.f32.mrb[3].mxu0  ;;  %v3340_v9 = vpop.f32.mrb[3].mxu1 }
 0xb72   : > { %v3954_v13 = vmul.f32 -1.442695, %v4073_v11 }
 0xb73   : > { %4713 = vpow2.f32 %v3953_v7 }
 0xb74   : > { %4715 = vpow2.f32 %v3954_v13 }
 0xb75   : > { %4717 = vtanh.f32 %v4072_v14 }
 0xb7d   : > { %v4714_v15 = vpop.eup %4713 }
 0xb7e   : > { %v3345_v16 = vadd.f32 1.0, %v4714_v15  ;;  %v4716_v17 = vpop.eup %4715 }
 0xb7f   : > { %v3352_v18 = vadd.f32 1.0, %v4716_v17  ;;  %v4718_v19 = vpop.eup %4717 }
 0xb80   : > { %4719 = vrcp.f32 %v3345_v16 }
 0xb81   : > { %4721 = vrcp.f32 %v3352_v18 }
 0xb8a   : > { %v4720_v20 = vpop.eup %4719 }
 0xb8b   : > { %v3355_v21 = vmul.f32 %v4720_v20, %v4718_v19  ;;  %v4722_v22 = vpop.eup %4721 }
 0xb8d   : > { %4723 = vtanh.f32 %v3355_v21 }
 0xb97   : > { %v4724_v25 = vpop.eup %4723 }
 0xb98   : > { %v3357_v27 = vmul.f32 %v4724_v25, %v4722_v22 }
 0xb9a   : > { %v3360_v62 = vpack.c.bf16 %v3357_v27, %v3357_v27 }
 0xb9c   : > { %3528 = vmatprep.mubr.bf16.mxu0 %v3360_v62 }
 0xb9d   : > { %3529 = vmatmul.mubr.bf16.vlgmr.msra.gmra.mrb[4].mxu0 %v3359_v56 }
 0xc70   : > { %v4001_v28 = vpop.f32.mrb[4].mxu0 }
 0xc71   : > { %v4002_v47 = vpop.f32.mrb[5].mxu0 }
 0xc72   : > { %v4003_v48 = vadd.f32 %v4002_v47, %v4001_v28  ;;  %v4004_v50 = vpop.f32.mrb[6].mxu0 }
 0xc73   : > { %v4005_v51 = vpop.f32.mrb[7].mxu0 }
 0xc74   : > { %v3531_v52 = vadd.f32 %v4003_v48, %v3955_v46 }
 0xc76   : > { %3536 = vst [vmem:[#allocation14] sm:$0xff] %v3531_v52 }
 0xc77 PF: > { %p4133_p3 = scmp.eq.s32.totalorder %s5021_s9, 1  ;;  %s4956_s19 = smov [#allocation14]  }
 0xc78   : > { %s3544_s21 = sshll.u32 %s4956_s19, 4  ;;  %s3545_s21 = int_to_ptr.vmem [resolvable:$true] %s3544_s21 }
 0xc79   : > { %s4867_s22 = scalar_lea.vmem %s3545_s21, 128  ;;  %p4874_p7 = scmp.lt.s32.totalorder %s3545_s21, %s3545_s21 }
 0xc7a   : > { %p4868_p9 = scmp.ne.s32.totalorder %s3545_s21, %s4867_s22  ;;  %p4875_p11 = scmp.lt.s32.totalorder %s4867_s22, %s4867_s22 }
 0xc7c   : > { %p4869_p1 = pnand %p4868_p9, %p4133_p3  ;;  %p4876_p10 = por %p4875_p11, %p4874_p7 }
 0xc7e   : > { %p4870_p4 = pneg %p4869_p1 }
 0xc80   : > { %p4877_p8 = pnand %p4876_p10, %p4870_p4 }
 0xc82   : > { %4880 = shalt.err (!%p4877_p8)
}
 0xc83   : > { %s4881_s18 = scalar_lea.hbm %s5720_s8, 128 }
 0xc84   : > { %p4882_p5 = scmp.ne.s32.totalorder %s5720_s8, %s4881_s18  ;;  %p4887_p13 = scmp.lt.u32.totalorder %s4881_s18, %s5720_s8 }
 0xc86   : > { %p4883_p6 = pnand %p4882_p5, %p4133_p3 }
 0xc88   : > { %p4884_p12 = pneg %p4883_p6 }
 0xc8a   : > { %p4889_p0 = pnand %p4887_p13, %p4884_p12 }
 0xc8c   : > { %4892 = shalt.err (!%p4889_p0)
}
 0xc8d   : > { %4104 = dma.vmem_to_hbm [thread:$0]  (%p4133_p3), %s3545_s21, 128, %s5720_s8, [#allocation7]  }
 0xc8e   : > { %4922 = dma.done.wait (%p4133_p3), [#allocation7], 128  }
 0xc8f   : > { %4924 = vsyncadd (%p4133_p3), [#allocation7], 4294967168 }
 0xc90 PF: > { %p21_p2 = scmp.ge.s32.totalorder %s5151_s17, 4   ;;  %s5736_s27 = smov %s4931_s28 }
 0xc91   : > { %s5737_s28 = smov %s4935_s29  ;;  %s5738_s29 = smov %s5164_s26 }
 0xc92   : > { %s5739_s30 = smov %s5151_s17  ;;  %23 = sbr.rel (!%p21_p2) target bundleno = 6 (0x6), region = 130 }
 0xc99   :  { %3557 = vsyncpa [#allocation6], 1 }
 0xc9a   :  { %3559 = vsyncpa [#allocation6 + $0x1], 1 }
 0xc9b   :  { %3560 = vsyncpa [#allocation9], 1 }
 0xc9c   :  { %3561 = vsyncpa [#allocation12], 1 }
 0xc9d   :  { %3562 = vsyncpa [#allocation7], 1 }
 0xc9e   :  { %3564 = vsyncpa [#allocation7 + $0x1], 1 }

</bundles_post_ra>
